<compile_context>
chip_gen: v7x
topology: tpu7x:2x2x1
jax: 0.10.0
libtpu: 0.0.40
codegen_flags: <defaults>
</compile_context>

<pallas_src>
import functools

import jax
import jax.numpy as jnp
from jax.experimental import pallas as pl
from jax.experimental.pallas import tpu as pltpu


def _round_up(x, m):
    return ((x + m - 1) // m) * m


# ----------------------------- Pallas kernel --------------------------------
def semantic_decoder_kernel(
    ids_ref,       # (Ts*Bp, 1) int32  time-major token ids (stories[:, :-1])
    seqfeat_ref,   # (Bp, 5*in) f32
    sem_ref,       # (Bp, S)    f32
    h0_ref,        # (2, Bp, Hp) f32   initial hidden (context_vector, H padded)
    emb_gi_ref,    # (Vk, 3Hp)  bf16   embed_w @ w_ih0[:E]   (composed on host)
    ft_gi_ref,     # (5*in,3Hp) bf16   ft_w @ w_ih0[:E]
    ftb_gi_ref,    # (1, 3Hp)   f32    ft_b @ w_ih0[:E]
    st_gi_ref,     # (S, 3Hp)   bf16   st_w @ w_ih0[E:]
    base_b_ref,    # (1, 3Hp)   f32    st_b @ w_ih0[E:] + b_ih0 + [b_hh0_rz, 0]
    b0_hn_ref,     # (1, Hp)    f32    b_hh0 n-gate
    whh0_ref,      # (Hp, 3Hp)  bf16
    wih1_ref,      # (Hp, 3Hp)  bf16
    whh1_ref,      # (Hp, 3Hp)  bf16
    b1_gi_ref,     # (1, 3Hp)   f32    b_ih1 + [b_hh1_rz, 0]
    b1_hn_ref,     # (1, Hp)    f32
    outw_ref,      # (Hp, Vp)   bf16
    outb_ref,      # (1, Vp)    f32
    logits_ref,    # (Np, Vp)   f32    packed-row logits
    gi_scr,        # (T*Bp, 3Hp) f32   layer-0 input pre-activations, all steps
    h1_scr,        # (Np, Hp)   f32    packed layer-1 hidden states
    *,
    lengths,       # static tuple, sorted descending
):
    Bp = seqfeat_ref.shape[0]
    Hp = b0_hn_ref.shape[1]
    Vk = emb_gi_ref.shape[0]
    bf16 = jnp.bfloat16
    f32 = jnp.float32

    Tl = max(lengths)
    bs_per_t = [sum(1 for l in lengths if l > t) for t in range(Tl)]

    # ---- layer-0 input pre-activations for ALL timesteps (composed weights) --
    # step 0: transformed image features.
    gi_scr[0:Bp, :] = (
        jnp.dot(seqfeat_ref[...].astype(bf16), ft_gi_ref[...],
                preferred_element_type=f32) + ftb_gi_ref[...])
    # steps 1..T-1: word embeddings via a bf16 one-hot matmul against the
    # composed (Vk, 3Hp) table (K dim is 128-padded).
    ids = ids_ref[...]                                                   # (Ts*Bp, 1)
    iota_v = jax.lax.broadcasted_iota(jnp.int32, (ids.shape[0], Vk), 1)
    one_hot = (ids == iota_v).astype(bf16)                               # (Ts*Bp, Vk)
    gi_scr[Bp:, :] = jnp.dot(one_hot, emb_gi_ref[...],
                             preferred_element_type=f32)

    # Time-invariant semantic contribution + fused biases (computed once).
    base0 = (jnp.dot(sem_ref[...].astype(bf16), st_gi_ref[...],
                     preferred_element_type=f32) + base_b_ref[...])      # (Bp, 3Hp)

    # Hoisted weight/bias loads (don't re-read refs inside the unrolled loop).
    whh0 = whh0_ref[...]
    wih1 = wih1_ref[...]
    whh1 = whh1_ref[...]
    b0_hn = b0_hn_ref[...]
    b1_gi = b1_gi_ref[...]
    b1_hn = b1_hn_ref[...]

    # Packed-row scratch: zero so the (discarded) padded tail rows are defined.
    h1_scr[...] = jnp.zeros_like(h1_scr)

    # ---- 2-layer GRU recurrence (PyTorch gate order r, z, n) -----------------
    h0 = h0_ref[0]                   # (Bp, Hp)
    h1 = h0_ref[1]                   # (Bp, Hp)
    off = 0
    for t in range(Tl):              # T is small & static -> fully unrolled
        gi0 = gi_scr[t * Bp:(t + 1) * Bp, :] + base0                      # (Bp, 3Hp)
        gh0 = jnp.dot(h0.astype(bf16), whh0, preferred_element_type=f32)  # (Bp, 3Hp)
        r0 = jax.nn.sigmoid(gi0[:, 0 * Hp:1 * Hp] + gh0[:, 0 * Hp:1 * Hp])
        z0 = jax.nn.sigmoid(gi0[:, 1 * Hp:2 * Hp] + gh0[:, 1 * Hp:2 * Hp])
        n0 = jnp.tanh(gi0[:, 2 * Hp:3 * Hp] + r0 * (gh0[:, 2 * Hp:3 * Hp] + b0_hn))
        h0 = (1.0 - z0) * n0 + z0 * h0

        gi1 = jnp.dot(h0.astype(bf16), wih1, preferred_element_type=f32) + b1_gi
        gh1 = jnp.dot(h1.astype(bf16), whh1, preferred_element_type=f32)
        r1 = jax.nn.sigmoid(gi1[:, 0 * Hp:1 * Hp] + gh1[:, 0 * Hp:1 * Hp])
        z1 = jax.nn.sigmoid(gi1[:, 1 * Hp:2 * Hp] + gh1[:, 1 * Hp:2 * Hp])
        n1 = jnp.tanh(gi1[:, 2 * Hp:3 * Hp] + r1 * (gh1[:, 2 * Hp:3 * Hp] + b1_hn))
        h1 = (1.0 - z1) * n1 + z1 * h1

        # Store only the valid rows, already in pack_padded_sequence order.
        bs = bs_per_t[t]
        h1_scr[off:off + bs, :] = h1[:bs, :]
        off += bs

    # ---- single batched output projection over packed rows only --------------
    logits_ref[...] = (
        jnp.dot(h1_scr[...].astype(bf16), outw_ref[...],
                preferred_element_type=f32) + outb_ref[...])


# --------------------------- host-side param prep ----------------------------
def prepare_kernel_params(params, Hp, Vp, Vk):
    """Compose projections into layer-0 weights (f32), pad gates to Hp lanes,
    cast matmul weights to bf16."""
    bf = jnp.bfloat16
    f32 = jnp.float32
    H = params["w_hh0"].shape[0]
    E = params["embed_w"].shape[1]
    V = params["out_w"].shape[1]
    hi = jax.lax.Precision.HIGHEST     # compose in true f32

    def pad_gate_cols(w):              # (..., 3H) -> (..., 3Hp), gate-block padded
        pads = [(0, 0)] * (w.ndim - 1) + [(0, Hp - H)]
        return jnp.concatenate(
            [jnp.pad(w[..., k * H:(k + 1) * H], pads) for k in range(3)], axis=-1)

    def pad_rows(w, rows):
        return jnp.pad(w, ((0, rows - w.shape[0]), (0, 0)))

    wih0e = params["w_ih0"][:E]        # token half      (E, 3H)
    wih0s = params["w_ih0"][E:]        # semantic half   (E, 3H)

    emb_gi = jnp.dot(params["embed_w"], wih0e, precision=hi)   # (V, 3H)
    ft_gi = jnp.dot(params["ft_w"], wih0e, precision=hi)       # (5*in, 3H)
    ftb_gi = jnp.dot(params["ft_b"], wih0e, precision=hi)      # (1, 3H)
    st_gi = jnp.dot(params["st_w"], wih0s, precision=hi)       # (S, 3H)
    stb_gi = jnp.dot(params["st_b"], wih0s, precision=hi)      # (1, 3H)

    zeros_h = jnp.zeros((1, H), f32)
    b0_gi = params["b_ih0"] + jnp.concatenate([params["b_hh0"][:, :2 * H], zeros_h], 1)
    b1_gi = params["b_ih1"] + jnp.concatenate([params["b_hh1"][:, :2 * H], zeros_h], 1)

    return dict(
        emb_gi=pad_rows(pad_gate_cols(emb_gi), Vk).astype(bf),
        ft_gi=pad_gate_cols(ft_gi).astype(bf),
        ftb_gi=pad_gate_cols(ftb_gi).astype(f32),
        st_gi=pad_gate_cols(st_gi).astype(bf),
        base_b=pad_gate_cols(stb_gi + b0_gi).astype(f32),
        b0_hn=jnp.pad(params["b_hh0"][:, 2 * H:], ((0, 0), (0, Hp - H))),
        whh0=pad_gate_cols(pad_rows(params["w_hh0"], Hp)).astype(bf),
        wih1=pad_gate_cols(pad_rows(params["w_ih1"], Hp)).astype(bf),
        whh1=pad_gate_cols(pad_rows(params["w_hh1"], Hp)).astype(bf),
        b1_gi=pad_gate_cols(b1_gi).astype(f32),
        b1_hn=jnp.pad(params["b_hh1"][:, 2 * H:], ((0, 0), (0, Hp - H))),
        out_w=jnp.pad(params["out_w"], ((0, Hp - H), (0, Vp - V))).astype(bf),
        out_b=jnp.pad(params["out_b"], ((0, 0), (0, Vp - V))),
    )


# ------------------------------- wrapper -------------------------------------
def semantic_decoder_forward(params, context_vector, sequence_features,
                             semantics, stories, lengths):
    """lengths: static python list, sorted descending (pack_padded_sequence)."""
    B, n_img, in_size = sequence_features.shape
    V, E = params["embed_w"].shape
    H = params["w_hh0"].shape[0]
    Ts = stories.shape[1] - 1
    T = Ts + 1
    lengths = [int(l) for l in lengths]
    assert list(lengths) == sorted(lengths, reverse=True), "lengths must be sorted descending"
    assert max(lengths) <= T, "lengths exceed sequence length"

    Bp = _round_up(B, 8)                 # full sublane utilization
    Hp = _round_up(H, 128)               # lane-dense gate slices
    Vp = _round_up(V, 128)               # lane-dense logits store
    Vk = _round_up(V, 128)               # 128-multiple K dim for one-hot matmul
    N = sum(lengths)
    Np = _round_up(N, 8)
    pad = Bp - B

    kp = prepare_kernel_params(params, Hp, Vp, Vk)

    stories_tm = jnp.pad(stories[:, :-1].astype(jnp.int32),
                         ((0, pad), (0, 0))).T                          # (Ts, Bp)
    ids_flat = stories_tm.reshape(Ts * Bp, 1)                           # time-major
    seqfeat = jnp.pad(sequence_features.reshape(B, n_img * in_size)
                      .astype(jnp.float32), ((0, pad), (0, 0)))         # (Bp, 5*in)
    sem = jnp.pad(semantics.astype(jnp.float32), ((0, pad), (0, 0)))    # (Bp, S)
    h0 = jnp.pad(context_vector.astype(jnp.float32),
                 ((0, 0), (0, pad), (0, Hp - H)))                       # (2, Bp, Hp)

    kernel = functools.partial(semantic_decoder_kernel, lengths=tuple(lengths))

    logits = pl.pallas_call(
        kernel,
        out_shape=jax.ShapeDtypeStruct((Np, Vp), jnp.float32),
        in_specs=[pl.BlockSpec(memory_space=pltpu.MemorySpace.VMEM)] * 17,
        out_specs=pl.BlockSpec(memory_space=pltpu.MemorySpace.VMEM),
        scratch_shapes=[pltpu.VMEM((T * Bp, 3 * Hp), jnp.float32),
                        pltpu.VMEM((Np, Hp), jnp.float32)],
        compiler_params=pltpu.CompilerParams(vmem_limit_bytes=32 * 1024 * 1024),
    )(ids_flat, seqfeat, sem, h0,
      kp["emb_gi"], kp["ft_gi"], kp["ftb_gi"], kp["st_gi"], kp["base_b"],
      kp["b0_hn"], kp["whh0"], kp["wih1"], kp["whh1"], kp["b1_gi"], kp["b1_hn"],
      kp["out_w"], kp["out_b"])

    # Rows are already in pack_padded_sequence order; just drop padding.
    return logits[:N, :V]


# --------------------------- reference (plain JAX) ---------------------------
def reference_forward(params, context_vector, sequence_features,
                      semantics, stories, lengths):
    """Faithful f32 PyTorch semantics."""
    hi = jax.lax.Precision.HIGHEST

    def mm(a, b):
        return jnp.dot(a, b, precision=hi)

    B = stories.shape[0]
    H = params["w_hh0"].shape[0]
    st = stories[:, :-1]
    emb = params["embed_w"][st]                                            # (B, Ts, E)
    feat = mm(sequence_features.reshape(B, -1), params["ft_w"]) + params["ft_b"]
    semv = mm(semantics.astype(jnp.float32), params["st_w"]) + params["st_b"]
    x_tok = jnp.concatenate([feat[:, None, :], emb], axis=1)               # (B, T, E)
    x = jnp.concatenate(
        [x_tok, jnp.broadcast_to(semv[:, None, :], x_tok.shape)], axis=-1)

    def cell(xt, h, wih, whh, bih, bhh):
        gi = mm(xt, wih) + bih
        gh = mm(h, whh) + bhh
        r = jax.nn.sigmoid(gi[:, :H] + gh[:, :H])
        z = jax.nn.sigmoid(gi[:, H:2 * H] + gh[:, H:2 * H])
        n = jnp.tanh(gi[:, 2 * H:] + r * gh[:, 2 * H:])
        return (1.0 - z) * n + z * h

    h0, h1 = context_vector[0], context_vector[1]
    outs = []
    for t in range(x.shape[1]):
        h0 = cell(x[:, t], h0, params["w_ih0"], params["w_hh0"],
                  params["b_ih0"], params["b_hh0"])
        h1 = cell(h0, h1, params["w_ih1"], params["w_hh1"],
                  params["b_ih1"], params["b_hh1"])
        outs.append(mm(h1, params["out_w"]) + params["out_b"])
    rows = []
    for t in range(max(lengths)):
        bs = sum(1 for l in lengths if l > t)
        rows.append(outs[t][:bs])
    return jnp.concatenate(rows, axis=0)


# ----------------------------- parameter init --------------------------------
def init_params(key, vocab_size, embed_size, hidden_size, input_size,
                semantics_size):
    keys = jax.random.split(key, 15)
    s = 0.1
    rnd = lambda k, shape: jax.random.normal(k, shape, jnp.float32) * s
    return dict(
        embed_w=rnd(keys[0], (vocab_size, embed_size)),
        # Linear weights stored transposed (in, out) for y = x @ W^T + b
        ft_w=rnd(keys[1], (input_size * 5, embed_size)),
        ft_b=rnd(keys[2], (1, embed_size)),
        st_w=rnd(keys[3], (semantics_size, embed_size)),
        st_b=rnd(keys[4], (1, embed_size)),
        # GRU layer 0 (input = 2*embed_size), gate order r,z,n
        w_ih0=rnd(keys[5], (2 * embed_size, 3 * hidden_size)),
        w_hh0=rnd(keys[6], (hidden_size, 3 * hidden_size)),
        b_ih0=rnd(keys[7], (1, 3 * hidden_size)),
        b_hh0=rnd(keys[8], (1, 3 * hidden_size)),
        # GRU layer 1 (input = hidden_size)
        w_ih1=rnd(keys[9], (hidden_size, 3 * hidden_size)),
        w_hh1=rnd(keys[10], (hidden_size, 3 * hidden_size)),
        b_ih1=rnd(keys[11], (1, 3 * hidden_size)),
        b_hh1=rnd(keys[12], (1, 3 * hidden_size)),
        out_w=rnd(keys[13], (hidden_size, vocab_size)),
        out_b=rnd(keys[14], (1, vocab_size)),
    )


if __name__ == "__main__":
    # small, module-consistent shapes
    B = 2
    vocab_size = 12
    embed_size = 32
    hidden_size = 32
    num_layers = 2
    input_size = 16          # per-image CNN feature; 5 images -> 5*16 = 80
    semantics_size = 24
    T_story = 8              # tokens per story (before [:, :-1] slice)
    lengths = [8, 6]         # sorted descending, max == (T_story-1)+1

    key = jax.random.PRNGKey(0)
    kp_, k1, k2, k3, k4 = jax.random.split(key, 5)
    params = init_params(kp_, vocab_size, embed_size, hidden_size,
                         input_size, semantics_size)

    context_vector = jax.random.normal(k1, (num_layers, B, hidden_size),
                                       jnp.float32)
    sequence_features = jax.random.normal(k2, (B, 5, input_size), jnp.float32)
    semantics = jax.random.normal(k3, (B, semantics_size), jnp.float32)
    stories = jax.random.randint(k4, (B, T_story), 0, vocab_size, jnp.int32)

    out = semantic_decoder_forward(params, context_vector, sequence_features,
                                   semantics, stories, lengths)
    out = jax.block_until_ready(out)
    assert out.shape == (sum(lengths), vocab_size), out.shape

    # check against the faithful f32 (PyTorch-semantics) reference; the kernel
    # uses bf16 MXU weights with f32 accumulation, hence a modest tolerance.
    ref_f32 = reference_forward(params, context_vector, sequence_features,
                                semantics, stories, lengths)
    assert jnp.allclose(out, ref_f32, rtol=3e-2, atol=3e-2), \
        "mismatch vs f32 reference"

    print("KERNEL_OK")
</pallas_src>

<mosaic_0001>
module attributes {stable_mosaic.version = 11 : i64} {
  func.func @semantic_decoder_kernel(%arg0: memref<56x1xi32, #tpu.memory_space<vmem>>, %arg1: memref<8x80xf32, #tpu.memory_space<vmem>>, %arg2: memref<8x24xf32, #tpu.memory_space<vmem>>, %arg3: memref<2x8x128xf32, #tpu.memory_space<vmem>>, %arg4: memref<128x384xbf16, #tpu.memory_space<vmem>>, %arg5: memref<80x384xbf16, #tpu.memory_space<vmem>>, %arg6: memref<1x384xf32, #tpu.memory_space<vmem>>, %arg7: memref<24x384xbf16, #tpu.memory_space<vmem>>, %arg8: memref<1x384xf32, #tpu.memory_space<vmem>>, %arg9: memref<1x128xf32, #tpu.memory_space<vmem>>, %arg10: memref<128x384xbf16, #tpu.memory_space<vmem>>, %arg11: memref<128x384xbf16, #tpu.memory_space<vmem>>, %arg12: memref<128x384xbf16, #tpu.memory_space<vmem>>, %arg13: memref<1x384xf32, #tpu.memory_space<vmem>>, %arg14: memref<1x128xf32, #tpu.memory_space<vmem>>, %arg15: memref<128x128xbf16, #tpu.memory_space<vmem>>, %arg16: memref<1x128xf32, #tpu.memory_space<vmem>>, %arg17: memref<16x128xf32, #tpu.memory_space<vmem>>, %arg18: memref<64x384xf32, #tpu.memory_space<vmem>>, %arg19: memref<16x128xf32, #tpu.memory_space<vmem>>) attributes {dimension_semantics = [], scalar_prefetch = 0 : i64, scratch_operands = 2 : i64, tpu.core_type = #tpu.core_type<tc>} {
    %c0 = arith.constant 0 : index
    %c0_0 = arith.constant 0 : index
    %0 = vector.load %arg1[%c0, %c0_0] : memref<8x80xf32, #tpu.memory_space<vmem>>, vector<8x80xf32>
    %1 = arith.truncf %0 : vector<8x80xf32> to vector<8x80xbf16>
    %c0_1 = arith.constant 0 : index
    %c0_2 = arith.constant 0 : index
    %2 = vector.load %arg5[%c0_1, %c0_2] : memref<80x384xbf16, #tpu.memory_space<vmem>>, vector<80x384xbf16>
    %cst = arith.constant dense<0.000000e+00> : vector<8x384xf32>
    %3 = tpu.matmul %1, %2, %cst {dimension_numbers = #tpu.dot_dimension_numbers<[1], [0], [0], [1], [0, 0, 1, 1], [], []>} : vector<8x80xbf16>, vector<80x384xbf16>, vector<8x384xf32> -> vector<8x384xf32>
    %c0_3 = arith.constant 0 : index
    %c0_4 = arith.constant 0 : index
    %4 = vector.load %arg6[%c0_3, %c0_4] : memref<1x384xf32, #tpu.memory_space<vmem>>, vector<1x384xf32>
    %5 = vector.broadcast %4 : vector<1x384xf32> to vector<8x384xf32>
    %6 = arith.addf %3, %5 : vector<8x384xf32>
    %c0_5 = arith.constant 0 : index
    %c0_6 = arith.constant 0 : index
    %7 = vector.load %arg18[%c0_5, %c0_6] : memref<64x384xf32, #tpu.memory_space<vmem>>, vector<8x384xf32>
    tpu.vector_store %arg18[%c0_5, %c0_6], %6 {strides = array<i32>} : memref<64x384xf32, #tpu.memory_space<vmem>>, vector<8x384xf32>,
    %c0_7 = arith.constant 0 : index
    %c0_8 = arith.constant 0 : index
    %8 = vector.load %arg0[%c0_7, %c0_8] : memref<56x1xi32, #tpu.memory_space<vmem>>, vector<56x1xi32>
    %9 = tpu.iota {dimensions = array<i32: 1>} : vector<56x128xi32>
    %10 = vector.broadcast %8 : vector<56x1xi32> to vector<56x128xi32>
    %11 = arith.cmpi eq, %10, %9 : vector<56x128xi32>
    %12 = arith.extui %11 : vector<56x128xi1> to vector<56x128xi32>
    %13 = arith.sitofp %12 : vector<56x128xi32> to vector<56x128xf32>
    %14 = arith.truncf %13 : vector<56x128xf32> to vector<56x128xbf16>
    %c0_9 = arith.constant 0 : index
    %c0_10 = arith.constant 0 : index
    %15 = vector.load %arg4[%c0_9, %c0_10] : memref<128x384xbf16, #tpu.memory_space<vmem>>, vector<128x384xbf16>
    %cst_11 = arith.constant dense<0.000000e+00> : vector<56x384xf32>
    %16 = tpu.matmul %14, %15, %cst_11 {dimension_numbers = #tpu.dot_dimension_numbers<[1], [0], [0], [1], [0, 0, 1, 1], [], []>} : vector<56x128xbf16>, vector<128x384xbf16>, vector<56x384xf32> -> vector<56x384xf32>
    %c8 = arith.constant 8 : index
    %c0_12 = arith.constant 0 : index
    %17 = vector.load %arg18[%c8, %c0_12] : memref<64x384xf32, #tpu.memory_space<vmem>>, vector<56x384xf32>
    tpu.vector_store %arg18[%c8, %c0_12], %16 {strides = array<i32>} : memref<64x384xf32, #tpu.memory_space<vmem>>, vector<56x384xf32>,
    %c0_13 = arith.constant 0 : index
    %c0_14 = arith.constant 0 : index
    %18 = vector.load %arg2[%c0_13, %c0_14] : memref<8x24xf32, #tpu.memory_space<vmem>>, vector<8x24xf32>
    %19 = arith.truncf %18 : vector<8x24xf32> to vector<8x24xbf16>
    %c0_15 = arith.constant 0 : index
    %c0_16 = arith.constant 0 : index
    %20 = vector.load %arg7[%c0_15, %c0_16] : memref<24x384xbf16, #tpu.memory_space<vmem>>, vector<24x384xbf16>
    %cst_17 = arith.constant dense<0.000000e+00> : vector<8x384xf32>
    %21 = tpu.matmul %19, %20, %cst_17 {dimension_numbers = #tpu.dot_dimension_numbers<[1], [0], [0], [1], [0, 0, 1, 1], [], []>} : vector<8x24xbf16>, vector<24x384xbf16>, vector<8x384xf32> -> vector<8x384xf32>
    %c0_18 = arith.constant 0 : index
    %c0_19 = arith.constant 0 : index
    %22 = vector.load %arg8[%c0_18, %c0_19] : memref<1x384xf32, #tpu.memory_space<vmem>>, vector<1x384xf32>
    %23 = vector.broadcast %22 : vector<1x384xf32> to vector<8x384xf32>
    %24 = arith.addf %21, %23 : vector<8x384xf32>
    %c0_20 = arith.constant 0 : index
    %c0_21 = arith.constant 0 : index
    %25 = vector.load %arg10[%c0_20, %c0_21] : memref<128x384xbf16, #tpu.memory_space<vmem>>, vector<128x384xbf16>
    %c0_22 = arith.constant 0 : index
    %c0_23 = arith.constant 0 : index
    %26 = vector.load %arg11[%c0_22, %c0_23] : memref<128x384xbf16, #tpu.memory_space<vmem>>, vector<128x384xbf16>
    %c0_24 = arith.constant 0 : index
    %c0_25 = arith.constant 0 : index
    %27 = vector.load %arg12[%c0_24, %c0_25] : memref<128x384xbf16, #tpu.memory_space<vmem>>, vector<128x384xbf16>
    %c0_26 = arith.constant 0 : index
    %c0_27 = arith.constant 0 : index
    %28 = vector.load %arg9[%c0_26, %c0_27] : memref<1x128xf32, #tpu.memory_space<vmem>>, vector<1x128xf32>
    %c0_28 = arith.constant 0 : index
    %c0_29 = arith.constant 0 : index
    %29 = vector.load %arg13[%c0_28, %c0_29] : memref<1x384xf32, #tpu.memory_space<vmem>>, vector<1x384xf32>
    %c0_30 = arith.constant 0 : index
    %c0_31 = arith.constant 0 : index
    %30 = vector.load %arg14[%c0_30, %c0_31] : memref<1x128xf32, #tpu.memory_space<vmem>>, vector<1x128xf32>
    %cst_32 = arith.constant 0.000000e+00 : f32
    %31 = vector.broadcast %cst_32 : f32 to vector<16x128xf32>
    %c0_33 = arith.constant 0 : index
    %c0_34 = arith.constant 0 : index
    %32 = vector.load %arg19[%c0_33, %c0_34] : memref<16x128xf32, #tpu.memory_space<vmem>>, vector<16x128xf32>
    tpu.vector_store %arg19[%c0_33, %c0_34], %31 {strides = array<i32>} : memref<16x128xf32, #tpu.memory_space<vmem>>, vector<16x128xf32>,
    %c0_35 = arith.constant 0 : index
    %c0_36 = arith.constant 0 : index
    %c0_37 = arith.constant 0 : index
    %33 = vector.load %arg3[%c0_35, %c0_36, %c0_37] : memref<2x8x128xf32, #tpu.memory_space<vmem>>, vector<1x8x128xf32>
    %34 = vector.shape_cast %33 : vector<1x8x128xf32> to vector<8x128xf32>
    %c1 = arith.constant 1 : index
    %c0_38 = arith.constant 0 : index
    %c0_39 = arith.constant 0 : index
    %35 = vector.load %arg3[%c1, %c0_38, %c0_39] : memref<2x8x128xf32, #tpu.memory_space<vmem>>, vector<1x8x128xf32>
    %36 = vector.shape_cast %35 : vector<1x8x128xf32> to vector<8x128xf32>
    %c0_40 = arith.constant 0 : index
    %c0_41 = arith.constant 0 : index
    %37 = vector.load %arg18[%c0_40, %c0_41] : memref<64x384xf32, #tpu.memory_space<vmem>>, vector<8x384xf32>
    %38 = arith.addf %37, %24 : vector<8x384xf32>
    %39 = arith.truncf %34 : vector<8x128xf32> to vector<8x128xbf16>
    %cst_42 = arith.constant dense<0.000000e+00> : vector<8x384xf32>
    %40 = tpu.matmul %39, %25, %cst_42 {dimension_numbers = #tpu.dot_dimension_numbers<[1], [0], [0], [1], [0, 0, 1, 1], [], []>} : vector<8x128xbf16>, vector<128x384xbf16>, vector<8x384xf32> -> vector<8x384xf32>
    %41 = vector.extract_strided_slice %38 {offsets = [0, 0], sizes = [8, 128], strides = [1, 1]} : vector<8x384xf32> to vector<8x128xf32>
    %42 = vector.extract_strided_slice %40 {offsets = [0, 0], sizes = [8, 128], strides = [1, 1]} : vector<8x384xf32> to vector<8x128xf32>
    %43 = arith.addf %41, %42 : vector<8x128xf32>
    %44 = arith.negf %43 : vector<8x128xf32>
    %45 = math.exp %44 : vector<8x128xf32>
    %cst_43 = arith.constant 1.000000e+00 : f32
    %46 = vector.broadcast %cst_43 : f32 to vector<8x128xf32>
    %47 = arith.addf %46, %45 : vector<8x128xf32>
    %48 = arith.divf %46, %47 : vector<8x128xf32>
    %49 = vector.extract_strided_slice %38 {offsets = [0, 128], sizes = [8, 128], strides = [1, 1]} : vector<8x384xf32> to vector<8x128xf32>
    %50 = vector.extract_strided_slice %40 {offsets = [0, 128], sizes = [8, 128], strides = [1, 1]} : vector<8x384xf32> to vector<8x128xf32>
    %51 = arith.addf %49, %50 : vector<8x128xf32>
    %52 = arith.negf %51 : vector<8x128xf32>
    %53 = math.exp %52 : vector<8x128xf32>
    %cst_44 = arith.constant 1.000000e+00 : f32
    %54 = vector.broadcast %cst_44 : f32 to vector<8x128xf32>
    %55 = arith.addf %54, %53 : vector<8x128xf32>
    %56 = arith.divf %54, %55 : vector<8x128xf32>
    %57 = vector.extract_strided_slice %38 {offsets = [0, 256], sizes = [8, 128], strides = [1, 1]} : vector<8x384xf32> to vector<8x128xf32>
    %58 = vector.extract_strided_slice %40 {offsets = [0, 256], sizes = [8, 128], strides = [1, 1]} : vector<8x384xf32> to vector<8x128xf32>
    %59 = vector.broadcast %28 : vector<1x128xf32> to vector<8x128xf32>
    %60 = arith.addf %58, %59 : vector<8x128xf32>
    %61 = arith.mulf %48, %60 : vector<8x128xf32>
    %62 = arith.addf %57, %61 : vector<8x128xf32>
    %63 = math.tanh %62 : vector<8x128xf32>
    %cst_45 = arith.constant 1.000000e+00 : f32
    %64 = vector.broadcast %cst_45 : f32 to vector<8x128xf32>
    %65 = arith.subf %64, %56 : vector<8x128xf32>
    %66 = arith.mulf %65, %63 : vector<8x128xf32>
    %67 = arith.mulf %56, %34 : vector<8x128xf32>
    %68 = arith.addf %66, %67 : vector<8x128xf32>
    %69 = arith.truncf %68 : vector<8x128xf32> to vector<8x128xbf16>
    %cst_46 = arith.constant dense<0.000000e+00> : vector<8x384xf32>
    %70 = tpu.matmul %69, %26, %cst_46 {dimension_numbers = #tpu.dot_dimension_numbers<[1], [0], [0], [1], [0, 0, 1, 1], [], []>} : vector<8x128xbf16>, vector<128x384xbf16>, vector<8x384xf32> -> vector<8x384xf32>
    %71 = vector.broadcast %29 : vector<1x384xf32> to vector<8x384xf32>
    %72 = arith.addf %70, %71 : vector<8x384xf32>
    %73 = arith.truncf %36 : vector<8x128xf32> to vector<8x128xbf16>
    %cst_47 = arith.constant dense<0.000000e+00> : vector<8x384xf32>
    %74 = tpu.matmul %73, %27, %cst_47 {dimension_numbers = #tpu.dot_dimension_numbers<[1], [0], [0], [1], [0, 0, 1, 1], [], []>} : vector<8x128xbf16>, vector<128x384xbf16>, vector<8x384xf32> -> vector<8x384xf32>
    %75 = vector.extract_strided_slice %72 {offsets = [0, 0], sizes = [8, 128], strides = [1, 1]} : vector<8x384xf32> to vector<8x128xf32>
    %76 = vector.extract_strided_slice %74 {offsets = [0, 0], sizes = [8, 128], strides = [1, 1]} : vector<8x384xf32> to vector<8x128xf32>
    %77 = arith.addf %75, %76 : vector<8x128xf32>
    %78 = arith.negf %77 : vector<8x128xf32>
    %79 = math.exp %78 : vector<8x128xf32>
    %cst_48 = arith.constant 1.000000e+00 : f32
    %80 = vector.broadcast %cst_48 : f32 to vector<8x128xf32>
    %81 = arith.addf %80, %79 : vector<8x128xf32>
    %82 = arith.divf %80, %81 : vector<8x128xf32>
    %83 = vector.extract_strided_slice %72 {offsets = [0, 128], sizes = [8, 128], strides = [1, 1]} : vector<8x384xf32> to vector<8x128xf32>
    %84 = vector.extract_strided_slice %74 {offsets = [0, 128], sizes = [8, 128], strides = [1, 1]} : vector<8x384xf32> to vector<8x128xf32>
    %85 = arith.addf %83, %84 : vector<8x128xf32>
    %86 = arith.negf %85 : vector<8x128xf32>
    %87 = math.exp %86 : vector<8x128xf32>
    %cst_49 = arith.constant 1.000000e+00 : f32
    %88 = vector.broadcast %cst_49 : f32 to vector<8x128xf32>
    %89 = arith.addf %88, %87 : vector<8x128xf32>
    %90 = arith.divf %88, %89 : vector<8x128xf32>
    %91 = vector.extract_strided_slice %72 {offsets = [0, 256], sizes = [8, 128], strides = [1, 1]} : vector<8x384xf32> to vector<8x128xf32>
    %92 = vector.extract_strided_slice %74 {offsets = [0, 256], sizes = [8, 128], strides = [1, 1]} : vector<8x384xf32> to vector<8x128xf32>
    %93 = vector.broadcast %30 : vector<1x128xf32> to vector<8x128xf32>
    %94 = arith.addf %92, %93 : vector<8x128xf32>
    %95 = arith.mulf %82, %94 : vector<8x128xf32>
    %96 = arith.addf %91, %95 : vector<8x128xf32>
    %97 = math.tanh %96 : vector<8x128xf32>
    %cst_50 = arith.constant 1.000000e+00 : f32
    %98 = vector.broadcast %cst_50 : f32 to vector<8x128xf32>
    %99 = arith.subf %98, %90 : vector<8x128xf32>
    %100 = arith.mulf %99, %97 : vector<8x128xf32>
    %101 = arith.mulf %90, %36 : vector<8x128xf32>
    %102 = arith.addf %100, %101 : vector<8x128xf32>
    %103 = vector.extract_strided_slice %102 {offsets = [0, 0], sizes = [2, 128], strides = [1, 1]} : vector<8x128xf32> to vector<2x128xf32>
    %c0_51 = arith.constant 0 : index
    %c0_52 = arith.constant 0 : index
    %104 = vector.load %arg19[%c0_51, %c0_52] : memref<16x128xf32, #tpu.memory_space<vmem>>, vector<2x128xf32>
    tpu.vector_store %arg19[%c0_51, %c0_52], %103 {strides = array<i32>} : memref<16x128xf32, #tpu.memory_space<vmem>>, vector<2x128xf32>,
    %c8_53 = arith.constant 8 : index
    %c0_54 = arith.constant 0 : index
    %105 = vector.load %arg18[%c8_53, %c0_54] : memref<64x384xf32, #tpu.memory_space<vmem>>, vector<8x384xf32>
    %106 = arith.addf %105, %24 : vector<8x384xf32>
    %107 = arith.truncf %68 : vector<8x128xf32> to vector<8x128xbf16>
    %cst_55 = arith.constant dense<0.000000e+00> : vector<8x384xf32>
    %108 = tpu.matmul %107, %25, %cst_55 {dimension_numbers = #tpu.dot_dimension_numbers<[1], [0], [0], [1], [0, 0, 1, 1], [], []>} : vector<8x128xbf16>, vector<128x384xbf16>, vector<8x384xf32> -> vector<8x384xf32>
    %109 = vector.extract_strided_slice %106 {offsets = [0, 0], sizes = [8, 128], strides = [1, 1]} : vector<8x384xf32> to vector<8x128xf32>
    %110 = vector.extract_strided_slice %108 {offsets = [0, 0], sizes = [8, 128], strides = [1, 1]} : vector<8x384xf32> to vector<8x128xf32>
    %111 = arith.addf %109, %110 : vector<8x128xf32>
    %112 = arith.negf %111 : vector<8x128xf32>
    %113 = math.exp %112 : vector<8x128xf32>
    %cst_56 = arith.constant 1.000000e+00 : f32
    %114 = vector.broadcast %cst_56 : f32 to vector<8x128xf32>
    %115 = arith.addf %114, %113 : vector<8x128xf32>
    %116 = arith.divf %114, %115 : vector<8x128xf32>
    %117 = vector.extract_strided_slice %106 {offsets = [0, 128], sizes = [8, 128], strides = [1, 1]} : vector<8x384xf32> to vector<8x128xf32>
    %118 = vector.extract_strided_slice %108 {offsets = [0, 128], sizes = [8, 128], strides = [1, 1]} : vector<8x384xf32> to vector<8x128xf32>
    %119 = arith.addf %117, %118 : vector<8x128xf32>
    %120 = arith.negf %119 : vector<8x128xf32>
    %121 = math.exp %120 : vector<8x128xf32>
    %cst_57 = arith.constant 1.000000e+00 : f32
    %122 = vector.broadcast %cst_57 : f32 to vector<8x128xf32>
    %123 = arith.addf %122, %121 : vector<8x128xf32>
    %124 = arith.divf %122, %123 : vector<8x128xf32>
    %125 = vector.extract_strided_slice %106 {offsets = [0, 256], sizes = [8, 128], strides = [1, 1]} : vector<8x384xf32> to vector<8x128xf32>
    %126 = vector.extract_strided_slice %108 {offsets = [0, 256], sizes = [8, 128], strides = [1, 1]} : vector<8x384xf32> to vector<8x128xf32>
    %127 = vector.broadcast %28 : vector<1x128xf32> to vector<8x128xf32>
    %128 = arith.addf %126, %127 : vector<8x128xf32>
    %129 = arith.mulf %116, %128 : vector<8x128xf32>
    %130 = arith.addf %125, %129 : vector<8x128xf32>
    %131 = math.tanh %130 : vector<8x128xf32>
    %cst_58 = arith.constant 1.000000e+00 : f32
    %132 = vector.broadcast %cst_58 : f32 to vector<8x128xf32>
    %133 = arith.subf %132, %124 : vector<8x128xf32>
    %134 = arith.mulf %133, %131 : vector<8x128xf32>
    %135 = arith.mulf %124, %68 : vector<8x128xf32>
    %136 = arith.addf %134, %135 : vector<8x128xf32>
    %137 = arith.truncf %136 : vector<8x128xf32> to vector<8x128xbf16>
    %cst_59 = arith.constant dense<0.000000e+00> : vector<8x384xf32>
    %138 = tpu.matmul %137, %26, %cst_59 {dimension_numbers = #tpu.dot_dimension_numbers<[1], [0], [0], [1], [0, 0, 1, 1], [], []>} : vector<8x128xbf16>, vector<128x384xbf16>, vector<8x384xf32> -> vector<8x384xf32>
    %139 = vector.broadcast %29 : vector<1x384xf32> to vector<8x384xf32>
    %140 = arith.addf %138, %139 : vector<8x384xf32>
    %141 = arith.truncf %102 : vector<8x128xf32> to vector<8x128xbf16>
    %cst_60 = arith.constant dense<0.000000e+00> : vector<8x384xf32>
    %142 = tpu.matmul %141, %27, %cst_60 {dimension_numbers = #tpu.dot_dimension_numbers<[1], [0], [0], [1], [0, 0, 1, 1], [], []>} : vector<8x128xbf16>, vector<128x384xbf16>, vector<8x384xf32> -> vector<8x384xf32>
    %143 = vector.extract_strided_slice %140 {offsets = [0, 0], sizes = [8, 128], strides = [1, 1]} : vector<8x384xf32> to vector<8x128xf32>
    %144 = vector.extract_strided_slice %142 {offsets = [0, 0], sizes = [8, 128], strides = [1, 1]} : vector<8x384xf32> to vector<8x128xf32>
    %145 = arith.addf %143, %144 : vector<8x128xf32>
    %146 = arith.negf %145 : vector<8x128xf32>
    %147 = math.exp %146 : vector<8x128xf32>
    %cst_61 = arith.constant 1.000000e+00 : f32
    %148 = vector.broadcast %cst_61 : f32 to vector<8x128xf32>
    %149 = arith.addf %148, %147 : vector<8x128xf32>
    %150 = arith.divf %148, %149 : vector<8x128xf32>
    %151 = vector.extract_strided_slice %140 {offsets = [0, 128], sizes = [8, 128], strides = [1, 1]} : vector<8x384xf32> to vector<8x128xf32>
    %152 = vector.extract_strided_slice %142 {offsets = [0, 128], sizes = [8, 128], strides = [1, 1]} : vector<8x384xf32> to vector<8x128xf32>
    %153 = arith.addf %151, %152 : vector<8x128xf32>
    %154 = arith.negf %153 : vector<8x128xf32>
    %155 = math.exp %154 : vector<8x128xf32>
    %cst_62 = arith.constant 1.000000e+00 : f32
    %156 = vector.broadcast %cst_62 : f32 to vector<8x128xf32>
    %157 = arith.addf %156, %155 : vector<8x128xf32>
    %158 = arith.divf %156, %157 : vector<8x128xf32>
    %159 = vector.extract_strided_slice %140 {offsets = [0, 256], sizes = [8, 128], strides = [1, 1]} : vector<8x384xf32> to vector<8x128xf32>
    %160 = vector.extract_strided_slice %142 {offsets = [0, 256], sizes = [8, 128], strides = [1, 1]} : vector<8x384xf32> to vector<8x128xf32>
    %161 = vector.broadcast %30 : vector<1x128xf32> to vector<8x128xf32>
    %162 = arith.addf %160, %161 : vector<8x128xf32>
    %163 = arith.mulf %150, %162 : vector<8x128xf32>
    %164 = arith.addf %159, %163 : vector<8x128xf32>
    %165 = math.tanh %164 : vector<8x128xf32>
    %cst_63 = arith.constant 1.000000e+00 : f32
    %166 = vector.broadcast %cst_63 : f32 to vector<8x128xf32>
    %167 = arith.subf %166, %158 : vector<8x128xf32>
    %168 = arith.mulf %167, %165 : vector<8x128xf32>
    %169 = arith.mulf %158, %102 : vector<8x128xf32>
    %170 = arith.addf %168, %169 : vector<8x128xf32>
    %171 = vector.extract_strided_slice %170 {offsets = [0, 0], sizes = [2, 128], strides = [1, 1]} : vector<8x128xf32> to vector<2x128xf32>
    %c2 = arith.constant 2 : index
    %c0_64 = arith.constant 0 : index
    %172 = vector.load %arg19[%c2, %c0_64] : memref<16x128xf32, #tpu.memory_space<vmem>>, vector<2x128xf32>
    tpu.vector_store %arg19[%c2, %c0_64], %171 {strides = array<i32>} : memref<16x128xf32, #tpu.memory_space<vmem>>, vector<2x128xf32>,
    %c16 = arith.constant 16 : index
    %c0_65 = arith.constant 0 : index
    %173 = vector.load %arg18[%c16, %c0_65] : memref<64x384xf32, #tpu.memory_space<vmem>>, vector<8x384xf32>
    %174 = arith.addf %173, %24 : vector<8x384xf32>
    %175 = arith.truncf %136 : vector<8x128xf32> to vector<8x128xbf16>
    %cst_66 = arith.constant dense<0.000000e+00> : vector<8x384xf32>
    %176 = tpu.matmul %175, %25, %cst_66 {dimension_numbers = #tpu.dot_dimension_numbers<[1], [0], [0], [1], [0, 0, 1, 1], [], []>} : vector<8x128xbf16>, vector<128x384xbf16>, vector<8x384xf32> -> vector<8x384xf32>
    %177 = vector.extract_strided_slice %174 {offsets = [0, 0], sizes = [8, 128], strides = [1, 1]} : vector<8x384xf32> to vector<8x128xf32>
    %178 = vector.extract_strided_slice %176 {offsets = [0, 0], sizes = [8, 128], strides = [1, 1]} : vector<8x384xf32> to vector<8x128xf32>
    %179 = arith.addf %177, %178 : vector<8x128xf32>
    %180 = arith.negf %179 : vector<8x128xf32>
    %181 = math.exp %180 : vector<8x128xf32>
    %cst_67 = arith.constant 1.000000e+00 : f32
    %182 = vector.broadcast %cst_67 : f32 to vector<8x128xf32>
    %183 = arith.addf %182, %181 : vector<8x128xf32>
    %184 = arith.divf %182, %183 : vector<8x128xf32>
    %185 = vector.extract_strided_slice %174 {offsets = [0, 128], sizes = [8, 128], strides = [1, 1]} : vector<8x384xf32> to vector<8x128xf32>
    %186 = vector.extract_strided_slice %176 {offsets = [0, 128], sizes = [8, 128], strides = [1, 1]} : vector<8x384xf32> to vector<8x128xf32>
    %187 = arith.addf %185, %186 : vector<8x128xf32>
    %188 = arith.negf %187 : vector<8x128xf32>
    %189 = math.exp %188 : vector<8x128xf32>
    %cst_68 = arith.constant 1.000000e+00 : f32
    %190 = vector.broadcast %cst_68 : f32 to vector<8x128xf32>
    %191 = arith.addf %190, %189 : vector<8x128xf32>
    %192 = arith.divf %190, %191 : vector<8x128xf32>
    %193 = vector.extract_strided_slice %174 {offsets = [0, 256], sizes = [8, 128], strides = [1, 1]} : vector<8x384xf32> to vector<8x128xf32>
    %194 = vector.extract_strided_slice %176 {offsets = [0, 256], sizes = [8, 128], strides = [1, 1]} : vector<8x384xf32> to vector<8x128xf32>
    %195 = vector.broadcast %28 : vector<1x128xf32> to vector<8x128xf32>
    %196 = arith.addf %194, %195 : vector<8x128xf32>
    %197 = arith.mulf %184, %196 : vector<8x128xf32>
    %198 = arith.addf %193, %197 : vector<8x128xf32>
    %199 = math.tanh %198 : vector<8x128xf32>
    %cst_69 = arith.constant 1.000000e+00 : f32
    %200 = vector.broadcast %cst_69 : f32 to vector<8x128xf32>
    %201 = arith.subf %200, %192 : vector<8x128xf32>
    %202 = arith.mulf %201, %199 : vector<8x128xf32>
    %203 = arith.mulf %192, %136 : vector<8x128xf32>
    %204 = arith.addf %202, %203 : vector<8x128xf32>
    %205 = arith.truncf %204 : vector<8x128xf32> to vector<8x128xbf16>
    %cst_70 = arith.constant dense<0.000000e+00> : vector<8x384xf32>
    %206 = tpu.matmul %205, %26, %cst_70 {dimension_numbers = #tpu.dot_dimension_numbers<[1], [0], [0], [1], [0, 0, 1, 1], [], []>} : vector<8x128xbf16>, vector<128x384xbf16>, vector<8x384xf32> -> vector<8x384xf32>
    %207 = vector.broadcast %29 : vector<1x384xf32> to vector<8x384xf32>
    %208 = arith.addf %206, %207 : vector<8x384xf32>
    %209 = arith.truncf %170 : vector<8x128xf32> to vector<8x128xbf16>
    %cst_71 = arith.constant dense<0.000000e+00> : vector<8x384xf32>
    %210 = tpu.matmul %209, %27, %cst_71 {dimension_numbers = #tpu.dot_dimension_numbers<[1], [0], [0], [1], [0, 0, 1, 1], [], []>} : vector<8x128xbf16>, vector<128x384xbf16>, vector<8x384xf32> -> vector<8x384xf32>
    %211 = vector.extract_strided_slice %208 {offsets = [0, 0], sizes = [8, 128], strides = [1, 1]} : vector<8x384xf32> to vector<8x128xf32>
    %212 = vector.extract_strided_slice %210 {offsets = [0, 0], sizes = [8, 128], strides = [1, 1]} : vector<8x384xf32> to vector<8x128xf32>
    %213 = arith.addf %211, %212 : vector<8x128xf32>
    %214 = arith.negf %213 : vector<8x128xf32>
    %215 = math.exp %214 : vector<8x128xf32>
    %cst_72 = arith.constant 1.000000e+00 : f32
    %216 = vector.broadcast %cst_72 : f32 to vector<8x128xf32>
    %217 = arith.addf %216, %215 : vector<8x128xf32>
    %218 = arith.divf %216, %217 : vector<8x128xf32>
    %219 = vector.extract_strided_slice %208 {offsets = [0, 128], sizes = [8, 128], strides = [1, 1]} : vector<8x384xf32> to vector<8x128xf32>
    %220 = vector.extract_strided_slice %210 {offsets = [0, 128], sizes = [8, 128], strides = [1, 1]} : vector<8x384xf32> to vector<8x128xf32>
    %221 = arith.addf %219, %220 : vector<8x128xf32>
    %222 = arith.negf %221 : vector<8x128xf32>
    %223 = math.exp %222 : vector<8x128xf32>
    %cst_73 = arith.constant 1.000000e+00 : f32
    %224 = vector.broadcast %cst_73 : f32 to vector<8x128xf32>
    %225 = arith.addf %224, %223 : vector<8x128xf32>
    %226 = arith.divf %224, %225 : vector<8x128xf32>
    %227 = vector.extract_strided_slice %208 {offsets = [0, 256], sizes = [8, 128], strides = [1, 1]} : vector<8x384xf32> to vector<8x128xf32>
    %228 = vector.extract_strided_slice %210 {offsets = [0, 256], sizes = [8, 128], strides = [1, 1]} : vector<8x384xf32> to vector<8x128xf32>
    %229 = vector.broadcast %30 : vector<1x128xf32> to vector<8x128xf32>
    %230 = arith.addf %228, %229 : vector<8x128xf32>
    %231 = arith.mulf %218, %230 : vector<8x128xf32>
    %232 = arith.addf %227, %231 : vector<8x128xf32>
    %233 = math.tanh %232 : vector<8x128xf32>
    %cst_74 = arith.constant 1.000000e+00 : f32
    %234 = vector.broadcast %cst_74 : f32 to vector<8x128xf32>
    %235 = arith.subf %234, %226 : vector<8x128xf32>
    %236 = arith.mulf %235, %233 : vector<8x128xf32>
    %237 = arith.mulf %226, %170 : vector<8x128xf32>
    %238 = arith.addf %236, %237 : vector<8x128xf32>
    %239 = vector.extract_strided_slice %238 {offsets = [0, 0], sizes = [2, 128], strides = [1, 1]} : vector<8x128xf32> to vector<2x128xf32>
    %c4 = arith.constant 4 : index
    %c0_75 = arith.constant 0 : index
    %240 = vector.load %arg19[%c4, %c0_75] : memref<16x128xf32, #tpu.memory_space<vmem>>, vector<2x128xf32>
    tpu.vector_store %arg19[%c4, %c0_75], %239 {strides = array<i32>} : memref<16x128xf32, #tpu.memory_space<vmem>>, vector<2x128xf32>,
    %c24 = arith.constant 24 : index
    %c0_76 = arith.constant 0 : index
    %241 = vector.load %arg18[%c24, %c0_76] : memref<64x384xf32, #tpu.memory_space<vmem>>, vector<8x384xf32>
    %242 = arith.addf %241, %24 : vector<8x384xf32>
    %243 = arith.truncf %204 : vector<8x128xf32> to vector<8x128xbf16>
    %cst_77 = arith.constant dense<0.000000e+00> : vector<8x384xf32>
    %244 = tpu.matmul %243, %25, %cst_77 {dimension_numbers = #tpu.dot_dimension_numbers<[1], [0], [0], [1], [0, 0, 1, 1], [], []>} : vector<8x128xbf16>, vector<128x384xbf16>, vector<8x384xf32> -> vector<8x384xf32>
    %245 = vector.extract_strided_slice %242 {offsets = [0, 0], sizes = [8, 128], strides = [1, 1]} : vector<8x384xf32> to vector<8x128xf32>
    %246 = vector.extract_strided_slice %244 {offsets = [0, 0], sizes = [8, 128], strides = [1, 1]} : vector<8x384xf32> to vector<8x128xf32>
    %247 = arith.addf %245, %246 : vector<8x128xf32>
    %248 = arith.negf %247 : vector<8x128xf32>
    %249 = math.exp %248 : vector<8x128xf32>
    %cst_78 = arith.constant 1.000000e+00 : f32
    %250 = vector.broadcast %cst_78 : f32 to vector<8x128xf32>
    %251 = arith.addf %250, %249 : vector<8x128xf32>
    %252 = arith.divf %250, %251 : vector<8x128xf32>
    %253 = vector.extract_strided_slice %242 {offsets = [0, 128], sizes = [8, 128], strides = [1, 1]} : vector<8x384xf32> to vector<8x128xf32>
    %254 = vector.extract_strided_slice %244 {offsets = [0, 128], sizes = [8, 128], strides = [1, 1]} : vector<8x384xf32> to vector<8x128xf32>
    %255 = arith.addf %253, %254 : vector<8x128xf32>
    %256 = arith.negf %255 : vector<8x128xf32>
    %257 = math.exp %256 : vector<8x128xf32>
    %cst_79 = arith.constant 1.000000e+00 : f32
    %258 = vector.broadcast %cst_79 : f32 to vector<8x128xf32>
    %259 = arith.addf %258, %257 : vector<8x128xf32>
    %260 = arith.divf %258, %259 : vector<8x128xf32>
    %261 = vector.extract_strided_slice %242 {offsets = [0, 256], sizes = [8, 128], strides = [1, 1]} : vector<8x384xf32> to vector<8x128xf32>
    %262 = vector.extract_strided_slice %244 {offsets = [0, 256], sizes = [8, 128], strides = [1, 1]} : vector<8x384xf32> to vector<8x128xf32>
    %263 = vector.broadcast %28 : vector<1x128xf32> to vector<8x128xf32>
    %264 = arith.addf %262, %263 : vector<8x128xf32>
    %265 = arith.mulf %252, %264 : vector<8x128xf32>
    %266 = arith.addf %261, %265 : vector<8x128xf32>
    %267 = math.tanh %266 : vector<8x128xf32>
    %cst_80 = arith.constant 1.000000e+00 : f32
    %268 = vector.broadcast %cst_80 : f32 to vector<8x128xf32>
    %269 = arith.subf %268, %260 : vector<8x128xf32>
    %270 = arith.mulf %269, %267 : vector<8x128xf32>
    %271 = arith.mulf %260, %204 : vector<8x128xf32>
    %272 = arith.addf %270, %271 : vector<8x128xf32>
    %273 = arith.truncf %272 : vector<8x128xf32> to vector<8x128xbf16>
    %cst_81 = arith.constant dense<0.000000e+00> : vector<8x384xf32>
    %274 = tpu.matmul %273, %26, %cst_81 {dimension_numbers = #tpu.dot_dimension_numbers<[1], [0], [0], [1], [0, 0, 1, 1], [], []>} : vector<8x128xbf16>, vector<128x384xbf16>, vector<8x384xf32> -> vector<8x384xf32>
    %275 = vector.broadcast %29 : vector<1x384xf32> to vector<8x384xf32>
    %276 = arith.addf %274, %275 : vector<8x384xf32>
    %277 = arith.truncf %238 : vector<8x128xf32> to vector<8x128xbf16>
    %cst_82 = arith.constant dense<0.000000e+00> : vector<8x384xf32>
    %278 = tpu.matmul %277, %27, %cst_82 {dimension_numbers = #tpu.dot_dimension_numbers<[1], [0], [0], [1], [0, 0, 1, 1], [], []>} : vector<8x128xbf16>, vector<128x384xbf16>, vector<8x384xf32> -> vector<8x384xf32>
    %279 = vector.extract_strided_slice %276 {offsets = [0, 0], sizes = [8, 128], strides = [1, 1]} : vector<8x384xf32> to vector<8x128xf32>
    %280 = vector.extract_strided_slice %278 {offsets = [0, 0], sizes = [8, 128], strides = [1, 1]} : vector<8x384xf32> to vector<8x128xf32>
    %281 = arith.addf %279, %280 : vector<8x128xf32>
    %282 = arith.negf %281 : vector<8x128xf32>
    %283 = math.exp %282 : vector<8x128xf32>
    %cst_83 = arith.constant 1.000000e+00 : f32
    %284 = vector.broadcast %cst_83 : f32 to vector<8x128xf32>
    %285 = arith.addf %284, %283 : vector<8x128xf32>
    %286 = arith.divf %284, %285 : vector<8x128xf32>
    %287 = vector.extract_strided_slice %276 {offsets = [0, 128], sizes = [8, 128], strides = [1, 1]} : vector<8x384xf32> to vector<8x128xf32>
    %288 = vector.extract_strided_slice %278 {offsets = [0, 128], sizes = [8, 128], strides = [1, 1]} : vector<8x384xf32> to vector<8x128xf32>
    %289 = arith.addf %287, %288 : vector<8x128xf32>
    %290 = arith.negf %289 : vector<8x128xf32>
    %291 = math.exp %290 : vector<8x128xf32>
    %cst_84 = arith.constant 1.000000e+00 : f32
    %292 = vector.broadcast %cst_84 : f32 to vector<8x128xf32>
    %293 = arith.addf %292, %291 : vector<8x128xf32>
    %294 = arith.divf %292, %293 : vector<8x128xf32>
    %295 = vector.extract_strided_slice %276 {offsets = [0, 256], sizes = [8, 128], strides = [1, 1]} : vector<8x384xf32> to vector<8x128xf32>
    %296 = vector.extract_strided_slice %278 {offsets = [0, 256], sizes = [8, 128], strides = [1, 1]} : vector<8x384xf32> to vector<8x128xf32>
    %297 = vector.broadcast %30 : vector<1x128xf32> to vector<8x128xf32>
    %298 = arith.addf %296, %297 : vector<8x128xf32>
    %299 = arith.mulf %286, %298 : vector<8x128xf32>
    %300 = arith.addf %295, %299 : vector<8x128xf32>
    %301 = math.tanh %300 : vector<8x128xf32>
    %cst_85 = arith.constant 1.000000e+00 : f32
    %302 = vector.broadcast %cst_85 : f32 to vector<8x128xf32>
    %303 = arith.subf %302, %294 : vector<8x128xf32>
    %304 = arith.mulf %303, %301 : vector<8x128xf32>
    %305 = arith.mulf %294, %238 : vector<8x128xf32>
    %306 = arith.addf %304, %305 : vector<8x128xf32>
    %307 = vector.extract_strided_slice %306 {offsets = [0, 0], sizes = [2, 128], strides = [1, 1]} : vector<8x128xf32> to vector<2x128xf32>
    %c6 = arith.constant 6 : index
    %c0_86 = arith.constant 0 : index
    %308 = vector.load %arg19[%c6, %c0_86] : memref<16x128xf32, #tpu.memory_space<vmem>>, vector<2x128xf32>
    tpu.vector_store %arg19[%c6, %c0_86], %307 {strides = array<i32>} : memref<16x128xf32, #tpu.memory_space<vmem>>, vector<2x128xf32>,
    %c32 = arith.constant 32 : index
    %c0_87 = arith.constant 0 : index
    %309 = vector.load %arg18[%c32, %c0_87] : memref<64x384xf32, #tpu.memory_space<vmem>>, vector<8x384xf32>
    %310 = arith.addf %309, %24 : vector<8x384xf32>
    %311 = arith.truncf %272 : vector<8x128xf32> to vector<8x128xbf16>
    %cst_88 = arith.constant dense<0.000000e+00> : vector<8x384xf32>
    %312 = tpu.matmul %311, %25, %cst_88 {dimension_numbers = #tpu.dot_dimension_numbers<[1], [0], [0], [1], [0, 0, 1, 1], [], []>} : vector<8x128xbf16>, vector<128x384xbf16>, vector<8x384xf32> -> vector<8x384xf32>
    %313 = vector.extract_strided_slice %310 {offsets = [0, 0], sizes = [8, 128], strides = [1, 1]} : vector<8x384xf32> to vector<8x128xf32>
    %314 = vector.extract_strided_slice %312 {offsets = [0, 0], sizes = [8, 128], strides = [1, 1]} : vector<8x384xf32> to vector<8x128xf32>
    %315 = arith.addf %313, %314 : vector<8x128xf32>
    %316 = arith.negf %315 : vector<8x128xf32>
    %317 = math.exp %316 : vector<8x128xf32>
    %cst_89 = arith.constant 1.000000e+00 : f32
    %318 = vector.broadcast %cst_89 : f32 to vector<8x128xf32>
    %319 = arith.addf %318, %317 : vector<8x128xf32>
    %320 = arith.divf %318, %319 : vector<8x128xf32>
    %321 = vector.extract_strided_slice %310 {offsets = [0, 128], sizes = [8, 128], strides = [1, 1]} : vector<8x384xf32> to vector<8x128xf32>
    %322 = vector.extract_strided_slice %312 {offsets = [0, 128], sizes = [8, 128], strides = [1, 1]} : vector<8x384xf32> to vector<8x128xf32>
    %323 = arith.addf %321, %322 : vector<8x128xf32>
    %324 = arith.negf %323 : vector<8x128xf32>
    %325 = math.exp %324 : vector<8x128xf32>
    %cst_90 = arith.constant 1.000000e+00 : f32
    %326 = vector.broadcast %cst_90 : f32 to vector<8x128xf32>
    %327 = arith.addf %326, %325 : vector<8x128xf32>
    %328 = arith.divf %326, %327 : vector<8x128xf32>
    %329 = vector.extract_strided_slice %310 {offsets = [0, 256], sizes = [8, 128], strides = [1, 1]} : vector<8x384xf32> to vector<8x128xf32>
    %330 = vector.extract_strided_slice %312 {offsets = [0, 256], sizes = [8, 128], strides = [1, 1]} : vector<8x384xf32> to vector<8x128xf32>
    %331 = vector.broadcast %28 : vector<1x128xf32> to vector<8x128xf32>
    %332 = arith.addf %330, %331 : vector<8x128xf32>
    %333 = arith.mulf %320, %332 : vector<8x128xf32>
    %334 = arith.addf %329, %333 : vector<8x128xf32>
    %335 = math.tanh %334 : vector<8x128xf32>
    %cst_91 = arith.constant 1.000000e+00 : f32
    %336 = vector.broadcast %cst_91 : f32 to vector<8x128xf32>
    %337 = arith.subf %336, %328 : vector<8x128xf32>
    %338 = arith.mulf %337, %335 : vector<8x128xf32>
    %339 = arith.mulf %328, %272 : vector<8x128xf32>
    %340 = arith.addf %338, %339 : vector<8x128xf32>
    %341 = arith.truncf %340 : vector<8x128xf32> to vector<8x128xbf16>
    %cst_92 = arith.constant dense<0.000000e+00> : vector<8x384xf32>
    %342 = tpu.matmul %341, %26, %cst_92 {dimension_numbers = #tpu.dot_dimension_numbers<[1], [0], [0], [1], [0, 0, 1, 1], [], []>} : vector<8x128xbf16>, vector<128x384xbf16>, vector<8x384xf32> -> vector<8x384xf32>
    %343 = vector.broadcast %29 : vector<1x384xf32> to vector<8x384xf32>
    %344 = arith.addf %342, %343 : vector<8x384xf32>
    %345 = arith.truncf %306 : vector<8x128xf32> to vector<8x128xbf16>
    %cst_93 = arith.constant dense<0.000000e+00> : vector<8x384xf32>
    %346 = tpu.matmul %345, %27, %cst_93 {dimension_numbers = #tpu.dot_dimension_numbers<[1], [0], [0], [1], [0, 0, 1, 1], [], []>} : vector<8x128xbf16>, vector<128x384xbf16>, vector<8x384xf32> -> vector<8x384xf32>
    %347 = vector.extract_strided_slice %344 {offsets = [0, 0], sizes = [8, 128], strides = [1, 1]} : vector<8x384xf32> to vector<8x128xf32>
    %348 = vector.extract_strided_slice %346 {offsets = [0, 0], sizes = [8, 128], strides = [1, 1]} : vector<8x384xf32> to vector<8x128xf32>
    %349 = arith.addf %347, %348 : vector<8x128xf32>
    %350 = arith.negf %349 : vector<8x128xf32>
    %351 = math.exp %350 : vector<8x128xf32>
    %cst_94 = arith.constant 1.000000e+00 : f32
    %352 = vector.broadcast %cst_94 : f32 to vector<8x128xf32>
    %353 = arith.addf %352, %351 : vector<8x128xf32>
    %354 = arith.divf %352, %353 : vector<8x128xf32>
    %355 = vector.extract_strided_slice %344 {offsets = [0, 128], sizes = [8, 128], strides = [1, 1]} : vector<8x384xf32> to vector<8x128xf32>
    %356 = vector.extract_strided_slice %346 {offsets = [0, 128], sizes = [8, 128], strides = [1, 1]} : vector<8x384xf32> to vector<8x128xf32>
    %357 = arith.addf %355, %356 : vector<8x128xf32>
    %358 = arith.negf %357 : vector<8x128xf32>
    %359 = math.exp %358 : vector<8x128xf32>
    %cst_95 = arith.constant 1.000000e+00 : f32
    %360 = vector.broadcast %cst_95 : f32 to vector<8x128xf32>
    %361 = arith.addf %360, %359 : vector<8x128xf32>
    %362 = arith.divf %360, %361 : vector<8x128xf32>
    %363 = vector.extract_strided_slice %344 {offsets = [0, 256], sizes = [8, 128], strides = [1, 1]} : vector<8x384xf32> to vector<8x128xf32>
    %364 = vector.extract_strided_slice %346 {offsets = [0, 256], sizes = [8, 128], strides = [1, 1]} : vector<8x384xf32> to vector<8x128xf32>
    %365 = vector.broadcast %30 : vector<1x128xf32> to vector<8x128xf32>
    %366 = arith.addf %364, %365 : vector<8x128xf32>
    %367 = arith.mulf %354, %366 : vector<8x128xf32>
    %368 = arith.addf %363, %367 : vector<8x128xf32>
    %369 = math.tanh %368 : vector<8x128xf32>
    %cst_96 = arith.constant 1.000000e+00 : f32
    %370 = vector.broadcast %cst_96 : f32 to vector<8x128xf32>
    %371 = arith.subf %370, %362 : vector<8x128xf32>
    %372 = arith.mulf %371, %369 : vector<8x128xf32>
    %373 = arith.mulf %362, %306 : vector<8x128xf32>
    %374 = arith.addf %372, %373 : vector<8x128xf32>
    %375 = vector.extract_strided_slice %374 {offsets = [0, 0], sizes = [2, 128], strides = [1, 1]} : vector<8x128xf32> to vector<2x128xf32>
    %c8_97 = arith.constant 8 : index
    %c0_98 = arith.constant 0 : index
    %376 = vector.load %arg19[%c8_97, %c0_98] : memref<16x128xf32, #tpu.memory_space<vmem>>, vector<2x128xf32>
    tpu.vector_store %arg19[%c8_97, %c0_98], %375 {strides = array<i32>} : memref<16x128xf32, #tpu.memory_space<vmem>>, vector<2x128xf32>,
    %c40 = arith.constant 40 : index
    %c0_99 = arith.constant 0 : index
    %377 = vector.load %arg18[%c40, %c0_99] : memref<64x384xf32, #tpu.memory_space<vmem>>, vector<8x384xf32>
    %378 = arith.addf %377, %24 : vector<8x384xf32>
    %379 = arith.truncf %340 : vector<8x128xf32> to vector<8x128xbf16>
    %cst_100 = arith.constant dense<0.000000e+00> : vector<8x384xf32>
    %380 = tpu.matmul %379, %25, %cst_100 {dimension_numbers = #tpu.dot_dimension_numbers<[1], [0], [0], [1], [0, 0, 1, 1], [], []>} : vector<8x128xbf16>, vector<128x384xbf16>, vector<8x384xf32> -> vector<8x384xf32>
    %381 = vector.extract_strided_slice %378 {offsets = [0, 0], sizes = [8, 128], strides = [1, 1]} : vector<8x384xf32> to vector<8x128xf32>
    %382 = vector.extract_strided_slice %380 {offsets = [0, 0], sizes = [8, 128], strides = [1, 1]} : vector<8x384xf32> to vector<8x128xf32>
    %383 = arith.addf %381, %382 : vector<8x128xf32>
    %384 = arith.negf %383 : vector<8x128xf32>
    %385 = math.exp %384 : vector<8x128xf32>
    %cst_101 = arith.constant 1.000000e+00 : f32
    %386 = vector.broadcast %cst_101 : f32 to vector<8x128xf32>
    %387 = arith.addf %386, %385 : vector<8x128xf32>
    %388 = arith.divf %386, %387 : vector<8x128xf32>
    %389 = vector.extract_strided_slice %378 {offsets = [0, 128], sizes = [8, 128], strides = [1, 1]} : vector<8x384xf32> to vector<8x128xf32>
    %390 = vector.extract_strided_slice %380 {offsets = [0, 128], sizes = [8, 128], strides = [1, 1]} : vector<8x384xf32> to vector<8x128xf32>
    %391 = arith.addf %389, %390 : vector<8x128xf32>
    %392 = arith.negf %391 : vector<8x128xf32>
    %393 = math.exp %392 : vector<8x128xf32>
    %cst_102 = arith.constant 1.000000e+00 : f32
    %394 = vector.broadcast %cst_102 : f32 to vector<8x128xf32>
    %395 = arith.addf %394, %393 : vector<8x128xf32>
    %396 = arith.divf %394, %395 : vector<8x128xf32>
    %397 = vector.extract_strided_slice %378 {offsets = [0, 256], sizes = [8, 128], strides = [1, 1]} : vector<8x384xf32> to vector<8x128xf32>
    %398 = vector.extract_strided_slice %380 {offsets = [0, 256], sizes = [8, 128], strides = [1, 1]} : vector<8x384xf32> to vector<8x128xf32>
    %399 = vector.broadcast %28 : vector<1x128xf32> to vector<8x128xf32>
    %400 = arith.addf %398, %399 : vector<8x128xf32>
    %401 = arith.mulf %388, %400 : vector<8x128xf32>
    %402 = arith.addf %397, %401 : vector<8x128xf32>
    %403 = math.tanh %402 : vector<8x128xf32>
    %cst_103 = arith.constant 1.000000e+00 : f32
    %404 = vector.broadcast %cst_103 : f32 to vector<8x128xf32>
    %405 = arith.subf %404, %396 : vector<8x128xf32>
    %406 = arith.mulf %405, %403 : vector<8x128xf32>
    %407 = arith.mulf %396, %340 : vector<8x128xf32>
    %408 = arith.addf %406, %407 : vector<8x128xf32>
    %409 = arith.truncf %408 : vector<8x128xf32> to vector<8x128xbf16>
    %cst_104 = arith.constant dense<0.000000e+00> : vector<8x384xf32>
    %410 = tpu.matmul %409, %26, %cst_104 {dimension_numbers = #tpu.dot_dimension_numbers<[1], [0], [0], [1], [0, 0, 1, 1], [], []>} : vector<8x128xbf16>, vector<128x384xbf16>, vector<8x384xf32> -> vector<8x384xf32>
    %411 = vector.broadcast %29 : vector<1x384xf32> to vector<8x384xf32>
    %412 = arith.addf %410, %411 : vector<8x384xf32>
    %413 = arith.truncf %374 : vector<8x128xf32> to vector<8x128xbf16>
    %cst_105 = arith.constant dense<0.000000e+00> : vector<8x384xf32>
    %414 = tpu.matmul %413, %27, %cst_105 {dimension_numbers = #tpu.dot_dimension_numbers<[1], [0], [0], [1], [0, 0, 1, 1], [], []>} : vector<8x128xbf16>, vector<128x384xbf16>, vector<8x384xf32> -> vector<8x384xf32>
    %415 = vector.extract_strided_slice %412 {offsets = [0, 0], sizes = [8, 128], strides = [1, 1]} : vector<8x384xf32> to vector<8x128xf32>
    %416 = vector.extract_strided_slice %414 {offsets = [0, 0], sizes = [8, 128], strides = [1, 1]} : vector<8x384xf32> to vector<8x128xf32>
    %417 = arith.addf %415, %416 : vector<8x128xf32>
    %418 = arith.negf %417 : vector<8x128xf32>
    %419 = math.exp %418 : vector<8x128xf32>
    %cst_106 = arith.constant 1.000000e+00 : f32
    %420 = vector.broadcast %cst_106 : f32 to vector<8x128xf32>
    %421 = arith.addf %420, %419 : vector<8x128xf32>
    %422 = arith.divf %420, %421 : vector<8x128xf32>
    %423 = vector.extract_strided_slice %412 {offsets = [0, 128], sizes = [8, 128], strides = [1, 1]} : vector<8x384xf32> to vector<8x128xf32>
    %424 = vector.extract_strided_slice %414 {offsets = [0, 128], sizes = [8, 128], strides = [1, 1]} : vector<8x384xf32> to vector<8x128xf32>
    %425 = arith.addf %423, %424 : vector<8x128xf32>
    %426 = arith.negf %425 : vector<8x128xf32>
    %427 = math.exp %426 : vector<8x128xf32>
    %cst_107 = arith.constant 1.000000e+00 : f32
    %428 = vector.broadcast %cst_107 : f32 to vector<8x128xf32>
    %429 = arith.addf %428, %427 : vector<8x128xf32>
    %430 = arith.divf %428, %429 : vector<8x128xf32>
    %431 = vector.extract_strided_slice %412 {offsets = [0, 256], sizes = [8, 128], strides = [1, 1]} : vector<8x384xf32> to vector<8x128xf32>
    %432 = vector.extract_strided_slice %414 {offsets = [0, 256], sizes = [8, 128], strides = [1, 1]} : vector<8x384xf32> to vector<8x128xf32>
    %433 = vector.broadcast %30 : vector<1x128xf32> to vector<8x128xf32>
    %434 = arith.addf %432, %433 : vector<8x128xf32>
    %435 = arith.mulf %422, %434 : vector<8x128xf32>
    %436 = arith.addf %431, %435 : vector<8x128xf32>
    %437 = math.tanh %436 : vector<8x128xf32>
    %cst_108 = arith.constant 1.000000e+00 : f32
    %438 = vector.broadcast %cst_108 : f32 to vector<8x128xf32>
    %439 = arith.subf %438, %430 : vector<8x128xf32>
    %440 = arith.mulf %439, %437 : vector<8x128xf32>
    %441 = arith.mulf %430, %374 : vector<8x128xf32>
    %442 = arith.addf %440, %441 : vector<8x128xf32>
    %443 = vector.extract_strided_slice %442 {offsets = [0, 0], sizes = [2, 128], strides = [1, 1]} : vector<8x128xf32> to vector<2x128xf32>
    %c10 = arith.constant 10 : index
    %c0_109 = arith.constant 0 : index
    %444 = vector.load %arg19[%c10, %c0_109] : memref<16x128xf32, #tpu.memory_space<vmem>>, vector<2x128xf32>
    tpu.vector_store %arg19[%c10, %c0_109], %443 {strides = array<i32>} : memref<16x128xf32, #tpu.memory_space<vmem>>, vector<2x128xf32>,
    %c48 = arith.constant 48 : index
    %c0_110 = arith.constant 0 : index
    %445 = vector.load %arg18[%c48, %c0_110] : memref<64x384xf32, #tpu.memory_space<vmem>>, vector<8x384xf32>
    %446 = arith.addf %445, %24 : vector<8x384xf32>
    %447 = arith.truncf %408 : vector<8x128xf32> to vector<8x128xbf16>
    %cst_111 = arith.constant dense<0.000000e+00> : vector<8x384xf32>
    %448 = tpu.matmul %447, %25, %cst_111 {dimension_numbers = #tpu.dot_dimension_numbers<[1], [0], [0], [1], [0, 0, 1, 1], [], []>} : vector<8x128xbf16>, vector<128x384xbf16>, vector<8x384xf32> -> vector<8x384xf32>
    %449 = vector.extract_strided_slice %446 {offsets = [0, 0], sizes = [8, 128], strides = [1, 1]} : vector<8x384xf32> to vector<8x128xf32>
    %450 = vector.extract_strided_slice %448 {offsets = [0, 0], sizes = [8, 128], strides = [1, 1]} : vector<8x384xf32> to vector<8x128xf32>
    %451 = arith.addf %449, %450 : vector<8x128xf32>
    %452 = arith.negf %451 : vector<8x128xf32>
    %453 = math.exp %452 : vector<8x128xf32>
    %cst_112 = arith.constant 1.000000e+00 : f32
    %454 = vector.broadcast %cst_112 : f32 to vector<8x128xf32>
    %455 = arith.addf %454, %453 : vector<8x128xf32>
    %456 = arith.divf %454, %455 : vector<8x128xf32>
    %457 = vector.extract_strided_slice %446 {offsets = [0, 128], sizes = [8, 128], strides = [1, 1]} : vector<8x384xf32> to vector<8x128xf32>
    %458 = vector.extract_strided_slice %448 {offsets = [0, 128], sizes = [8, 128], strides = [1, 1]} : vector<8x384xf32> to vector<8x128xf32>
    %459 = arith.addf %457, %458 : vector<8x128xf32>
    %460 = arith.negf %459 : vector<8x128xf32>
    %461 = math.exp %460 : vector<8x128xf32>
    %cst_113 = arith.constant 1.000000e+00 : f32
    %462 = vector.broadcast %cst_113 : f32 to vector<8x128xf32>
    %463 = arith.addf %462, %461 : vector<8x128xf32>
    %464 = arith.divf %462, %463 : vector<8x128xf32>
    %465 = vector.extract_strided_slice %446 {offsets = [0, 256], sizes = [8, 128], strides = [1, 1]} : vector<8x384xf32> to vector<8x128xf32>
    %466 = vector.extract_strided_slice %448 {offsets = [0, 256], sizes = [8, 128], strides = [1, 1]} : vector<8x384xf32> to vector<8x128xf32>
    %467 = vector.broadcast %28 : vector<1x128xf32> to vector<8x128xf32>
    %468 = arith.addf %466, %467 : vector<8x128xf32>
    %469 = arith.mulf %456, %468 : vector<8x128xf32>
    %470 = arith.addf %465, %469 : vector<8x128xf32>
    %471 = math.tanh %470 : vector<8x128xf32>
    %cst_114 = arith.constant 1.000000e+00 : f32
    %472 = vector.broadcast %cst_114 : f32 to vector<8x128xf32>
    %473 = arith.subf %472, %464 : vector<8x128xf32>
    %474 = arith.mulf %473, %471 : vector<8x128xf32>
    %475 = arith.mulf %464, %408 : vector<8x128xf32>
    %476 = arith.addf %474, %475 : vector<8x128xf32>
    %477 = arith.truncf %476 : vector<8x128xf32> to vector<8x128xbf16>
    %cst_115 = arith.constant dense<0.000000e+00> : vector<8x384xf32>
    %478 = tpu.matmul %477, %26, %cst_115 {dimension_numbers = #tpu.dot_dimension_numbers<[1], [0], [0], [1], [0, 0, 1, 1], [], []>} : vector<8x128xbf16>, vector<128x384xbf16>, vector<8x384xf32> -> vector<8x384xf32>
    %479 = vector.broadcast %29 : vector<1x384xf32> to vector<8x384xf32>
    %480 = arith.addf %478, %479 : vector<8x384xf32>
    %481 = arith.truncf %442 : vector<8x128xf32> to vector<8x128xbf16>
    %cst_116 = arith.constant dense<0.000000e+00> : vector<8x384xf32>
    %482 = tpu.matmul %481, %27, %cst_116 {dimension_numbers = #tpu.dot_dimension_numbers<[1], [0], [0], [1], [0, 0, 1, 1], [], []>} : vector<8x128xbf16>, vector<128x384xbf16>, vector<8x384xf32> -> vector<8x384xf32>
    %483 = vector.extract_strided_slice %480 {offsets = [0, 0], sizes = [8, 128], strides = [1, 1]} : vector<8x384xf32> to vector<8x128xf32>
    %484 = vector.extract_strided_slice %482 {offsets = [0, 0], sizes = [8, 128], strides = [1, 1]} : vector<8x384xf32> to vector<8x128xf32>
    %485 = arith.addf %483, %484 : vector<8x128xf32>
    %486 = arith.negf %485 : vector<8x128xf32>
    %487 = math.exp %486 : vector<8x128xf32>
    %cst_117 = arith.constant 1.000000e+00 : f32
    %488 = vector.broadcast %cst_117 : f32 to vector<8x128xf32>
    %489 = arith.addf %488, %487 : vector<8x128xf32>
    %490 = arith.divf %488, %489 : vector<8x128xf32>
    %491 = vector.extract_strided_slice %480 {offsets = [0, 128], sizes = [8, 128], strides = [1, 1]} : vector<8x384xf32> to vector<8x128xf32>
    %492 = vector.extract_strided_slice %482 {offsets = [0, 128], sizes = [8, 128], strides = [1, 1]} : vector<8x384xf32> to vector<8x128xf32>
    %493 = arith.addf %491, %492 : vector<8x128xf32>
    %494 = arith.negf %493 : vector<8x128xf32>
    %495 = math.exp %494 : vector<8x128xf32>
    %cst_118 = arith.constant 1.000000e+00 : f32
    %496 = vector.broadcast %cst_118 : f32 to vector<8x128xf32>
    %497 = arith.addf %496, %495 : vector<8x128xf32>
    %498 = arith.divf %496, %497 : vector<8x128xf32>
    %499 = vector.extract_strided_slice %480 {offsets = [0, 256], sizes = [8, 128], strides = [1, 1]} : vector<8x384xf32> to vector<8x128xf32>
    %500 = vector.extract_strided_slice %482 {offsets = [0, 256], sizes = [8, 128], strides = [1, 1]} : vector<8x384xf32> to vector<8x128xf32>
    %501 = vector.broadcast %30 : vector<1x128xf32> to vector<8x128xf32>
    %502 = arith.addf %500, %501 : vector<8x128xf32>
    %503 = arith.mulf %490, %502 : vector<8x128xf32>
    %504 = arith.addf %499, %503 : vector<8x128xf32>
    %505 = math.tanh %504 : vector<8x128xf32>
    %cst_119 = arith.constant 1.000000e+00 : f32
    %506 = vector.broadcast %cst_119 : f32 to vector<8x128xf32>
    %507 = arith.subf %506, %498 : vector<8x128xf32>
    %508 = arith.mulf %507, %505 : vector<8x128xf32>
    %509 = arith.mulf %498, %442 : vector<8x128xf32>
    %510 = arith.addf %508, %509 : vector<8x128xf32>
    %511 = vector.extract_strided_slice %510 {offsets = [0, 0], sizes = [1, 128], strides = [1, 1]} : vector<8x128xf32> to vector<1x128xf32>
    %c12 = arith.constant 12 : index
    %c0_120 = arith.constant 0 : index
    %512 = vector.load %arg19[%c12, %c0_120] : memref<16x128xf32, #tpu.memory_space<vmem>>, vector<1x128xf32>
    tpu.vector_store %arg19[%c12, %c0_120], %511 {strides = array<i32>} : memref<16x128xf32, #tpu.memory_space<vmem>>, vector<1x128xf32>,
    %c56 = arith.constant 56 : index
    %c0_121 = arith.constant 0 : index
    %513 = vector.load %arg18[%c56, %c0_121] : memref<64x384xf32, #tpu.memory_space<vmem>>, vector<8x384xf32>
    %514 = arith.addf %513, %24 : vector<8x384xf32>
    %515 = arith.truncf %476 : vector<8x128xf32> to vector<8x128xbf16>
    %cst_122 = arith.constant dense<0.000000e+00> : vector<8x384xf32>
    %516 = tpu.matmul %515, %25, %cst_122 {dimension_numbers = #tpu.dot_dimension_numbers<[1], [0], [0], [1], [0, 0, 1, 1], [], []>} : vector<8x128xbf16>, vector<128x384xbf16>, vector<8x384xf32> -> vector<8x384xf32>
    %517 = vector.extract_strided_slice %514 {offsets = [0, 0], sizes = [8, 128], strides = [1, 1]} : vector<8x384xf32> to vector<8x128xf32>
    %518 = vector.extract_strided_slice %516 {offsets = [0, 0], sizes = [8, 128], strides = [1, 1]} : vector<8x384xf32> to vector<8x128xf32>
    %519 = arith.addf %517, %518 : vector<8x128xf32>
    %520 = arith.negf %519 : vector<8x128xf32>
    %521 = math.exp %520 : vector<8x128xf32>
    %cst_123 = arith.constant 1.000000e+00 : f32
    %522 = vector.broadcast %cst_123 : f32 to vector<8x128xf32>
    %523 = arith.addf %522, %521 : vector<8x128xf32>
    %524 = arith.divf %522, %523 : vector<8x128xf32>
    %525 = vector.extract_strided_slice %514 {offsets = [0, 128], sizes = [8, 128], strides = [1, 1]} : vector<8x384xf32> to vector<8x128xf32>
    %526 = vector.extract_strided_slice %516 {offsets = [0, 128], sizes = [8, 128], strides = [1, 1]} : vector<8x384xf32> to vector<8x128xf32>
    %527 = arith.addf %525, %526 : vector<8x128xf32>
    %528 = arith.negf %527 : vector<8x128xf32>
    %529 = math.exp %528 : vector<8x128xf32>
    %cst_124 = arith.constant 1.000000e+00 : f32
    %530 = vector.broadcast %cst_124 : f32 to vector<8x128xf32>
    %531 = arith.addf %530, %529 : vector<8x128xf32>
    %532 = arith.divf %530, %531 : vector<8x128xf32>
    %533 = vector.extract_strided_slice %514 {offsets = [0, 256], sizes = [8, 128], strides = [1, 1]} : vector<8x384xf32> to vector<8x128xf32>
    %534 = vector.extract_strided_slice %516 {offsets = [0, 256], sizes = [8, 128], strides = [1, 1]} : vector<8x384xf32> to vector<8x128xf32>
    %535 = vector.broadcast %28 : vector<1x128xf32> to vector<8x128xf32>
    %536 = arith.addf %534, %535 : vector<8x128xf32>
    %537 = arith.mulf %524, %536 : vector<8x128xf32>
    %538 = arith.addf %533, %537 : vector<8x128xf32>
    %539 = math.tanh %538 : vector<8x128xf32>
    %cst_125 = arith.constant 1.000000e+00 : f32
    %540 = vector.broadcast %cst_125 : f32 to vector<8x128xf32>
    %541 = arith.subf %540, %532 : vector<8x128xf32>
    %542 = arith.mulf %541, %539 : vector<8x128xf32>
    %543 = arith.mulf %532, %476 : vector<8x128xf32>
    %544 = arith.addf %542, %543 : vector<8x128xf32>
    %545 = arith.truncf %544 : vector<8x128xf32> to vector<8x128xbf16>
    %cst_126 = arith.constant dense<0.000000e+00> : vector<8x384xf32>
    %546 = tpu.matmul %545, %26, %cst_126 {dimension_numbers = #tpu.dot_dimension_numbers<[1], [0], [0], [1], [0, 0, 1, 1], [], []>} : vector<8x128xbf16>, vector<128x384xbf16>, vector<8x384xf32> -> vector<8x384xf32>
    %547 = vector.broadcast %29 : vector<1x384xf32> to vector<8x384xf32>
    %548 = arith.addf %546, %547 : vector<8x384xf32>
    %549 = arith.truncf %510 : vector<8x128xf32> to vector<8x128xbf16>
    %cst_127 = arith.constant dense<0.000000e+00> : vector<8x384xf32>
    %550 = tpu.matmul %549, %27, %cst_127 {dimension_numbers = #tpu.dot_dimension_numbers<[1], [0], [0], [1], [0, 0, 1, 1], [], []>} : vector<8x128xbf16>, vector<128x384xbf16>, vector<8x384xf32> -> vector<8x384xf32>
    %551 = vector.extract_strided_slice %548 {offsets = [0, 0], sizes = [8, 128], strides = [1, 1]} : vector<8x384xf32> to vector<8x128xf32>
    %552 = vector.extract_strided_slice %550 {offsets = [0, 0], sizes = [8, 128], strides = [1, 1]} : vector<8x384xf32> to vector<8x128xf32>
    %553 = arith.addf %551, %552 : vector<8x128xf32>
    %554 = arith.negf %553 : vector<8x128xf32>
    %555 = math.exp %554 : vector<8x128xf32>
    %cst_128 = arith.constant 1.000000e+00 : f32
    %556 = vector.broadcast %cst_128 : f32 to vector<8x128xf32>
    %557 = arith.addf %556, %555 : vector<8x128xf32>
    %558 = arith.divf %556, %557 : vector<8x128xf32>
    %559 = vector.extract_strided_slice %548 {offsets = [0, 128], sizes = [8, 128], strides = [1, 1]} : vector<8x384xf32> to vector<8x128xf32>
    %560 = vector.extract_strided_slice %550 {offsets = [0, 128], sizes = [8, 128], strides = [1, 1]} : vector<8x384xf32> to vector<8x128xf32>
    %561 = arith.addf %559, %560 : vector<8x128xf32>
    %562 = arith.negf %561 : vector<8x128xf32>
    %563 = math.exp %562 : vector<8x128xf32>
    %cst_129 = arith.constant 1.000000e+00 : f32
    %564 = vector.broadcast %cst_129 : f32 to vector<8x128xf32>
    %565 = arith.addf %564, %563 : vector<8x128xf32>
    %566 = arith.divf %564, %565 : vector<8x128xf32>
    %567 = vector.extract_strided_slice %548 {offsets = [0, 256], sizes = [8, 128], strides = [1, 1]} : vector<8x384xf32> to vector<8x128xf32>
    %568 = vector.extract_strided_slice %550 {offsets = [0, 256], sizes = [8, 128], strides = [1, 1]} : vector<8x384xf32> to vector<8x128xf32>
    %569 = vector.broadcast %30 : vector<1x128xf32> to vector<8x128xf32>
    %570 = arith.addf %568, %569 : vector<8x128xf32>
    %571 = arith.mulf %558, %570 : vector<8x128xf32>
    %572 = arith.addf %567, %571 : vector<8x128xf32>
    %573 = math.tanh %572 : vector<8x128xf32>
    %cst_130 = arith.constant 1.000000e+00 : f32
    %574 = vector.broadcast %cst_130 : f32 to vector<8x128xf32>
    %575 = arith.subf %574, %566 : vector<8x128xf32>
    %576 = arith.mulf %575, %573 : vector<8x128xf32>
    %577 = arith.mulf %566, %510 : vector<8x128xf32>
    %578 = arith.addf %576, %577 : vector<8x128xf32>
    %579 = vector.extract_strided_slice %578 {offsets = [0, 0], sizes = [1, 128], strides = [1, 1]} : vector<8x128xf32> to vector<1x128xf32>
    %c13 = arith.constant 13 : index
    %c0_131 = arith.constant 0 : index
    %580 = vector.load %arg19[%c13, %c0_131] : memref<16x128xf32, #tpu.memory_space<vmem>>, vector<1x128xf32>
    tpu.vector_store %arg19[%c13, %c0_131], %579 {strides = array<i32>} : memref<16x128xf32, #tpu.memory_space<vmem>>, vector<1x128xf32>,
    %c0_132 = arith.constant 0 : index
    %c0_133 = arith.constant 0 : index
    %581 = vector.load %arg19[%c0_132, %c0_133] : memref<16x128xf32, #tpu.memory_space<vmem>>, vector<16x128xf32>
    %582 = arith.truncf %581 : vector<16x128xf32> to vector<16x128xbf16>
    %c0_134 = arith.constant 0 : index
    %c0_135 = arith.constant 0 : index
    %583 = vector.load %arg15[%c0_134, %c0_135] : memref<128x128xbf16, #tpu.memory_space<vmem>>, vector<128x128xbf16>
    %cst_136 = arith.constant dense<0.000000e+00> : vector<16x128xf32>
    %584 = tpu.matmul %582, %583, %cst_136 {dimension_numbers = #tpu.dot_dimension_numbers<[1], [0], [0], [1], [0, 0, 1, 1], [], []>} : vector<16x128xbf16>, vector<128x128xbf16>, vector<16x128xf32> -> vector<16x128xf32>
    %c0_137 = arith.constant 0 : index
    %c0_138 = arith.constant 0 : index
    %585 = vector.load %arg16[%c0_137, %c0_138] : memref<1x128xf32, #tpu.memory_space<vmem>>, vector<1x128xf32>
    %586 = vector.broadcast %585 : vector<1x128xf32> to vector<16x128xf32>
    %587 = arith.addf %584, %586 : vector<16x128xf32>
    %c0_139 = arith.constant 0 : index
    %c0_140 = arith.constant 0 : index
    %588 = vector.load %arg17[%c0_139, %c0_140] : memref<16x128xf32, #tpu.memory_space<vmem>>, vector<16x128xf32>
    tpu.vector_store %arg17[%c0_139, %c0_140], %587 {strides = array<i32>} : memref<16x128xf32, #tpu.memory_space<vmem>>, vector<16x128xf32>,
    return
  }
}

</mosaic_0001>

<bundles_post_ra>
// kernel: tpu_custom_call.1
= control target key start
LH: loop header
LB: loop body
LE: loop exit
PB: predicated region body
PF: predicated region fallthrough
CT: control target
= control target key end

     0   :  { %s7650_s0 = inlined_call_operand.vmem [shape: s32[56,1], index: 0, kind: input, shape index: {}]   ;;  %s7651_s1 = inlined_call_operand.vmem [shape: f32[8,80], index: 1, kind: input, shape index: {}]   ;;  %s7652_s2 = inlined_call_operand.hbm [shape: f32[8,24], index: 2, kind: input, shape index: {}]   ;;  %s7653_s3 = inlined_call_operand.hbm [shape: f32[2,8,128], index: 3, kind: input, shape index: {}]   ;;  %s7654_s4 = inlined_call_operand.hbm [shape: bf16[128,384], index: 4, kind: input, shape index: {}]   ;;  %s7655_s5 = inlined_call_operand.hbm [shape: bf16[80,384], index: 5, kind: input, shape index: {}]   ;;  %s7656_s6 = inlined_call_operand.vmem [shape: f32[1,384], index: 6, kind: input, shape index: {}]   ;;  %s7657_s7 = inlined_call_operand.vmem [shape: bf16[24,384], index: 7, kind: input, shape index: {}]   ;;  %s7658_s8 = inlined_call_operand.hbm [shape: f32[1,384], index: 8, kind: input, shape index: {}]   ;;  %s7659_s9 = inlined_call_operand.vmem [shape: f32[1,128], index: 9, kind: input, shape index: {}]   ;;  %s7660_s10 = inlined_call_operand.hbm [shape: bf16[128,384], index: 10, kind: input, shape index: {}]   ;;  %s7661_s11 = inlined_call_operand.hbm [shape: bf16[128,384], index: 11, kind: input, shape index: {}]   ;;  %s7662_s12 = inlined_call_operand.hbm [shape: bf16[128,384], index: 12, kind: input, shape index: {}]   ;;  %s7663_s13 = inlined_call_operand.hbm [shape: f32[1,384], index: 13, kind: input, shape index: {}]   ;;  %s7664_s14 = inlined_call_operand.vmem [shape: f32[1,128], index: 14, kind: input, shape index: {}]   ;;  %s7665_s15 = inlined_call_operand.vmem [shape: bf16[128,128], index: 15, kind: input, shape index: {}]   ;;  %s7666_s16 = inlined_call_operand.vmem [shape: f32[1,128], index: 16, kind: input, shape index: {}]   ;;  %s7667_s17 = inlined_call_operand.hbm [shape: f32[16,128], index: 17, kind: output, shape index: {}]  }
   0x1   :  { %7816 = sst [smem:[#allocation86_spill]] %s7650_s0 }
   0x2   :  { %7817 = sst [smem:[#allocation87_spill]] %s7651_s1 }
   0x3   :  { %7818 = sst [smem:[#allocation88_spill]] %s7667_s17 }
   0x4   :  { %22 = vsyncpa [#allocation5], 0 }
   0x5   :  { %23 = vsyncpa [#allocation8], 0 }
   0x6   :  { %24 = vsyncpa [#allocation11], 0 }
   0x7   :  { %25 = vsyncpa [#allocation14], 0 }
   0x8   :  { %26 = vsyncpa [#allocation17], 0 }
   0x9   :  { %27 = vsyncpa [#allocation6], 0  ;;  %s5686_s24 = smov [#allocation7]   ;;  %s5454_s28 = scalar_lea.hbm %s7653_s3, 256 }
   0xa   :  { %s47_s25 = sshll.u32 %s5686_s24, 4  ;;  %p5455_p0 = scmp.ne.s32.totalorder %s7653_s3, %s5454_s28  ;;  %s48_s25 = int_to_ptr.vmem [resolvable:$true] %s47_s25 }
   0xb   :  { %p5458_p1 = scmp.lt.u32.totalorder %s5454_s28, %s7653_s3 }
   0xd   :  { %p5460_p2 = pnand %p5458_p1, %p5455_p0 }
   0xf   :  { %5463 = shalt.err (!%p5460_p2)
}
  0x10   :  { %s5464_s19 = scalar_lea.vmem %s48_s25, 256  ;;  %p5469_p4 = scmp.lt.s32.totalorder %s48_s25, %s48_s25 }
  0x11   :  { %p5465_p3 = scmp.ne.s32.totalorder %s48_s25, %s5464_s19  ;;  %p5470_p5 = scmp.lt.s32.totalorder %s5464_s19, %s5464_s19 }
  0x13   :  { %p5471_p6 = por %p5470_p5, %p5469_p4 }
  0x15   :  { %p5472_p7 = pnand %p5471_p6, %p5465_p3 }
  0x17   :  { %5475 = shalt.err (!%p5472_p7)
}
  0x18   :  { %s5687_s1 = smov 128   ;;  %s5688_s20 = smov 8  }
  0x19   :  { %53 = dma.hbm_to_vmem [thread:$0]  %s7653_s3, 256, %s48_s25, [#allocation8], %s5687_s1, %s5687_s1, %s5688_s20  }
  0x1a   :  { %s5689_s23 = smov [#allocation10]   ;;  %s5690_s26 = smov [#allocation13]  }
  0x1b   :  { %s71_s24 = sshll.u32 %s5689_s23, 4  ;;  %s99_s27 = sshll.u32 %s5690_s26, 4  ;;  %s72_s24 = int_to_ptr.vmem [resolvable:$true] %s71_s24  ;;  %s100_s27 = int_to_ptr.vmem [resolvable:$true] %s99_s27 }
  0x1c   :  { %s5476_s0 = scalar_lea.hbm %s7655_s5, 1920 }
  0x1d   :  { %p5477_p8 = scmp.ne.s32.totalorder %s7655_s5, %s5476_s0  ;;  %p5480_p9 = scmp.lt.u32.totalorder %s5476_s0, %s7655_s5 }
  0x1f   :  { %p5482_p10 = pnand %p5480_p9, %p5477_p8 }
  0x21   :  { %5485 = shalt.err (!%p5482_p10)
}
  0x22   :  { %s5486_s3 = scalar_lea.vmem %s72_s24, 1920  ;;  %p5491_p12 = scmp.lt.s32.totalorder %s72_s24, %s72_s24 }
  0x23   :  { %p5487_p11 = scmp.ne.s32.totalorder %s72_s24, %s5486_s3  ;;  %p5492_p13 = scmp.lt.s32.totalorder %s5486_s3, %s5486_s3 }
  0x25   :  { %p5493_p0 = por %p5492_p13, %p5491_p12 }
  0x27   :  { %p5494_p1 = pnand %p5493_p0, %p5487_p11 }
  0x29   :  { %5497 = shalt.err (!%p5494_p1)
}
  0x2a   :  { %s5691_s25 = smov 192   ;;  %s5692_s21 = smov 12  }
  0x2b   :  { %77 = dma.hbm_to_vmem [thread:$0]  %s7655_s5, 1920, %s72_s24, [#allocation11], %s5691_s25, %s5691_s25, %s5692_s21  }
  0x2c   :  { %s5498_s28 = scalar_lea.hbm %s7660_s10, 3072 }
  0x2d   :  { %p5499_p2 = scmp.ne.s32.totalorder %s7660_s10, %s5498_s28  ;;  %p5502_p3 = scmp.lt.u32.totalorder %s5498_s28, %s7660_s10 }
  0x2f   :  { %p5504_p4 = pnand %p5502_p3, %p5499_p2 }
  0x31   :  { %5507 = shalt.err (!%p5504_p4)
}
  0x32   :  { %s5508_s19 = scalar_lea.vmem %s100_s27, 3072  ;;  %p5513_p6 = scmp.lt.s32.totalorder %s100_s27, %s100_s27 }
  0x33   :  { %p5509_p5 = scmp.ne.s32.totalorder %s100_s27, %s5508_s19  ;;  %p5514_p7 = scmp.lt.s32.totalorder %s5508_s19, %s5508_s19 }
  0x35   :  { %p5515_p8 = por %p5514_p7, %p5513_p6 }
  0x37   :  { %p5516_p9 = pnand %p5515_p8, %p5509_p5 }
  0x39   :  { %5519 = shalt.err (!%p5516_p9)
}
  0x3a   :  { %105 = dma.hbm_to_vmem [thread:$0]  %s7660_s10, 3072, %s100_s27, [#allocation14], %s5691_s25, %s5691_s25, %s5692_s21  }
  0x3b   :  { %s5693_s3 = smov [#allocation16]   ;;  %s5694_s23 = smov [#allocation4]  }
  0x3c   :  { %s123_s22 = sshll.u32 %s5693_s3, 4  ;;  %s38_s17 = sshll.u32 %s5694_s23, 4  ;;  %s124_s22 = int_to_ptr.vmem [resolvable:$true] %s123_s22  ;;  %s39_s17 = int_to_ptr.vmem [resolvable:$true] %s38_s17 }
  0x3d   :  { %s5520_s29 = scalar_lea.hbm %s7662_s12, 3072 }
  0x3e   :  { %p5521_p10 = scmp.ne.s32.totalorder %s7662_s12, %s5520_s29  ;;  %p5524_p11 = scmp.lt.u32.totalorder %s5520_s29, %s7662_s12 }
  0x40   :  { %p5526_p12 = pnand %p5524_p11, %p5521_p10 }
  0x42   :  { %5529 = shalt.err (!%p5526_p12)
}
  0x43   :  { %s5530_s10 = scalar_lea.vmem %s124_s22, 3072  ;;  %p5535_p0 = scmp.lt.s32.totalorder %s124_s22, %s124_s22 }
  0x44   :  { %p5531_p13 = scmp.ne.s32.totalorder %s124_s22, %s5530_s10  ;;  %p5536_p1 = scmp.lt.s32.totalorder %s5530_s10, %s5530_s10 }
  0x46   :  { %p5537_p2 = por %p5536_p1, %p5535_p0 }
  0x48   :  { %p5538_p3 = pnand %p5537_p2, %p5531_p13 }
  0x4a   :  { %5541 = shalt.err (!%p5538_p3)
}
  0x4b   :  { %129 = dma.hbm_to_vmem [thread:$0]  %s7662_s12, 3072, %s124_s22, [#allocation17], %s5691_s25, %s5691_s25, %s5692_s21  }
  0x4c   :  { %s5542_s23 = scalar_lea.hbm %s7652_s2, 128 }
  0x4d   :  { %p5543_p4 = scmp.ne.s32.totalorder %s7652_s2, %s5542_s23  ;;  %p5546_p5 = scmp.lt.u32.totalorder %s5542_s23, %s7652_s2 }
  0x4f   :  { %p5548_p6 = pnand %p5546_p5, %p5543_p4 }
  0x51   :  { %5551 = shalt.err (!%p5548_p6)
}
  0x52   :  { %s5552_s30 = scalar_lea.vmem %s39_s17, 128  ;;  %p5557_p8 = scmp.lt.s32.totalorder %s39_s17, %s39_s17 }
  0x53   :  { %p5553_p7 = scmp.ne.s32.totalorder %s39_s17, %s5552_s30  ;;  %p5558_p9 = scmp.lt.s32.totalorder %s5552_s30, %s5552_s30 }
  0x55   :  { %p5559_p10 = por %p5558_p9, %p5557_p8 }
  0x57   :  { %p5560_p11 = pnand %p5559_p10, %p5553_p7 }
  0x59   :  { %5563 = shalt.err (!%p5560_p11)
}
  0x5a   :  { %41 = dma.hbm_to_vmem [thread:$0]  %s7652_s2, 128, %s39_s17, [#allocation5]  }
  0x5b   :  { %s5695_s18 = smov [#allocation9]   ;;  %s5696_s10 = smov [#allocation12]  }
  0x5c   :  { %s59_s19 = sshll.u32 %s5695_s18, 4  ;;  %s88_s27 = sshll.u32 %s5696_s10, 4  ;;  %s60_s19 = int_to_ptr.vmem [resolvable:$true] %s59_s19  ;;  %s89_s27 = int_to_ptr.vmem [resolvable:$true] %s88_s27 }
  0x5d   :  { %s5564_s3 = scalar_lea.hbm %s7654_s4, 3072 }
  0x5e   :  { %p5565_p12 = scmp.ne.s32.totalorder %s7654_s4, %s5564_s3  ;;  %p5568_p13 = scmp.lt.u32.totalorder %s5564_s3, %s7654_s4 }
  0x60   :  { %p5570_p0 = pnand %p5568_p13, %p5565_p12 }
  0x62   :  { %5573 = shalt.err (!%p5570_p0)
}
  0x63   :  { %s5574_s2 = scalar_lea.vmem %s60_s19, 3072  ;;  %p5579_p2 = scmp.lt.s32.totalorder %s60_s19, %s60_s19 }
  0x64   :  { %p5575_p1 = scmp.ne.s32.totalorder %s60_s19, %s5574_s2  ;;  %p5580_p3 = scmp.lt.s32.totalorder %s5574_s2, %s5574_s2 }
  0x66   :  { %p5581_p4 = por %p5580_p3, %p5579_p2 }
  0x68   :  { %p5582_p5 = pnand %p5581_p4, %p5575_p1 }
  0x6a   :  { %5585 = shalt.err (!%p5582_p5)
}
  0x6b   :  { %65 = dma.hbm_to_vmem [thread:$0]  %s7654_s4, 3072, %s60_s19, [#allocation8], %s5691_s25, %s5691_s25, %s5692_s21  }
  0x6c   :  { %s5586_s22 = scalar_lea.hbm %s7658_s8, 48 }
  0x6d   :  { %p5587_p6 = scmp.ne.s32.totalorder %s7658_s8, %s5586_s22  ;;  %p5590_p7 = scmp.lt.u32.totalorder %s5586_s22, %s7658_s8 }
  0x6f   :  { %p5592_p8 = pnand %p5590_p7, %p5587_p6 }
  0x71   :  { %5595 = shalt.err (!%p5592_p8)
}
  0x72   :  { %s5596_s3 = scalar_lea.vmem %s89_s27, 48  ;;  %s5600_s23 = scalar_lea.vmem %s89_s27, 64 }
  0x73   :  { %p5597_p9 = scmp.ne.s32.totalorder %s89_s27, %s5596_s3  ;;  %p5601_p10 = scmp.lt.s32.totalorder %s89_s27, %s89_s27 }
  0x74   :  { %p5602_p11 = scmp.lt.s32.totalorder %s5600_s23, %s5596_s3 }
  0x76   :  { %p5603_p12 = por %p5602_p11, %p5601_p10 }
  0x78   :  { %p5604_p13 = pnand %p5603_p12, %p5597_p9 }
  0x7a   :  { %5607 = shalt.err (!%p5604_p13)
}
  0x7b   :  { %91 = dma.hbm_to_vmem [thread:$0]  %s7658_s8, 48, %s89_s27, [#allocation11]  }
  0x7c   :  { %s5697_s26 = smov [#allocation15]   ;;  %s5698_s29 = smov [#allocation18]  }
  0x7d   :  { %s111_s28 = sshll.u32 %s5697_s26, 4  ;;  %s136_s2 = sshll.u32 %s5698_s29, 4  ;;  %s112_s28 = int_to_ptr.vmem [resolvable:$true] %s111_s28  ;;  %s137_s2 = int_to_ptr.vmem [resolvable:$true] %s136_s2 }
  0x7e   :  { %s5608_s30 = scalar_lea.hbm %s7661_s11, 3072 }
  0x7f   :  { %p5609_p0 = scmp.ne.s32.totalorder %s7661_s11, %s5608_s30  ;;  %p5612_p1 = scmp.lt.u32.totalorder %s5608_s30, %s7661_s11 }
  0x81   :  { %p5614_p2 = pnand %p5612_p1, %p5609_p0 }
  0x83   :  { %5617 = shalt.err (!%p5614_p2)
}
  0x84   :  { %s5618_s8 = scalar_lea.vmem %s112_s28, 3072  ;;  %p5623_p4 = scmp.lt.s32.totalorder %s112_s28, %s112_s28 }
  0x85   :  { %p5619_p3 = scmp.ne.s32.totalorder %s112_s28, %s5618_s8  ;;  %p5624_p5 = scmp.lt.s32.totalorder %s5618_s8, %s5618_s8 }
  0x87   :  { %p5625_p6 = por %p5624_p5, %p5623_p4 }
  0x89   :  { %p5626_p7 = pnand %p5625_p6, %p5619_p3 }
  0x8b   :  { %5629 = shalt.err (!%p5626_p7)
}
  0x8c   :  { %117 = dma.hbm_to_vmem [thread:$0]  %s7661_s11, 3072, %s112_s28, [#allocation14], %s5691_s25, %s5691_s25, %s5692_s21  }
  0x8d   :  { %s5630_s23 = scalar_lea.hbm %s7663_s13, 48 }
  0x8e   :  { %p5631_p8 = scmp.ne.s32.totalorder %s7663_s13, %s5630_s23  ;;  %p5634_p9 = scmp.lt.u32.totalorder %s5630_s23, %s7663_s13 }
  0x90   :  { %p5636_p10 = pnand %p5634_p9, %p5631_p8 }
  0x92   :  { %5639 = shalt.err (!%p5636_p10)
}
  0x93   :  { %s5640_s17 = scalar_lea.vmem %s137_s2, 48  ;;  %s5644_s0 = scalar_lea.vmem %s137_s2, 64 }
  0x94   :  { %p5641_p11 = scmp.ne.s32.totalorder %s137_s2, %s5640_s17  ;;  %p5645_p12 = scmp.lt.s32.totalorder %s137_s2, %s137_s2 }
  0x95   :  { %p5646_p13 = scmp.lt.s32.totalorder %s5644_s0, %s5640_s17 }
  0x97   :  { %p5647_p0 = por %p5646_p13, %p5645_p12 }
  0x99   :  { %p5648_p1 = pnand %p5647_p0, %p5641_p11 }
  0x9b   :  { %5651 = shalt.err (!%p5648_p1)
}
  0x9c   :  { %139 = dma.hbm_to_vmem [thread:$0]  %s7663_s13, 48, %s137_s2, [#allocation17]  }
  0x9d   :  { %5674 = dma.done.wait [#allocation5], 128  }
  0x9e   :  { %5675 = vsyncadd [#allocation5], 4294967168 }
  0x9f   :  { %5676 = dma.done.wait [#allocation8], 3328  }
  0xa0   :  { %5677 = vsyncadd [#allocation8], 4294963968 }
  0xa1   :  { %5678 = dma.done.wait [#allocation11], 1968  }
  0xa2   :  { %5679 = vsyncadd [#allocation11], 4294965328 }
  0xa3   :  { %5680 = dma.done.wait [#allocation14], 6144  }
  0xa4   :  { %5681 = vsyncadd [#allocation14], 4294961152 }
  0xa5   :  { %5682 = dma.done.wait [#allocation17], 3120  }
  0xa6   :  { %5683 = vsyncadd [#allocation17], 4294964176  ;;  %v7670_v0 = vmov 0   ;;  %v5700_v1 = vmov 0.0   ;;  %vm5701_vm0 = vmmov 0   ;;  %s7819_s28 = sld [smem:[#allocation86_spill]]  ;;  %v7672_v52 = vlaneseq }
  0xa7   :  { %4980 = vset.pattern.permute.xlu1 %v7670_v0  ;;  %4979 = vset.pattern.permute.xlu0 %v7670_v0  ;;  %995 = vst [vmem:[#allocation3] sm:$0xff] %v5700_v1  ;;  %996 = vst [vmem:[#allocation3 + $0x8] sm:$0xff] %v5700_v1  ;;  %v4981_v6 = vld [vmem:[#allocation10 + $0x4] ss:$12 sps:$4 sm:$0xff]   ;;  %v4983_v7 = vld [vmem:[#allocation10] ss:$12 sps:$4 sm:$0xff]  }
  0xa8   :  { %4353 = vmatprep.subr.bf16.mxu1 %v5700_v1  ;;  %329 = vmatprep.mubr.bf16.mxu0 %v7670_v0  ;;  %v4984_v9 = vld [vmem:[#allocation10 + $0x8] ss:$12 sps:$4 sm:$0xff]   ;;  %v4988_v12 = vld [vmem:[#allocation10 + $0x20] ss:$12 sps:$4 sm:$0xff]   ;;  %v4987_v13 = vld [vmem:[#allocation10 + $0x18] ss:$12 sps:$4 sm:$0xff]  }
  0xa9   :  { %4363 = vmatprep.mubr.msk.bf16.mxu1 %vm5701_vm0, %v5700_v1  ;;  %v4985_v11 = vld [vmem:[#allocation10 + $0x1c] ss:$12 sps:$4 sm:$0xff]   ;;  %297 = vmatprep.subr.bf16.mxu0 %v4981_v6  ;;  %v4989_v14 = vld [vmem:[#allocation10 + $0x34] ss:$12 sps:$4 sm:$0xff]   ;;  %v4992_v16 = vld [vmem:[#allocation10 + $0x38] ss:$12 sps:$4 sm:$0xff]  }
  0xaa   :  { %4354 = vmatpush3.bf16.msra.mxu1 %v4984_v9  ;;  %298 = vmatpush1.bf16.msra.mxu0 %v4983_v7  ;;  %v4991_v17 = vld [vmem:[#allocation10 + $0x30] ss:$12 sps:$4 sm:$0xff]   ;;  %v4993_v18 = vld [vmem:[#allocation10 + $0x4c] ss:$12 sps:$4 sm:$0xff]   ;;  %v4995_v20 = vld [vmem:[#allocation10 + $0x48] ss:$12 sps:$4 sm:$0xff]  }
  0xab   :  { %4355 = vmatprep.subr.bf16.mxu1 %v5700_v1  ;;  %299 = vmatprep.subr.bf16.mxu0 %v4985_v11  ;;  %v4996_v19 = vld [vmem:[#allocation10 + $0x50] ss:$12 sps:$4 sm:$0xff]   ;;  %v4999_v22 = vld [vmem:[#allocation10 + $0x60] ss:$12 sps:$4 sm:$0xff]   ;;  %v5000_v23 = vld [vmem:[#allocation10 + $0x68] ss:$12 sps:$4 sm:$0xff]  }
  0xac   :  { %v383_v2 = vld [vmem:[%s7819_s28 + $0x10] sm:$0xff]  ;;  %v381_v3 = vld [vmem:[%s7819_s28] sm:$0xff]  ;;  %v384_v4 = vld [vmem:[%s7819_s28 + $0x18] sm:$0xff]  ;;  %s7820_s26 = sld [smem:[#allocation87_spill]]  ;;  %vm293_vm1 = vcmask 654336   ;;  %v389_v55 = vand.u32 127, %v7672_v52 }
  0xad   :  { %397 = vperm.xlu1 %4980, %v383_v2   ;;  %391 = vperm.xlu0 %4979, %v381_v3   ;;  %v382_v5 = vld [vmem:[%s7819_s28 + $0x8] sm:$0xff]  ;;  %v385_v10 = vld [vmem:[%s7819_s28 + $0x20] sm:$0xff]  ;;  %v387_v15 = vld [vmem:[%s7819_s28 + $0x30] sm:$0xff]  ;;  %v5702_v2 = vmov 1.0|1.0   ;;  %vm805_vm8 = vcmask 1043456  }
  0xae   :  { %v386_v8 = vld [vmem:[%s7819_s28 + $0x28] sm:$0xff]  ;;  %4356 = vmatpush3.bf16.msra.mxu1 %v4988_v12  ;;  %300 = vmatpush1.bf16.msra.mxu0 %v4987_v13  ;;  %v4997_v21 = vld [vmem:[#allocation10 + $0x64] ss:$12 sps:$4 sm:$0xff]   ;;  %v5004_v25 = vld [vmem:[#allocation9 + $0x8] ss:$12 sps:$4 sm:$0xff]   ;;  %vm801_vm14 = vcmask 195584  }
  0xaf   :  { %4357 = vmatprep.subr.bf16.mxu1 %v5700_v1  ;;  %301 = vmatprep.subr.bf16.mxu0 %v4989_v14  ;;  %v5003_v26 = vld [vmem:[#allocation9 + $0x4] ss:$12 sps:$4 sm:$0xff]   ;;  %v5001_v28 = vld [vmem:[#allocation9] ss:$12 sps:$4 sm:$0xff]   ;;  %v5007_v30 = vld [vmem:[#allocation9 + $0x1c] ss:$12 sps:$4 sm:$0xff]  }
  0xb0   :  { %v5008_v29 = vld [vmem:[#allocation9 + $0x20] ss:$12 sps:$4 sm:$0xff]   ;;  %v5005_v31 = vld [vmem:[#allocation9 + $0x18] ss:$12 sps:$4 sm:$0xff]   ;;  %v5009_v34 = vld [vmem:[#allocation9 + $0x30] ss:$12 sps:$4 sm:$0xff]  }
  0xb1   :  { %400 = vperm.xlu1 %4980, %v384_v4   ;;  %394 = vperm.xlu0 %4979, %v382_v5   ;;  %v5012_v32 = vld [vmem:[#allocation9 + $0x38] ss:$12 sps:$4 sm:$0xff]   ;;  %v5011_v33 = vld [vmem:[#allocation9 + $0x34] ss:$12 sps:$4 sm:$0xff]   ;;  %v5016_v35 = vld [vmem:[#allocation9 + $0x50] ss:$12 sps:$4 sm:$0xff]  }
  0xb2   :  { %4358 = vmatpush3.bf16.msra.mxu1 %v4992_v16  ;;  %302 = vmatpush1.bf16.msra.mxu0 %v4991_v17  ;;  %v174_v24 = vld [vmem:[%s7820_s26] sm:$0xff]  ;;  %v5015_v36 = vld [vmem:[#allocation9 + $0x4c] ss:$12 sps:$4 sm:$0xff]   ;;  %v5023_v42 = vld [vmem:[#allocation9 + $0x7c] ss:$12 sps:$4 sm:$0xff]   ;;  %s5703_s18 = smov [#allocation19]  }
  0xb3   :  { %4359 = vmatprep.subr.bf16.mxu1 %v5700_v1  ;;  %303 = vmatprep.subr.bf16.mxu0 %v4993_v18  ;;  %v175_v27 = vpack.c.bf16 %v174_v24, %v174_v24  ;;  %v5013_v37 = vld [vmem:[#allocation9 + $0x48] ss:$12 sps:$4 sm:$0xff]   ;;  %v5019_v39 = vld [vmem:[#allocation9 + $0x64] ss:$12 sps:$4 sm:$0xff]   ;;  %v5017_v40 = vld [vmem:[#allocation9 + $0x60] ss:$12 sps:$4 sm:$0xff]  }
  0xb4   :  { %v5020_v38 = vld [vmem:[#allocation9 + $0x68] ss:$12 sps:$4 sm:$0xff]   ;;  %v5024_v41 = vld [vmem:[#allocation9 + $0x80] ss:$12 sps:$4 sm:$0xff]   ;;  %v5021_v43 = vld [vmem:[#allocation9 + $0x78] ss:$12 sps:$4 sm:$0xff]  }
  0xb5   :  { %406 = vperm.xlu1 %4980, %v386_v8   ;;  %403 = vperm.xlu0 %4979, %v385_v10   ;;  %v5028_v44 = vld [vmem:[#allocation9 + $0x98] ss:$12 sps:$4 sm:$0xff]   ;;  %v5027_v45 = vld [vmem:[#allocation9 + $0x94] ss:$12 sps:$4 sm:$0xff]   ;;  %v5025_v46 = vld [vmem:[#allocation9 + $0x90] ss:$12 sps:$4 sm:$0xff]  }
  0xb6   :  { %4360 = vmatpush3.bf16.msra.mxu1 %v4996_v19  ;;  %304 = vmatpush1.bf16.msra.mxu0 %v4995_v20  ;;  %v5032_v47 = vld [vmem:[#allocation9 + $0xb0] ss:$12 sps:$4 sm:$0xff]   ;;  %v5031_v48 = vld [vmem:[#allocation9 + $0xac] ss:$12 sps:$4 sm:$0xff]   ;;  %v5029_v49 = vld [vmem:[#allocation9 + $0xa8] ss:$12 sps:$4 sm:$0xff]  }
  0xb7   :  { %4361 = vmatprep.subr.bf16.mxu1 %v5700_v1  ;;  %305 = vmatprep.subr.bf16.mxu0 %v4997_v21  ;;  %v5038_v50 = vld [vmem:[%s7657_s7 + $0x4] ss:$12 sps:$4 sm:$0xff]   ;;  %v758_v58 = vld [vmem:[%s7657_s7 + $0x18] sm:$0xff]  ;;  %v5036_v61 = vld [vmem:[%s7657_s7] ss:$12 sps:$4 sm:$0xff]   ;;  %s3903_s10 = sshll.u32 %s5703_s18, 4  ;;  %s3904_s10 = int_to_ptr.vmem [resolvable:$true] %s3903_s10 }
  0xb8   :  { %v5960_v51 = vld [vmem:[#allocation13 + $0x4] ss:$12 sps:$4 sm:$0xff]   ;;  %v5967_v59 = vld [vmem:[#allocation13] ss:$12 sps:$4 sm:$0xff]   ;;  %v5976_v62 = vld [vmem:[#allocation13 + $0x1c] ss:$12 sps:$4 sm:$0xff]   ;;  %v3986_v63 = vcombine.low %v758_v58, %v758_v58  ;;  %v3987_v5 = vcombine.high %v758_v58, %v758_v58  ;;  %p5657_p3 = scmp.lt.s32.totalorder %s3904_s10, %s3904_s10 }
  0xb9   :  { %409 = vperm.xlu0 %4979, %v387_v15   ;;  %v5984_v6 = vld [vmem:[#allocation13 + $0x18] ss:$12 sps:$4 sm:$0xff]   ;;  %v5991_v8 = vld [vmem:[#allocation13 + $0x34] ss:$12 sps:$4 sm:$0xff]   ;;  %v6000_v11 = vld [vmem:[#allocation13 + $0x30] ss:$12 sps:$4 sm:$0xff]  }
  0xba   :  { %4362 = vmatpush3.bf16.msra.mxu1 %v5000_v23  ;;  %306 = vmatpush1.bf16.msra.mxu0 %v4999_v22  ;;  %v807_v9 = vsel %vm805_vm8, %v3986_v63, 0  ;;  %v6007_v13 = vld [vmem:[#allocation13 + $0x4c] ss:$12 sps:$4 sm:$0xff]   ;;  %v6017_v14 = vld [vmem:[#allocation13 + $0x48] ss:$12 sps:$4 sm:$0xff]   ;;  %s5652_s8 = scalar_lea.vmem %s3904_s10, 256 }
  0xbb   :  { %4367 = vmatprep.subr.bf16.mxu1 %v5004_v25  ;;  %596 = vmatprep.subr.bf16.mxu0 %v5003_v26  ;;  %v6021_v15 = vld [vmem:[#allocation13 + $0x64] ss:$12 sps:$4 sm:$0xff]   ;;  %v6025_v17 = vld [vmem:[#allocation13 + $0x60] ss:$12 sps:$4 sm:$0xff]   ;;  %v5053_v19 = vld [vmem:[%s7657_s7 + $0x8] ss:$12 sps:$4 sm:$0xff]   ;;  %p5653_p2 = scmp.ne.s32.totalorder %s3904_s10, %s5652_s8  ;;  %p5658_p4 = scmp.lt.s32.totalorder %s5652_s8, %s5652_s8 }
  0xbc   :  { %v752_v16 = vld [vmem:[#allocation4] sm:$0xff]  ;;  %v6031_v20 = vld [vmem:[#allocation13 + $0x7c] ss:$12 sps:$4 sm:$0xff]   ;;  %v5057_v21 = vld [vmem:[%s7657_s7 + $0x20] ss:$0 sps:$4 sm:$0xff]  }
  0xbd   :  { %4364 = vmatmul.mubr.msk.bf16.vlgmr.msra.gmra.mrb[0].mxu1 %vm293_vm1, %v175_v27  ;;  %3934 = vmatmul.mubr.msk.bf16.vlgmr.msra.gmra.mrb[0].mxu0 %vm293_vm1, %v175_v27  ;;  %v753_v18 = vpack.c.bf16 %v752_v16, %v752_v16  ;;  %v6041_v22 = vld [vmem:[#allocation13 + $0x78] ss:$12 sps:$4 sm:$0xff]   ;;  %v6044_v23 = vld [vmem:[#allocation13 + $0x94] ss:$12 sps:$4 sm:$0xff]   ;;  %v813_v24 = vsel %vm805_vm8, %v5057_v21, 0  ;;  %p5659_p5 = por %p5658_p4, %p5657_p3 }
  0xbe   :  { %4368 = vmatpush3.bf16.msra.mxu1 %v5004_v25  ;;  %597 = vmatpush1.bf16.msra.mxu0 %v5001_v28  ;;  %7827 = vst [vmem:[#allocation26_spill] sm:$0xff] %v6041_v22  ;;  %7828 = vst [vmem:[#allocation27_spill] sm:$0xff] %v6044_v23  ;;  %v6052_v25 = vld [vmem:[#allocation13 + $0x90] ss:$12 sps:$4 sm:$0xff]   ;;  %v6055_v26 = vld [vmem:[#allocation13 + $0x8] ss:$12 sps:$4 sm:$0xff]  }
  0xbf   :  { %4369 = vmatprep.subr.bf16.mxu1 %v5008_v29  ;;  %598 = vmatprep.subr.bf16.mxu0 %v5007_v30  ;;  %7829 = vst [vmem:[#allocation28_spill] sm:$0xff] %v6052_v25  ;;  %v6057_v27 = vld [vmem:[#allocation13 + $0xac] ss:$12 sps:$4 sm:$0xff]   ;;  %v6065_v28 = vld [vmem:[#allocation13 + $0xa8] ss:$12 sps:$4 sm:$0xff]   ;;  %p5660_p6 = pnand %p5659_p5, %p5653_p2 }
  0xc0   :  { %628 = vmatprep.mubr.bf16.mxu0 %v7670_v0  ;;  %7830 = vst [vmem:[#allocation29_spill] sm:$0xff] %v6057_v27  ;;  %7831 = vst [vmem:[#allocation30_spill] sm:$0xff] %v6065_v28  ;;  %v6071_v30 = vld [vmem:[#allocation13 + $0x20] ss:$12 sps:$4 sm:$0xff]   ;;  %v6155_v58 = vld [vmem:[#allocation15 + $0x68] ss:$12 sps:$4 sm:$0xff]  }
  0xc1   :  { %7849 = vst [vmem:[#allocation48_spill] sm:$0xff] %v6155_v58  ;;  %v6157_v60 = vld [vmem:[#allocation15 + $0x7c] ss:$12 sps:$4 sm:$0xff]   ;;  %v6164_v63 = vld [vmem:[#allocation15 + $0x80] ss:$12 sps:$4 sm:$0xff]  }
  0xc2   :  { %4370 = vmatpush3.bf16.msra.mxu1 %v5008_v29  ;;  %599 = vmatpush1.bf16.msra.mxu0 %v5005_v31  ;;  %v6067_v29 = vld [vmem:[#allocation7] sm:$0xff]  ;;  %7850 = vst [vmem:[#allocation49_spill] sm:$0xff] %v6157_v60  ;;  %7852 = vst [vmem:[#allocation51_spill] sm:$0xff] %v6164_v63 }
  0xc3   :  { %4371 = vmatprep.subr.bf16.mxu1 %v5012_v32  ;;  %600 = vmatprep.subr.bf16.mxu0 %v5011_v33  ;;  %v1006_v31 = vpack.c.bf16 %v6067_v29, %v6067_v29  ;;  %v6086_v33 = vld [vmem:[#allocation13 + $0x50] ss:$12 sps:$4 sm:$0xff]   ;;  %v6182_v7 = vld [vmem:[#allocation15 + $0xa8] ss:$12 sps:$4 sm:$0xff]  }
  0xc4   :  { %7857 = vst [vmem:[#allocation56_spill] sm:$0xff] %v6182_v7 }
  0xc6   :  { %4372 = vmatpush3.bf16.msra.mxu1 %v5012_v32  ;;  %601 = vmatpush1.bf16.msra.mxu0 %v5009_v34  ;;  %v6081_v32 = vld [vmem:[#allocation13 + $0x38] ss:$12 sps:$4 sm:$0xff]   ;;  %v6090_v34 = vld [vmem:[#allocation13 + $0x68] ss:$12 sps:$4 sm:$0xff]  }
  0xc7   :  { %4373 = vmatprep.subr.bf16.mxu1 %v5016_v35  ;;  %602 = vmatprep.subr.bf16.mxu0 %v5015_v36  ;;  %v6098_v36 = vld [vmem:[#allocation13 + $0x98] ss:$12 sps:$4 sm:$0xff]  }
  0xc8   :  { %7833 = vst [vmem:[#allocation32_spill] sm:$0xff] %v6098_v36 }
  0xca   :  { %4374 = vmatpush3.bf16.msra.mxu1 %v5016_v35  ;;  %603 = vmatpush1.bf16.msra.mxu0 %v5013_v37  ;;  %v6094_v35 = vld [vmem:[#allocation13 + $0x80] ss:$12 sps:$4 sm:$0xff]   ;;  %v6102_v37 = vld [vmem:[#allocation13 + $0xb0] ss:$12 sps:$4 sm:$0xff]  }
  0xcb   :  { %4375 = vmatprep.subr.bf16.mxu1 %v5020_v38  ;;  %604 = vmatprep.subr.bf16.mxu0 %v5019_v39  ;;  %7832 = vst [vmem:[#allocation31_spill] sm:$0xff] %v6094_v35  ;;  %7834 = vst [vmem:[#allocation33_spill] sm:$0xff] %v6102_v37 }
  0xce   :  { %4376 = vmatpush3.bf16.msra.mxu1 %v5020_v38  ;;  %605 = vmatpush1.bf16.msra.mxu0 %v5017_v40 }
  0xcf   :  { %4377 = vmatprep.subr.bf16.mxu1 %v5024_v41  ;;  %606 = vmatprep.subr.bf16.mxu0 %v5023_v42  ;;  %v6111_v42 = vld [vmem:[#allocation15 + $0x4] ss:$12 sps:$4 sm:$0xff]  }
  0xd0   :  { %7835 = vst [vmem:[#allocation34_spill] sm:$0xff] %v6111_v42 }
  0xd2   :  { %4378 = vmatpush3.bf16.msra.mxu1 %v5024_v41  ;;  %607 = vmatpush1.bf16.msra.mxu0 %v5021_v43  ;;  %v6113_v43 = vld [vmem:[#allocation15] ss:$12 sps:$4 sm:$0xff]  }
  0xd3   :  { %4379 = vmatprep.subr.bf16.mxu1 %v5028_v44  ;;  %608 = vmatprep.subr.bf16.mxu0 %v5027_v45  ;;  %7836 = vst [vmem:[#allocation35_spill] sm:$0xff] %v6113_v43  ;;  %v6120_v45 = vld [vmem:[#allocation15 + $0x1c] ss:$12 sps:$4 sm:$0xff]  }
  0xd4   :  { %7838 = vst [vmem:[#allocation37_spill] sm:$0xff] %v6120_v45 }
  0xd6   :  { %4380 = vmatpush3.bf16.msra.mxu1 %v5028_v44  ;;  %609 = vmatpush1.bf16.msra.mxu0 %v5025_v46  ;;  %v6115_v44 = vld [vmem:[#allocation15 + $0x8] ss:$12 sps:$4 sm:$0xff]   ;;  %v6122_v46 = vld [vmem:[#allocation15 + $0x18] ss:$12 sps:$4 sm:$0xff]  }
  0xd7   :  { %4381 = vmatprep.subr.bf16.mxu1 %v5032_v47  ;;  %610 = vmatprep.subr.bf16.mxu0 %v5031_v48  ;;  %7837 = vst [vmem:[#allocation36_spill] sm:$0xff] %v6115_v44  ;;  %7839 = vst [vmem:[#allocation38_spill] sm:$0xff] %v6122_v46  ;;  %v6130_v48 = vld [vmem:[#allocation15 + $0x34] ss:$12 sps:$4 sm:$0xff]  }
  0xd8   :  { %7841 = vst [vmem:[#allocation40_spill] sm:$0xff] %v6130_v48 }
  0xda   :  { %4382 = vmatpush3.bf16.msra.mxu1 %v5032_v47  ;;  %611 = vmatpush1.bf16.msra.mxu0 %v5029_v49  ;;  %v6124_v47 = vld [vmem:[#allocation15 + $0x20] ss:$12 sps:$4 sm:$0xff]   ;;  %v6133_v49 = vld [vmem:[#allocation15 + $0x30] ss:$12 sps:$4 sm:$0xff]  }
  0xdb   :  { %815 = vmatprep.subr.bf16.mxu1 %v5038_v50  ;;  %1135 = vmatprep.subr.bf16.mxu0 %v5960_v51  ;;  %7840 = vst [vmem:[#allocation39_spill] sm:$0xff] %v6124_v47  ;;  %7842 = vst [vmem:[#allocation41_spill] sm:$0xff] %v6133_v49  ;;  %v6135_v50 = vld [vmem:[#allocation15 + $0x38] ss:$12 sps:$4 sm:$0xff]  }
  0xdc   :  { %7843 = vst [vmem:[#allocation42_spill] sm:$0xff] %v6135_v50 }
 0x12c   :  { %v398_v53 = vpop.permute.xlu1 %397  ;;  %v392_v54 = vpop.permute.xlu0 %391 }
 0x12d   :  { %vm413_vm2 = vcmp.eq.s32.totalorder %v398_v53, %v389_v55  ;;  %vm411_vm5 = vcmp.eq.s32.totalorder %v392_v54, %v389_v55  ;;  %v6140_v53 = vld [vmem:[#allocation15 + $0x4c] ss:$12 sps:$4 sm:$0xff]   ;;  %v6143_v54 = vld [vmem:[#allocation15 + $0x48] ss:$12 sps:$4 sm:$0xff]  }
 0x12e   :  { %7844 = vst [vmem:[#allocation43_spill] sm:$0xff] %v6140_v53  ;;  %7845 = vst [vmem:[#allocation44_spill] sm:$0xff] %v6143_v54 }
 0x130   :  { %v401_v56 = vpop.permute.xlu1 %400  ;;  %v395_v57 = vpop.permute.xlu0 %394 }
 0x131   :  { %vm414_vm3 = vcmp.eq.s32.totalorder %v401_v56, %v389_v55  ;;  %vm412_vm4 = vcmp.eq.s32.totalorder %v395_v57, %v389_v55  ;;  %v6150_v56 = vld [vmem:[#allocation15 + $0x64] ss:$12 sps:$4 sm:$0xff]   ;;  %v6153_v57 = vld [vmem:[#allocation15 + $0x60] ss:$12 sps:$4 sm:$0xff]  }
 0x132   :  { %vm5969_vm6 = vmpackc.low %vm414_vm3, %vm413_vm2  ;;  %7847 = vst [vmem:[#allocation46_spill] sm:$0xff] %v6150_v56 }
 0x133   :  { %vm3967_vm7 = vmpackc.low %vm412_vm4, %vm411_vm5  ;;  %7848 = vst [vmem:[#allocation47_spill] sm:$0xff] %v6153_v57 }
 0x134   :  { %3968 = vmatmul.mubr.msk.bf16.vlgmr.msra.gmra.mrb[4].mxu0 %vm3967_vm7, %v5702_v2  ;;  %4383 = vmatprep.mubr.msk.bf16.mxu1 %vm3967_vm7, %v5702_v2  ;;  %v407_v3 = vpop.permute.xlu1 %406  ;;  %v404_v4 = vpop.permute.xlu0 %403 }
 0x135   :  { %1136 = vmatpush1.bf16.msra.mxu0 %v5967_v59  ;;  %vm416_vm9 = vcmp.eq.s32.totalorder %v407_v3, %v389_v55  ;;  %vm415_vm10 = vcmp.eq.s32.totalorder %v404_v4, %v389_v55  ;;  %4384 = vmatmul.mubr.msk.bf16.vlgmr.msra.gmra.mrb[4].mxu1 %vm5969_vm6, %v5702_v2  ;;  %v6172_v3 = vld [vmem:[#allocation15 + $0x90] ss:$12 sps:$4 sm:$0xff]   ;;  %v6174_v4 = vld [vmem:[#allocation15 + $0x98] ss:$12 sps:$4 sm:$0xff]  }
 0x136   :  { %vm5986_vm11 = vmpackc.low %vm416_vm9, %vm415_vm10  ;;  %816 = vmatpush1.bf16.msra.mxu1 %v5036_v61  ;;  %1137 = vmatprep.subr.bf16.mxu0 %v5976_v62  ;;  %v6162_v61 = vld [vmem:[#allocation15 + $0x78] ss:$12 sps:$4 sm:$0xff]   ;;  %7854 = vst [vmem:[#allocation53_spill] sm:$0xff] %v6172_v3 }
 0x137   :  { %4387 = vmatprep.mubr.msk.bf16.mxu1 %vm5986_vm11, %v5702_v2  ;;  %638 = vmatprep.mubr.bf16.mxu0 %v7670_v0  ;;  %7851 = vst [vmem:[#allocation50_spill] sm:$0xff] %v6162_v61  ;;  %7855 = vst [vmem:[#allocation54_spill] sm:$0xff] %v6174_v4 }
 0x138   :  { %v410_v10 = vpop.permute.xlu0 %409  ;;  %3989 = vmatprep.subr.msk.bf16.mxu1 %vm805_vm8, %v3987_v5  ;;  %v6178_v5 = vld [vmem:[#allocation15 + $0xac] ss:$12 sps:$4 sm:$0xff]  }
 0x139   :  { %1138 = vmatpush1.bf16.msra.mxu0 %v5984_v6  ;;  %vm417_vm12 = vcmp.eq.s32.totalorder %v410_v10, %v389_v55  ;;  %v6145_v55 = vld [vmem:[#allocation15 + $0x50] ss:$12 sps:$4 sm:$0xff]   ;;  %7856 = vst [vmem:[#allocation55_spill] sm:$0xff] %v6178_v5 }
 0x13a   :  { %vm6002_vm13 = vmpackc.low %vm417_vm12, %vm417_vm12  ;;  %1139 = vmatprep.subr.bf16.mxu0 %v5991_v8  ;;  %818 = vmatpush1.bf16.msra.mxu1 %v807_v9  ;;  %7846 = vst [vmem:[#allocation45_spill] sm:$0xff] %v6145_v55  ;;  %v6184_v9 = vld [vmem:[#allocation15 + $0xb0] ss:$12 sps:$4 sm:$0xff]  }
 0x13b   :  { %4391 = vmatprep.subr.bf16.mxu1 %v5700_v1  ;;  %7858 = vst [vmem:[#allocation57_spill] sm:$0xff] %v6184_v9  ;;  %v6188_v10 = vld [vmem:[#allocation16 + $0x4] ss:$12 sps:$4 sm:$0xff]  }
 0x13c   :  { %3970 = vmatmul.mubr.msk.bf16.gmra.mrb[8].mxu0 %vm5969_vm6, %v5702_v2  ;;  %7859 = vst [vmem:[#allocation58_spill] sm:$0xff] %v6188_v10 }
 0x13d   :  { %1140 = vmatpush1.bf16.msra.mxu0 %v6000_v11  ;;  %4388 = vmatmul.mubr.msk.bf16.gmra.mrb[8].mxu1 %vm6002_vm13, %v5702_v2 }
 0x13e   :  { %1141 = vmatprep.subr.bf16.mxu0 %v6007_v13  ;;  %648 = vmatprep.mubr.bf16.mxu0 %v7670_v0 }
 0x13f   :  { %847 = vmatprep.mubr.bf16.mxu1 %v7670_v0 }
 0x141   :  { %1142 = vmatpush1.bf16.msra.mxu0 %v6017_v14 }
 0x142   :  { %1143 = vmatprep.subr.bf16.mxu0 %v6021_v15 }
 0x144   :  { %3972 = vmatmul.mubr.msk.bf16.gmra.mrb[12].mxu0 %vm5986_vm11, %v5702_v2 }
 0x145   :  { %1144 = vmatpush1.bf16.msra.mxu0 %v6025_v17  ;;  %3990 = vmatmul.mubr.msk.bf16.vlgmr.msra.gmra.mrb[12].mxu1 %vm801_vm14, %v753_v18 }
 0x146   :  { %4392 = vmatpush3.bf16.msra.mxu1 %v5053_v19  ;;  %1145 = vmatprep.subr.bf16.mxu0 %v6031_v20 }
 0x147   :  { %4393 = vmatprep.subr.bf16.mxu1 %v5700_v1  ;;  %658 = vmatprep.mubr.bf16.mxu0 %v7670_v0 }
 0x148   :  { %4395 = vmatprep.mubr.msk.bf16.mxu1 %vm5701_vm0, %v5700_v1 }
 0x149   :  { %1146 = vmatpush1.bf16.msra.mxu0 %v6041_v22 }
 0x14a   :  { %4394 = vmatpush3.bf16.msra.mxu1 %v813_v24  ;;  %1147 = vmatprep.subr.bf16.mxu0 %v6044_v23 }
 0x14b   :  { %4399 = vmatprep.subr.bf16.mxu1 %v5700_v1 }
 0x14c   :  { %3974 = vmatmul.mubr.msk.bf16.gmra.mrb[16].mxu0 %vm6002_vm13, %v5702_v2  ;;  %v6168_v2 = vld [vmem:[#allocation15 + $0x94] ss:$12 sps:$4 sm:$0xff]  }
 0x14d   :  { %1148 = vmatpush1.bf16.msra.mxu0 %v6052_v25  ;;  %4396 = vmatmul.mubr.msk.bf16.vlgmr.msra.gmra.mrb[16].mxu1 %vm801_vm14, %v753_v18  ;;  %7853 = vst [vmem:[#allocation52_spill] sm:$0xff] %v6168_v2 }
 0x14e   :  { %4400 = vmatpush3.bf16.msra.mxu1 %v6055_v26  ;;  %1149 = vmatprep.subr.bf16.mxu0 %v6057_v27 }
 0x14f   :  { %4401 = vmatprep.subr.bf16.mxu1 %v5700_v1  ;;  %1167 = vmatprep.mubr.bf16.mxu0 %v7670_v0 }
 0x150   :  { %4415 = vmatprep.mubr.msk.bf16.mxu1 %vm5701_vm0, %v5700_v1 }
 0x151   :  { %1150 = vmatpush1.bf16.msra.mxu0 %v6065_v28 }
 0x152   :  { %4402 = vmatpush3.bf16.msra.mxu1 %v6071_v30  ;;  %1389 = vmatprep.subr.bf16.mxu0 %v6111_v42 }
 0x153   :  { %4403 = vmatprep.subr.bf16.mxu1 %v5700_v1 }
 0x154   :  { %1168 = vmatmul.mubr.bf16.vlgmr.msra.gmra.mrb[0].mxu0 %v1006_v31 }
 0x155   :  { %1421 = vmatprep.mubr.bf16.mxu0 %v7670_v0  ;;  %1390 = vmatpush1.bf16.msra.mxu0 %v6113_v43 }
 0x156   :  { %4404 = vmatpush3.bf16.msra.mxu1 %v6081_v32  ;;  %1391 = vmatprep.subr.bf16.mxu0 %v6120_v45 }
 0x157   :  { %4405 = vmatprep.subr.bf16.mxu1 %v5700_v1 }
 0x159   :  { %1392 = vmatpush1.bf16.msra.mxu0 %v6122_v46 }
 0x15a   :  { %4406 = vmatpush3.bf16.msra.mxu1 %v6086_v33  ;;  %1393 = vmatprep.subr.bf16.mxu0 %v6130_v48 }
 0x15b   :  { %4407 = vmatprep.subr.bf16.mxu1 %v5700_v1 }
 0x15d   :  { %1394 = vmatpush1.bf16.msra.mxu0 %v6133_v49 }
 0x15e   :  { %4408 = vmatpush3.bf16.msra.mxu1 %v6090_v34  ;;  %1395 = vmatprep.subr.bf16.mxu0 %v6140_v53 }
 0x15f   :  { %4409 = vmatprep.subr.bf16.mxu1 %v5700_v1 }
 0x161   :  { %1396 = vmatpush1.bf16.msra.mxu0 %v6143_v54 }
 0x162   :  { %4410 = vmatpush3.bf16.msra.mxu1 %v6094_v35  ;;  %1397 = vmatprep.subr.bf16.mxu0 %v6150_v56 }
 0x163   :  { %4411 = vmatprep.subr.bf16.mxu1 %v5700_v1 }
 0x165   :  { %1398 = vmatpush1.bf16.msra.mxu0 %v6153_v57 }
 0x166   :  { %4412 = vmatpush3.bf16.msra.mxu1 %v6098_v36  ;;  %1399 = vmatprep.subr.bf16.mxu0 %v6157_v60 }
 0x167   :  { %4413 = vmatprep.subr.bf16.mxu1 %v5700_v1 }
 0x169   :  { %1400 = vmatpush1.bf16.msra.mxu0 %v6162_v61 }
 0x16a   :  { %4414 = vmatpush3.bf16.msra.mxu1 %v6102_v37  ;;  %1401 = vmatprep.subr.bf16.mxu0 %v6168_v2 }
 0x16b   :  { %4419 = vmatprep.subr.bf16.mxu1 %v5700_v1 }
 0x16d   :  { %4416 = vmatmul.mubr.bf16.vlgmr.msra.gmra.mrb[20].mxu1 %v1006_v31  ;;  %1402 = vmatpush1.bf16.msra.mxu0 %v6172_v3 }
 0x16e   :  { %4435 = vmatprep.mubr.msk.bf16.mxu1 %vm5701_vm0, %v5700_v1  ;;  %4420 = vmatpush3.bf16.msra.mxu1 %v6115_v44 }
 0x16f   :  { %4421 = vmatprep.subr.bf16.mxu1 %v5700_v1  ;;  %1403 = vmatprep.subr.bf16.mxu0 %v6178_v5 }
 0x171   :  { %1404 = vmatpush1.bf16.msra.mxu0 %v6182_v7 }
 0x172   :  { %4422 = vmatpush3.bf16.msra.mxu1 %v6124_v47  ;;  %1599 = vmatprep.subr.bf16.mxu0 %v6188_v10 }
 0x173   :  { %4423 = vmatprep.subr.bf16.mxu1 %v5700_v1 }
 0x176   :  { %4424 = vmatpush3.bf16.msra.mxu1 %v6135_v50 }
 0x177   :  { %4425 = vmatprep.subr.bf16.mxu1 %v5700_v1 }
 0x17a   :  { %4426 = vmatpush3.bf16.msra.mxu1 %v6145_v55 }
 0x17b   :  { %4427 = vmatprep.subr.bf16.mxu1 %v5700_v1 }
 0x17e   :  { %4428 = vmatpush3.bf16.msra.mxu1 %v6155_v58 }
 0x17f   :  { %4429 = vmatprep.subr.bf16.mxu1 %v5700_v1 }
 0x182   :  { %4430 = vmatpush3.bf16.msra.mxu1 %v6164_v63 }
 0x183   :  { %4431 = vmatprep.subr.bf16.mxu1 %v5700_v1 }
 0x186   :  { %4432 = vmatpush3.bf16.msra.mxu1 %v6174_v4 }
 0x187   :  { %4433 = vmatprep.subr.bf16.mxu1 %v5700_v1 }
 0x18a   :  { %4434 = vmatpush3.bf16.msra.mxu1 %v6184_v9  ;;  %v7868_v9 = vlaneseq }
 0x18b   :  { %4439 = vmatprep.subr.bf16.mxu1 %v5700_v1 }
 0x18c   :  { %v199_v7 = vshrl.u32 %v7868_v9, 7  ;;  %v760_v9 = vld [vmem:[#allocation12] sm:$0x7] }
 0x18e   :  { %v6215_v4 = vsub.s32 2, %v199_v7  ;;  %v6222_v3 = vsub.s32 0, %v199_v7 }
 0x190   :  { %v6109_v38 = vpop.f32.mrb[0].mxu1  ;;  %7871 = vst [vmem:[#allocation69_spill] sm:$0xff] %v6215_v4  ;;  %v773_v63 = vrot.slane %v760_v9, %v6215_v4 }
 0x191   :  { %v4365_v39 = vpop.f32.mrb[1].mxu1 }
 0x192   :  { %v375_v40 = vpop.f32.mrb[2].mxu1 }
 0x193   :  { %v4366_v41 = vpop.f32.mrb[3].mxu1 }
 0x207   :  { %v6194_v12 = vpop.f32.mrb[4].mxu0 }
 0x208   :  { %7860 = vst [vmem:[#allocation59_spill] sm:$0xff] %v6194_v12  ;;  %v6196_v16 = vpop.f32.mrb[5].mxu0  ;;  %v4385_v18 = vpop.f32.mrb[4].mxu1 }
 0x209   :  { %7861 = vst [vmem:[#allocation60_spill] sm:$0xff] %v6196_v16  ;;  %v6198_v19 = vpop.f32.mrb[6].mxu0  ;;  %v701_v21 = vpop.f32.mrb[5].mxu1 }
 0x20a   :  { %7862 = vst [vmem:[#allocation61_spill] sm:$0xff] %v6198_v19  ;;  %v6200_v24 = vpop.f32.mrb[7].mxu0  ;;  %v4386_v31 = vpop.f32.mrb[6].mxu1 }
 0x20b   :  { %7863 = vst [vmem:[#allocation62_spill] sm:$0xff] %v6200_v24  ;;  %v704_v39 = vpop.f32.mrb[7].mxu1 }
 0x20f   :  { %v6202_v40 = vpop.f32.mrb[8].mxu0 }
 0x210   :  { %7864 = vst [vmem:[#allocation63_spill] sm:$0xff] %v6202_v40  ;;  %v6204_v41 = vpop.f32.mrb[9].mxu0  ;;  %v4389_v0 = vpop.f32.mrb[8].mxu1 }
 0x211   :  { %7865 = vst [vmem:[#allocation64_spill] sm:$0xff] %v6204_v41  ;;  %v6206_v52 = vpop.f32.mrb[10].mxu0  ;;  %v717_v1 = vpop.f32.mrb[9].mxu1 }
 0x212   :  { %7866 = vst [vmem:[#allocation65_spill] sm:$0xff] %v6206_v52  ;;  %v6208_v10 = vpop.f32.mrb[11].mxu0  ;;  %v4390_v12 = vpop.f32.mrb[10].mxu1  ;;  %v196_v52 = vld [vmem:[%s7656_s6] sm:$0x7] }
 0x213   :  { %7867 = vst [vmem:[#allocation66_spill] sm:$0xff] %v6208_v10  ;;  %v720_v16 = vpop.f32.mrb[11].mxu1 }
 0x217   :  { %v6211_v19 = vpop.f32.mrb[12].mxu0 }
 0x218   :  { %7869 = vst [vmem:[#allocation67_spill] sm:$0xff] %v6211_v19  ;;  %v6213_v5 = vpop.f32.mrb[13].mxu0  ;;  %v849_v24 = vpop.f32.mrb[12].mxu1  ;;  %v209_v19 = vrot.slane %v196_v52, %v6215_v4 }
 0x219   :  { %7870 = vst [vmem:[#allocation68_spill] sm:$0xff] %v6213_v5  ;;  %v6217_v40 = vpop.f32.mrb[14].mxu0  ;;  %v851_v41 = vpop.f32.mrb[13].mxu1  ;;  %v6227_v5 = vsub.s32 1, %v199_v7 }
 0x21a   :  { %7872 = vst [vmem:[#allocation70_spill] sm:$0xff] %v6217_v40  ;;  %v6224_v12 = vpop.f32.mrb[15].mxu0  ;;  %v853_v10 = vpop.f32.mrb[14].mxu1  ;;  %v765_v40 = vrot.slane %v760_v9, %v6222_v3  ;;  %v373_v60 = vadd.f32 %v6109_v38, %v209_v19 }
 0x21b   :  { %7873 = vst [vmem:[#allocation71_spill] sm:$0xff] %v6224_v12  ;;  %v854_v2 = vpop.f32.mrb[15].mxu1  ;;  %v769_v58 = vrot.slane %v760_v9, %v6227_v5 }
 0x21c   :  { %v6233_v55 = vadd.f32 %v849_v24, %v765_v40  ;;  %v201_v2 = vrot.slane %v196_v52, %v6222_v3 }
 0x21e   :  { %7874 = vst [vmem:[#allocation72_spill] sm:$0xff] %v6233_v55 }
 0x220   :  { %v890_v61 = vpop.f32.mrb[16].mxu1 }
 0x221   :  { %v891_v57 = vadd.f32 %v890_v61, %v773_v63  ;;  %v4397_v56 = vpop.f32.mrb[17].mxu1  ;;  %v6250_v61 = vadd.f32 %v851_v41, %v769_v58  ;;  %v205_v63 = vrot.slane %v196_v52, %v6227_v5  ;;  %v6258_v52 = vld [vmem:[%s7659_s9] ss:$0 sm:$0xff] }
 0x222   :  { %v893_v10 = vpop.f32.mrb[18].mxu1 }
 0x223   :  { %v4398_v12 = vpop.f32.mrb[19].mxu1  ;;  %v1005_v54 = vadd.f32 %v891_v57, %v373_v60  ;;  %v6236_v7 = vadd.f32 %v891_v57, %v701_v21  ;;  %v6238_v53 = vadd.f32 %v891_v57, %v704_v39  ;;  %v6240_v4 = vadd.f32 %v4385_v18, %v891_v57  ;;  %7881 = vst [vmem:[#allocation79_spill] sm:$0xff] %v6250_v61 }
 0x224   :  { %v6242_v50 = vadd.f32 %v4386_v31, %v891_v57  ;;  %v6244_v38 = vadd.f32 %v891_v57, %v717_v1  ;;  %v6246_v19 = vadd.f32 %v891_v57, %v720_v16  ;;  %v6248_v56 = vadd.f32 %v4389_v0, %v891_v57 }
 0x225   :  { %7875 = vst [vmem:[#allocation73_spill] sm:$0xff] %v6238_v53  ;;  %7876 = vst [vmem:[#allocation74_spill] sm:$0xff] %v6240_v4  ;;  %v4899_v60 = vadd.f32 %v6233_v55, %v201_v2  ;;  %v4901_v18 = vadd.f32 %v6250_v61, %v205_v63  ;;  %v6339_v4 = vld [vmem:[#allocation16 + $0xac] ss:$12 sps:$4 sm:$0xff]   ;;  %v6343_v53 = vld [vmem:[#allocation16 + $0xa8] ss:$12 sps:$4 sm:$0xff]  }
 0x226   :  { %7877 = vst [vmem:[#allocation75_spill] sm:$0xff] %v6242_v50  ;;  %7878 = vst [vmem:[#allocation76_spill] sm:$0xff] %v6244_v38  ;;  %v6333_v38 = vld [vmem:[#allocation16 + $0x90] ss:$12 sps:$4 sm:$0xff]   ;;  %v6335_v50 = vld [vmem:[#allocation16 + $0x98] ss:$12 sps:$4 sm:$0xff]  }
 0x227   :  { %7879 = vst [vmem:[#allocation77_spill] sm:$0xff] %v6246_v19  ;;  %7880 = vst [vmem:[#allocation78_spill] sm:$0xff] %v6248_v56  ;;  %v1169_v21 = vpop.f32.mrb[0].mxu0  ;;  %v6325_v56 = vld [vmem:[#allocation16 + $0x80] ss:$12 sps:$4 sm:$0xff]  }
 0x228   :  { %v4900_v24 = vadd.f32 %v4899_v60, %v1169_v21  ;;  %v1171_v39 = vpop.f32.mrb[1].mxu0  ;;  %v6329_v19 = vld [vmem:[#allocation16 + $0x94] ss:$12 sps:$4 sm:$0xff]  }
 0x229   :  { %v1173_v40 = vpop.f32.mrb[2].mxu0  ;;  %v4902_v1 = vadd.f32 %v4901_v18, %v1171_v39  ;;  %7885 = vst [vmem:[#allocation82_spill] sm:$0xff] %v6329_v19 }
 0x22a   :  { %v4016_v31 = vmul.f32 -1.442695, %v4900_v24  ;;  %v1174_v12 = vpop.f32.mrb[3].mxu0 }
 0x22b   :  { %v4017_v16 = vmul.f32 -1.442695, %v4902_v1 }
 0x22c   :  { %5144 = vpow2.f32 %v4016_v31 }
 0x22d   :  { %5146 = vpow2.f32 %v4017_v16 }
 0x236   :  { %v5145_v0 = vpop.eup %5144 }
 0x237   :  { %v1220_v57 = vadd.f32 1.0, %v5145_v0  ;;  %v5147_v58 = vpop.eup %5146  ;;  %v6264_v0 = vld [vmem:[#allocation16] ss:$12 sps:$4 sm:$0xff]  }
 0x238   :  { %v1227_v41 = vadd.f32 1.0, %v5147_v58 }
 0x239   :  { %5148 = vrcp.f32 %v1220_v57  ;;  %v6266_v57 = vld [vmem:[#allocation16 + $0x8] ss:$12 sps:$4 sm:$0xff]  }
 0x23a   :  { %5150 = vrcp.f32 %v1227_v41  ;;  %v6272_v41 = vld [vmem:[#allocation16 + $0x1c] ss:$12 sps:$4 sm:$0xff]  }
 0x240   :  { %v1210_v9 = vpop.f32.mrb[20].mxu1 }
 0x241   :  { %v1236_v10 = vadd.f32 %v6258_v52, %v1210_v9  ;;  %v4417_v2 = vpop.f32.mrb[21].mxu1  ;;  %v6283_v9 = vld [vmem:[#allocation3] sm:$0xff] }
 0x242   :  { %v1213_v63 = vpop.f32.mrb[22].mxu1  ;;  %v7882_v2 = vmov 0  }
 0x243   :  { %v5149_v60 = vpop.eup %5148  ;;  %v4418_v21 = vpop.f32.mrb[23].mxu1  ;;  %v6293_v63 = vld [vmem:[#allocation16 + $0x30] ss:$12 sps:$4 sm:$0xff]  }
 0x244   :  { %v1237_v24 = vmul.f32 %v5149_v60, %v1236_v10  ;;  %v5151_v18 = vpop.eup %5150  ;;  %v6286_v10 = vld [vmem:[#allocation16 + $0x34] ss:$12 sps:$4 sm:$0xff]   ;;  %v6295_v60 = vld [vmem:[#allocation16 + $0x38] ss:$12 sps:$4 sm:$0xff]  }
 0x245   :  { %v1240_v40 = vsub.f32 1.0, %v5151_v18  ;;  %v1242_v1 = vmul.f32 %v5151_v18, %v6067_v29  ;;  %v6278_v29 = vld [vmem:[#allocation16 + $0x18] ss:$12 sps:$4 sm:$0xff]  }
 0x246   :  { %v1238_v39 = vadd.f32 %v1237_v24, %v1005_v54  ;;  %v6280_v54 = vld [vmem:[#allocation16 + $0x20] ss:$12 sps:$4 sm:$0xff]   ;;  %v6303_v24 = vld [vmem:[#allocation16 + $0x48] ss:$12 sps:$4 sm:$0xff]   ;;  %v6309_v18 = vld [vmem:[#allocation16 + $0x64] ss:$12 sps:$4 sm:$0xff]  }
 0x247   :  { %v6299_v21 = vld [vmem:[#allocation16 + $0x4c] ss:$12 sps:$4 sm:$0xff]  }
 0x248   :  { %5152 = vtanh.f32 %v1238_v39  ;;  %v6305_v39 = vld [vmem:[#allocation16 + $0x50] ss:$12 sps:$4 sm:$0xff]  }
 0x252   :  { %v5153_v31 = vpop.eup %5152 }
 0x253   :  { %v1241_v12 = vmul.f32 %v5153_v31, %v1240_v40  ;;  %v6313_v40 = vld [vmem:[#allocation16 + $0x60] ss:$12 sps:$4 sm:$0xff]   ;;  %v6315_v31 = vld [vmem:[#allocation16 + $0x68] ss:$12 sps:$4 sm:$0xff]  }
 0x255   :  { %v6262_v16 = vadd.f32 %v1242_v1, %v1241_v12  ;;  %v6319_v12 = vld [vmem:[#allocation16 + $0x7c] ss:$12 sps:$4 sm:$0xff]   ;;  %v6323_v1 = vld [vmem:[#allocation16 + $0x78] ss:$12 sps:$4 sm:$0xff]  }
 0x256   :  { %7883 = vst [vmem:[#allocation80_spill] sm:$0xff] %v6319_v12  ;;  %7884 = vst [vmem:[#allocation81_spill] sm:$0xff] %v6323_v1 }
 0x257   :  { %v6270_v58 = vpack.c.bf16 %v6262_v16, %v6262_v16 }
 0x259   :  { %1422 = vmatmul.mubr.bf16.vlgmr.msra.gmra.mrb[20].mxu0 %v6270_v58  ;;  %4436 = vmatmul.mubr.bf16.vlgmr.msra.gmra.mrb[24].mxu1 %v6270_v58 }
 0x25a   :  { %1600 = vmatpush1.bf16.msra.mxu0 %v6264_v0  ;;  %4440 = vmatpush3.bf16.msra.mxu1 %v6266_v57 }
 0x25b   :  { %1601 = vmatprep.subr.bf16.mxu0 %v6272_v41  ;;  %4441 = vmatprep.subr.bf16.mxu1 %v6283_v9 }
 0x25c   :  { %1631 = vmatprep.mubr.bf16.mxu0 %v7882_v2  ;;  %4455 = vmatprep.mubr.msk.bf16.mxu1 %vm5701_vm0, %v6283_v9 }
 0x25e   :  { %1602 = vmatpush1.bf16.msra.mxu0 %v6278_v29  ;;  %4442 = vmatpush3.bf16.msra.mxu1 %v6280_v54 }
 0x25f   :  { %1603 = vmatprep.subr.bf16.mxu0 %v6286_v10  ;;  %4443 = vmatprep.subr.bf16.mxu1 %v6283_v9 }
 0x262   :  { %1604 = vmatpush1.bf16.msra.mxu0 %v6293_v63  ;;  %4444 = vmatpush3.bf16.msra.mxu1 %v6295_v60 }
 0x263   :  { %1605 = vmatprep.subr.bf16.mxu0 %v6299_v21  ;;  %4445 = vmatprep.subr.bf16.mxu1 %v6283_v9 }
 0x266   :  { %1606 = vmatpush1.bf16.msra.mxu0 %v6303_v24  ;;  %4446 = vmatpush3.bf16.msra.mxu1 %v6305_v39 }
 0x267   :  { %1607 = vmatprep.subr.bf16.mxu0 %v6309_v18  ;;  %4447 = vmatprep.subr.bf16.mxu1 %v6283_v9 }
 0x26a   :  { %1608 = vmatpush1.bf16.msra.mxu0 %v6313_v40  ;;  %4448 = vmatpush3.bf16.msra.mxu1 %v6315_v31 }
 0x26b   :  { %1609 = vmatprep.subr.bf16.mxu0 %v6319_v12  ;;  %4449 = vmatprep.subr.bf16.mxu1 %v6283_v9  ;;  %v6345_v12 = vld [vmem:[#allocation16 + $0xb0] ss:$12 sps:$4 sm:$0xff]  }
 0x26e   :  { %1610 = vmatpush1.bf16.msra.mxu0 %v6323_v1  ;;  %4450 = vmatpush3.bf16.msra.mxu1 %v6325_v56  ;;  %v6347_v1 = vld [vmem:[#allocation7 + $0x8] sm:$0xff] }
 0x26f   :  { %1611 = vmatprep.subr.bf16.mxu0 %v6329_v19  ;;  %4451 = vmatprep.subr.bf16.mxu1 %v6283_v9  ;;  %v1470_v19 = vpack.c.bf16 %v6347_v1, %v6347_v1 }
 0x272   :  { %1612 = vmatpush1.bf16.msra.mxu0 %v6333_v38  ;;  %4452 = vmatpush3.bf16.msra.mxu1 %v6335_v50 }
 0x273   :  { %1613 = vmatprep.subr.bf16.mxu0 %v6339_v4  ;;  %4453 = vmatprep.subr.bf16.mxu1 %v6283_v9 }
 0x276   :  { %1614 = vmatpush1.bf16.msra.mxu0 %v6343_v53  ;;  %4454 = vmatpush3.bf16.msra.mxu1 %v6345_v12 }
 0x277   :  { %1715 = vmatprep.subr.bf16.mxu0 %v5960_v51  ;;  %4459 = vmatprep.subr.bf16.mxu1 %v6283_v9  ;;  %v7886_v51 = vld [vmem:[#allocation42_spill] sm:$0xff] }
 0x279   :  { %1632 = vmatmul.mubr.bf16.vlgmr.msra.gmra.mrb[20].mxu0 %v1470_v19  ;;  %4456 = vmatmul.mubr.bf16.vlgmr.msra.gmra.mrb[28].mxu1 %v1470_v19  ;;  %v7887_v19 = vld [vmem:[#allocation43_spill] sm:$0xff] }
 0x27a   :  { %1716 = vmatpush1.bf16.msra.mxu0 %v5967_v59  ;;  %4460 = vmatpush3.bf16.msra.mxu1 %v6055_v26 }
 0x27b   :  { %1717 = vmatprep.subr.bf16.mxu0 %v5976_v62  ;;  %4461 = vmatprep.subr.bf16.mxu1 %v6283_v9 }
 0x27c   :  { %1747 = vmatprep.mubr.bf16.mxu0 %v7882_v2  ;;  %4475 = vmatprep.mubr.msk.bf16.mxu1 %vm5701_vm0, %v6283_v9 }
 0x27e   :  { %1718 = vmatpush1.bf16.msra.mxu0 %v5984_v6  ;;  %4462 = vmatpush3.bf16.msra.mxu1 %v6071_v30 }
 0x27f   :  { %1719 = vmatprep.subr.bf16.mxu0 %v5991_v8  ;;  %4463 = vmatprep.subr.bf16.mxu1 %v6283_v9 }
 0x282   :  { %1720 = vmatpush1.bf16.msra.mxu0 %v6000_v11  ;;  %4464 = vmatpush3.bf16.msra.mxu1 %v6081_v32 }
 0x283   :  { %1721 = vmatprep.subr.bf16.mxu0 %v6007_v13  ;;  %4465 = vmatprep.subr.bf16.mxu1 %v6283_v9 }
 0x286   :  { %1722 = vmatpush1.bf16.msra.mxu0 %v6017_v14  ;;  %4466 = vmatpush3.bf16.msra.mxu1 %v6086_v33 }
 0x287   :  { %1723 = vmatprep.subr.bf16.mxu0 %v6021_v15  ;;  %4467 = vmatprep.subr.bf16.mxu1 %v6283_v9 }
 0x28a   :  { %1724 = vmatpush1.bf16.msra.mxu0 %v6025_v17  ;;  %4468 = vmatpush3.bf16.msra.mxu1 %v6090_v34 }
 0x28b   :  { %1725 = vmatprep.subr.bf16.mxu0 %v6031_v20  ;;  %4469 = vmatprep.subr.bf16.mxu1 %v6283_v9 }
 0x28e   :  { %1726 = vmatpush1.bf16.msra.mxu0 %v6041_v22  ;;  %4470 = vmatpush3.bf16.msra.mxu1 %v6094_v35 }
 0x28f   :  { %1727 = vmatprep.subr.bf16.mxu0 %v6044_v23  ;;  %4471 = vmatprep.subr.bf16.mxu1 %v6283_v9 }
 0x292   :  { %1728 = vmatpush1.bf16.msra.mxu0 %v6052_v25  ;;  %4472 = vmatpush3.bf16.msra.mxu1 %v6098_v36 }
 0x293   :  { %1729 = vmatprep.subr.bf16.mxu0 %v6057_v27  ;;  %4473 = vmatprep.subr.bf16.mxu1 %v6283_v9 }
 0x296   :  { %1730 = vmatpush1.bf16.msra.mxu0 %v6065_v28  ;;  %4474 = vmatpush3.bf16.msra.mxu1 %v6102_v37 }
 0x297   :  { %1819 = vmatprep.subr.bf16.mxu0 %v6111_v42  ;;  %4479 = vmatprep.subr.bf16.mxu1 %v6283_v9  ;;  %v993_v42 = vld [vmem:[#allocation18] sm:$0x7] }
 0x299   :  { %1748 = vmatmul.mubr.bf16.vlgmr.msra.gmra.mrb[24].mxu0 %v6270_v58  ;;  %4476 = vmatmul.mubr.bf16.vlgmr.msra.gmra.mrb[32].mxu1 %v6270_v58  ;;  %v7888_v58 = vld [vmem:[#allocation44_spill] sm:$0xff] }
 0x29a   :  { %1820 = vmatpush1.bf16.msra.mxu0 %v6113_v43  ;;  %4480 = vmatpush3.bf16.msra.mxu1 %v6115_v44  ;;  %v7890_v44 = vld [vmem:[#allocation46_spill] sm:$0xff] }
 0x29b   :  { %1821 = vmatprep.subr.bf16.mxu0 %v6120_v45  ;;  %4481 = vmatprep.subr.bf16.mxu1 %v6283_v9  ;;  %v7889_v45 = vld [vmem:[#allocation45_spill] sm:$0xff] }
 0x29c   :  { %1851 = vmatprep.mubr.bf16.mxu0 %v7882_v2  ;;  %4495 = vmatprep.mubr.msk.bf16.mxu1 %vm5701_vm0, %v6283_v9 }
 0x29e   :  { %1822 = vmatpush1.bf16.msra.mxu0 %v6122_v46  ;;  %4482 = vmatpush3.bf16.msra.mxu1 %v6124_v47  ;;  %v7891_v47 = vld [vmem:[#allocation47_spill] sm:$0xff]  ;;  %v7893_v46 = vld [vmem:[#allocation49_spill] sm:$0xff] }
 0x29f   :  { %1823 = vmatprep.subr.bf16.mxu0 %v6130_v48  ;;  %4483 = vmatprep.subr.bf16.mxu1 %v6283_v9  ;;  %v7892_v48 = vld [vmem:[#allocation48_spill] sm:$0xff] }
 0x2a2   :  { %1824 = vmatpush1.bf16.msra.mxu0 %v6133_v49  ;;  %4484 = vmatpush3.bf16.msra.mxu1 %v7886_v51  ;;  %v7894_v51 = vld [vmem:[#allocation50_spill] sm:$0xff]  ;;  %v7896_v49 = vld [vmem:[#allocation52_spill] sm:$0xff] }
 0x2a3   :  { %1825 = vmatprep.subr.bf16.mxu0 %v7887_v19  ;;  %4485 = vmatprep.subr.bf16.mxu1 %v6283_v9  ;;  %v7895_v19 = vld [vmem:[#allocation51_spill] sm:$0xff] }
 0x2a6   :  { %1826 = vmatpush1.bf16.msra.mxu0 %v7888_v58  ;;  %4486 = vmatpush3.bf16.msra.mxu1 %v7889_v45  ;;  %v7897_v45 = vld [vmem:[#allocation53_spill] sm:$0xff]  ;;  %v7899_v58 = vld [vmem:[#allocation55_spill] sm:$0xff] }
 0x2a7   :  { %1827 = vmatprep.subr.bf16.mxu0 %v7890_v44  ;;  %4487 = vmatprep.subr.bf16.mxu1 %v6283_v9  ;;  %v7898_v44 = vld [vmem:[#allocation54_spill] sm:$0xff] }
 0x2aa   :  { %1828 = vmatpush1.bf16.msra.mxu0 %v7891_v47  ;;  %4488 = vmatpush3.bf16.msra.mxu1 %v7892_v48  ;;  %v7900_v48 = vld [vmem:[#allocation56_spill] sm:$0xff]  ;;  %v7902_v47 = vld [vmem:[#allocation58_spill] sm:$0xff] }
 0x2ab   :  { %1829 = vmatprep.subr.bf16.mxu0 %v7893_v46  ;;  %4489 = vmatprep.subr.bf16.mxu1 %v6283_v9  ;;  %v7901_v46 = vld [vmem:[#allocation57_spill] sm:$0xff] }
 0x2ae   :  { %1830 = vmatpush1.bf16.msra.mxu0 %v7894_v51  ;;  %4490 = vmatpush3.bf16.msra.mxu1 %v7895_v19 }
 0x2af   :  { %1831 = vmatprep.subr.bf16.mxu0 %v7896_v49  ;;  %4491 = vmatprep.subr.bf16.mxu1 %v6283_v9 }
 0x2b2   :  { %1832 = vmatpush1.bf16.msra.mxu0 %v7897_v45  ;;  %4492 = vmatpush3.bf16.msra.mxu1 %v7898_v44  ;;  %v6430_v45 = vrot.slane %v993_v42, %v6222_v3 }
 0x2b3   :  { %1833 = vmatprep.subr.bf16.mxu0 %v7899_v58  ;;  %4493 = vmatprep.subr.bf16.mxu1 %v6283_v9  ;;  %v6433_v58 = vrot.slane %v993_v42, %v6227_v5 }
 0x2b4   :  { %7903 = vst [vmem:[#allocation83_spill] sm:$0xff] %v6430_v45 }
 0x2b5   :  { %7904 = vst [vmem:[#allocation84_spill] sm:$0xff] %v6433_v58 }
 0x2b6   :  { %1834 = vmatpush1.bf16.msra.mxu0 %v7900_v48  ;;  %4494 = vmatpush3.bf16.msra.mxu1 %v7901_v46 }
 0x2b7   :  { %1901 = vmatprep.subr.bf16.mxu0 %v7902_v47  ;;  %4499 = vmatprep.subr.bf16.mxu1 %v6283_v9 }
 0x32c   :  { %v1464_v19 = vpop.f32.mrb[24].mxu1 }
 0x32d   :  { %v4437_v49 = vpop.f32.mrb[25].mxu1 }
 0x32e   :  { %v1467_v51 = vpop.f32.mrb[26].mxu1 }
 0x32f   :  { %v4438_v43 = vpop.f32.mrb[27].mxu1 }
 0x34c   :  { %v1633_v44 = vpop.f32.mrb[20].mxu0  ;;  %v1674_v37 = vpop.f32.mrb[28].mxu1 }
 0x34d   :  { %v4905_v48 = vadd.f32 %v1633_v44, %v6430_v45  ;;  %v1635_v46 = vpop.f32.mrb[21].mxu0  ;;  %v4457_v28 = vpop.f32.mrb[29].mxu1  ;;  %v6440_v44 = vld [vmem:[%s7664_s14] ss:$0 sm:$0xff] }
 0x34e   :  { %v1637_v47 = vpop.f32.mrb[22].mxu0  ;;  %v1677_v27 = vpop.f32.mrb[30].mxu1  ;;  %v4906_v43 = vadd.f32 %v1635_v46, %v6433_v58  ;;  %7905 = vst [vmem:[#allocation85_spill] sm:$0xff] %v6440_v44  ;;  %v7906_v28 = vld [vmem:[#allocation69_spill] sm:$0xff]  ;;  %v7908_v58 = vld [vmem:[#allocation60_spill] sm:$0xff] }
 0x34f   :  { %v4067_v36 = vmul.f32 -1.442695, %v4905_v48  ;;  %v1638_v25 = vpop.f32.mrb[23].mxu0  ;;  %v4458_v49 = vpop.f32.mrb[31].mxu1  ;;  %v6443_v47 = vrot.slane %v993_v42, %v7906_v28  ;;  %v1713_v45 = vadd.f32 %v6250_v61, %v7908_v58 }
 0x350   :  { %v4068_v51 = vmul.f32 -1.442695, %v4906_v43  ;;  %v1700_v25 = vadd.f32 %v6440_v44, %v1674_v37  ;;  %v7907_v43 = vld [vmem:[#allocation59_spill] sm:$0xff] }
 0x351   :  { %5154 = vpow2.f32 %v4067_v36  ;;  %v1465_v36 = vadd.f32 %v1464_v19, %v6443_v47 }
 0x352   :  { %5156 = vpow2.f32 %v4068_v51 }
 0x35b   :  { %v5155_v3 = vpop.eup %5154 }
 0x35c   :  { %v1684_v23 = vadd.f32 1.0, %v5155_v3  ;;  %v5157_v5 = vpop.eup %5156 }
 0x35d   :  { %v1691_v27 = vadd.f32 1.0, %v5157_v5 }
 0x35e   :  { %5158 = vrcp.f32 %v1684_v23  ;;  %v1712_v23 = vadd.f32 %v6233_v55, %v7907_v43 }
 0x35f   :  { %5160 = vrcp.f32 %v1691_v27 }
 0x368   :  { %v5159_v48 = vpop.eup %5158 }
 0x369   :  { %v1701_v46 = vmul.f32 %v5159_v48, %v1700_v25  ;;  %v5161_v25 = vpop.eup %5160 }
 0x36a   :  { %v1706_v55 = vmul.f32 %v5161_v25, %v6347_v1 }
 0x36b   :  { %v1702_v49 = vadd.f32 %v1701_v46, %v1465_v36  ;;  %v1704_v36 = vsub.f32 1.0, %v5161_v25 }
 0x36c   :  { %v1749_v51 = vpop.f32.mrb[24].mxu0  ;;  %v1790_v3 = vpop.f32.mrb[32].mxu1 }
 0x36d   :  { %5162 = vtanh.f32 %v1702_v49  ;;  %v1796_v42 = vadd.f32 %v1749_v51, %v1712_v23  ;;  %v1751_v28 = vpop.f32.mrb[25].mxu0  ;;  %v4477_v5 = vpop.f32.mrb[33].mxu1  ;;  %v1810_v51 = vadd.f32 %v6258_v52, %v1790_v3  ;;  %v7911_v3 = vld [vmem:[#allocation82_spill] sm:$0xff] }
 0x36e   :  { %v1803_v35 = vadd.f32 %v1751_v28, %v1713_v45  ;;  %v1753_v37 = vpop.f32.mrb[26].mxu0  ;;  %v1793_v44 = vpop.f32.mrb[34].mxu1 }
 0x36f   :  { %v4070_v22 = vmul.f32 -1.442695, %v1796_v42  ;;  %v1754_v19 = vpop.f32.mrb[27].mxu0  ;;  %v4478_v27 = vpop.f32.mrb[35].mxu1 }
 0x370   :  { %v4071_v48 = vmul.f32 -1.442695, %v1803_v35 }
 0x371   :  { %5164 = vpow2.f32 %v4070_v22 }
 0x372   :  { %5166 = vpow2.f32 %v4071_v48  ;;  %v6501_v48 = vld [vmem:[#allocation13 + $0x4] ss:$12 sps:$4 sm:$0xff]  }
 0x377   :  { %v5163_v46 = vpop.eup %5162 }
 0x378   :  { %v1705_v43 = vmul.f32 %v5163_v46, %v1704_v36  ;;  %v7927_v36 = vld [vmem:[#allocation41_spill] sm:$0xff]  ;;  %v7928_v46 = vld [vmem:[#allocation42_spill] sm:$0xff] }
 0x37a   :  { %v6452_v58 = vadd.f32 %v1706_v55, %v1705_v43  ;;  %v7929_v43 = vld [vmem:[#allocation43_spill] sm:$0xff] }
 0x37b   :  { %v5165_v49 = vpop.eup %5164 }
 0x37c   :  { %v1800_v23 = vadd.f32 1.0, %v5165_v49  ;;  %1708 = vst [vmem:[#allocation3] sm:$0x3] %v6452_v58  ;;  %v5167_v45 = vpop.eup %5166  ;;  %v1900_v25 = vpack.c.bf16 %v6452_v58, %v6452_v58  ;;  %v7930_v49 = vld [vmem:[#allocation44_spill] sm:$0xff] }
 0x37d   :  { %v1807_v44 = vadd.f32 1.0, %v5167_v45  ;;  %v7932_v45 = vld [vmem:[#allocation46_spill] sm:$0xff] }
 0x37e   :  { %5168 = vrcp.f32 %v1800_v23  ;;  %v7931_v23 = vld [vmem:[#allocation45_spill] sm:$0xff] }
 0x37f   :  { %5170 = vrcp.f32 %v1807_v44  ;;  %v7933_v44 = vld [vmem:[#allocation47_spill] sm:$0xff] }
 0x388   :  { %v5169_v22 = vpop.eup %5168 }
 0x389   :  { %v1811_v42 = vmul.f32 %v5169_v22, %v1810_v51  ;;  %v5171_v28 = vpop.eup %5170  ;;  %v7934_v51 = vld [vmem:[#allocation48_spill] sm:$0xff]  ;;  %v7935_v22 = vld [vmem:[#allocation49_spill] sm:$0xff] }
 0x38a   :  { %v1814_v5 = vsub.f32 1.0, %v5171_v28  ;;  %v1816_v37 = vmul.f32 %v5171_v28, %v6262_v16  ;;  %v7910_v16 = vld [vmem:[#allocation81_spill] sm:$0xff]  ;;  %v7938_v28 = vld [vmem:[#allocation52_spill] sm:$0xff] }
 0x38b   :  { %v1812_v35 = vadd.f32 %v1811_v42, %v6236_v7  ;;  %v7909_v7 = vld [vmem:[#allocation80_spill] sm:$0xff]  ;;  %v7936_v42 = vld [vmem:[#allocation50_spill] sm:$0xff] }
 0x38d   :  { %5172 = vtanh.f32 %v1812_v35  ;;  %v7937_v35 = vld [vmem:[#allocation51_spill] sm:$0xff] }
 0x397   :  { %v5173_v1 = vpop.eup %5172 }
 0x398   :  { %v1815_v55 = vmul.f32 %v5173_v1, %v1814_v5  ;;  %v7939_v5 = vld [vmem:[#allocation53_spill] sm:$0xff]  ;;  %v7940_v1 = vld [vmem:[#allocation54_spill] sm:$0xff] }
 0x39a   :  { %v6458_v19 = vadd.f32 %v1816_v37, %v1815_v55  ;;  %v7941_v55 = vld [vmem:[#allocation55_spill] sm:$0xff]  ;;  %v7942_v37 = vld [vmem:[#allocation56_spill] sm:$0xff] }
 0x39c   :  { %v6462_v27 = vpack.c.bf16 %v6458_v19, %v6458_v19 }
 0x39e   :  { %1852 = vmatmul.mubr.bf16.vlgmr.msra.gmra.mrb[28].mxu0 %v6462_v27  ;;  %4496 = vmatmul.mubr.bf16.vlgmr.msra.gmra.mrb[36].mxu1 %v6462_v27 }
 0x39f   :  { %1902 = vmatpush1.bf16.msra.mxu0 %v6264_v0  ;;  %4500 = vmatpush3.bf16.msra.mxu1 %v6266_v57 }
 0x3a0   :  { %1903 = vmatprep.subr.bf16.mxu0 %v6272_v41  ;;  %4501 = vmatprep.subr.bf16.mxu1 %v6283_v9 }
 0x3a1   :  { %1933 = vmatprep.mubr.bf16.mxu0 %v7882_v2  ;;  %4515 = vmatprep.mubr.msk.bf16.mxu1 %vm5701_vm0, %v6283_v9 }
 0x3a3   :  { %1904 = vmatpush1.bf16.msra.mxu0 %v6278_v29  ;;  %4502 = vmatpush3.bf16.msra.mxu1 %v6280_v54 }
 0x3a4   :  { %1905 = vmatprep.subr.bf16.mxu0 %v6286_v10  ;;  %4503 = vmatprep.subr.bf16.mxu1 %v6283_v9 }
 0x3a7   :  { %1906 = vmatpush1.bf16.msra.mxu0 %v6293_v63  ;;  %4504 = vmatpush3.bf16.msra.mxu1 %v6295_v60 }
 0x3a8   :  { %1907 = vmatprep.subr.bf16.mxu0 %v6299_v21  ;;  %4505 = vmatprep.subr.bf16.mxu1 %v6283_v9 }
 0x3ab   :  { %1908 = vmatpush1.bf16.msra.mxu0 %v6303_v24  ;;  %4506 = vmatpush3.bf16.msra.mxu1 %v6305_v39 }
 0x3ac   :  { %1909 = vmatprep.subr.bf16.mxu0 %v6309_v18  ;;  %4507 = vmatprep.subr.bf16.mxu1 %v6283_v9 }
 0x3af   :  { %1910 = vmatpush1.bf16.msra.mxu0 %v6313_v40  ;;  %4508 = vmatpush3.bf16.msra.mxu1 %v6315_v31 }
 0x3b0   :  { %1911 = vmatprep.subr.bf16.mxu0 %v7909_v7  ;;  %4509 = vmatprep.subr.bf16.mxu1 %v6283_v9 }
 0x3b3   :  { %1912 = vmatpush1.bf16.msra.mxu0 %v7910_v16  ;;  %4510 = vmatpush3.bf16.msra.mxu1 %v6325_v56 }
 0x3b4   :  { %1913 = vmatprep.subr.bf16.mxu0 %v7911_v3  ;;  %4511 = vmatprep.subr.bf16.mxu1 %v6283_v9 }
 0x3b7   :  { %1914 = vmatpush1.bf16.msra.mxu0 %v6333_v38  ;;  %4512 = vmatpush3.bf16.msra.mxu1 %v6335_v50 }
 0x3b8   :  { %1915 = vmatprep.subr.bf16.mxu0 %v6339_v4  ;;  %4513 = vmatprep.subr.bf16.mxu1 %v6283_v9 }
 0x3bb   :  { %1916 = vmatpush1.bf16.msra.mxu0 %v6343_v53  ;;  %4514 = vmatpush3.bf16.msra.mxu1 %v6345_v12 }
 0x3bc   :  { %2011 = vmatprep.subr.bf16.mxu0 %v6501_v48  ;;  %4519 = vmatprep.subr.bf16.mxu1 %v6283_v9 }
 0x3be   :  { %1934 = vmatmul.mubr.bf16.vlgmr.msra.gmra.mrb[28].mxu0 %v1900_v25  ;;  %4516 = vmatmul.mubr.bf16.vlgmr.msra.gmra.mrb[40].mxu1 %v1900_v25  ;;  %v7944_v25 = vld [vmem:[#allocation58_spill] sm:$0xff] }
 0x3bf   :  { %2012 = vmatpush1.bf16.msra.mxu0 %v5967_v59  ;;  %4520 = vmatpush3.bf16.msra.mxu1 %v6055_v26  ;;  %v7912_v59 = vld [vmem:[#allocation26_spill] sm:$0xff]  ;;  %v7922_v26 = vld [vmem:[#allocation36_spill] sm:$0xff] }
 0x3c0   :  { %2013 = vmatprep.subr.bf16.mxu0 %v5976_v62  ;;  %4521 = vmatprep.subr.bf16.mxu1 %v6283_v9  ;;  %v7913_v62 = vld [vmem:[#allocation31_spill] sm:$0xff] }
 0x3c1   :  { %2043 = vmatprep.mubr.bf16.mxu0 %v7882_v2  ;;  %4535 = vmatprep.mubr.msk.bf16.mxu1 %vm5701_vm0, %v6283_v9 }
 0x3c3   :  { %2014 = vmatpush1.bf16.msra.mxu0 %v5984_v6  ;;  %4522 = vmatpush3.bf16.msra.mxu1 %v6071_v30  ;;  %v7914_v6 = vld [vmem:[#allocation27_spill] sm:$0xff]  ;;  %v7923_v30 = vld [vmem:[#allocation37_spill] sm:$0xff] }
 0x3c4   :  { %2015 = vmatprep.subr.bf16.mxu0 %v5991_v8  ;;  %4523 = vmatprep.subr.bf16.mxu1 %v6283_v9  ;;  %v7915_v8 = vld [vmem:[#allocation28_spill] sm:$0xff] }
 0x3c7   :  { %2016 = vmatpush1.bf16.msra.mxu0 %v6000_v11  ;;  %4524 = vmatpush3.bf16.msra.mxu1 %v6081_v32  ;;  %v7916_v11 = vld [vmem:[#allocation32_spill] sm:$0xff]  ;;  %v7924_v32 = vld [vmem:[#allocation38_spill] sm:$0xff] }
 0x3c8   :  { %2017 = vmatprep.subr.bf16.mxu0 %v6007_v13  ;;  %4525 = vmatprep.subr.bf16.mxu1 %v6283_v9  ;;  %v7917_v13 = vld [vmem:[#allocation29_spill] sm:$0xff] }
 0x3cb   :  { %2018 = vmatpush1.bf16.msra.mxu0 %v6017_v14  ;;  %4526 = vmatpush3.bf16.msra.mxu1 %v6086_v33  ;;  %v7918_v14 = vld [vmem:[#allocation30_spill] sm:$0xff]  ;;  %v7925_v33 = vld [vmem:[#allocation39_spill] sm:$0xff] }
 0x3cc   :  { %2019 = vmatprep.subr.bf16.mxu0 %v6021_v15  ;;  %4527 = vmatprep.subr.bf16.mxu1 %v6283_v9  ;;  %v7919_v15 = vld [vmem:[#allocation33_spill] sm:$0xff] }
 0x3cf   :  { %2020 = vmatpush1.bf16.msra.mxu0 %v6025_v17  ;;  %4528 = vmatpush3.bf16.msra.mxu1 %v6090_v34  ;;  %v7920_v17 = vld [vmem:[#allocation34_spill] sm:$0xff]  ;;  %v7926_v34 = vld [vmem:[#allocation40_spill] sm:$0xff] }
 0x3d0   :  { %2021 = vmatprep.subr.bf16.mxu0 %v6031_v20  ;;  %4529 = vmatprep.subr.bf16.mxu1 %v6283_v9  ;;  %v7921_v20 = vld [vmem:[#allocation35_spill] sm:$0xff] }
 0x3d3   :  { %2022 = vmatpush1.bf16.msra.mxu0 %v7912_v59  ;;  %4530 = vmatpush3.bf16.msra.mxu1 %v7913_v62 }
 0x3d4   :  { %2023 = vmatprep.subr.bf16.mxu0 %v7914_v6  ;;  %4531 = vmatprep.subr.bf16.mxu1 %v6283_v9 }
 0x3d7   :  { %2024 = vmatpush1.bf16.msra.mxu0 %v7915_v8  ;;  %4532 = vmatpush3.bf16.msra.mxu1 %v7916_v11 }
 0x3d8   :  { %2025 = vmatprep.subr.bf16.mxu0 %v7917_v13  ;;  %4533 = vmatprep.subr.bf16.mxu1 %v6283_v9 }
 0x3db   :  { %2026 = vmatpush1.bf16.msra.mxu0 %v7918_v14  ;;  %4534 = vmatpush3.bf16.msra.mxu1 %v7919_v15  ;;  %v7945_v14 = vld [vmem:[#allocation83_spill] sm:$0xff] }
 0x3dc   :  { %2115 = vmatprep.subr.bf16.mxu0 %v7920_v17  ;;  %4539 = vmatprep.subr.bf16.mxu1 %v6283_v9 }
 0x3de   :  { %2044 = vmatmul.mubr.bf16.vlgmr.msra.gmra.mrb[32].mxu0 %v6462_v27  ;;  %4536 = vmatmul.mubr.bf16.vlgmr.msra.gmra.mrb[44].mxu1 %v6462_v27  ;;  %v7943_v27 = vld [vmem:[#allocation57_spill] sm:$0xff] }
 0x3df   :  { %2116 = vmatpush1.bf16.msra.mxu0 %v7921_v20  ;;  %4540 = vmatpush3.bf16.msra.mxu1 %v7922_v26 }
 0x3e0   :  { %2117 = vmatprep.subr.bf16.mxu0 %v7923_v30  ;;  %4541 = vmatprep.subr.bf16.mxu1 %v6283_v9 }
 0x3e1   :  { %2147 = vmatprep.mubr.bf16.mxu0 %v7882_v2  ;;  %4555 = vmatprep.mubr.msk.bf16.mxu1 %vm5701_vm0, %v6283_v9 }
 0x3e3   :  { %2118 = vmatpush1.bf16.msra.mxu0 %v7924_v32  ;;  %4542 = vmatpush3.bf16.msra.mxu1 %v7925_v33 }
 0x3e4   :  { %2119 = vmatprep.subr.bf16.mxu0 %v7926_v34  ;;  %4543 = vmatprep.subr.bf16.mxu1 %v6283_v9 }
 0x3e7   :  { %2120 = vmatpush1.bf16.msra.mxu0 %v7927_v36  ;;  %4544 = vmatpush3.bf16.msra.mxu1 %v7928_v46  ;;  %v7946_v36 = vld [vmem:[#allocation84_spill] sm:$0xff] }
 0x3e8   :  { %2121 = vmatprep.subr.bf16.mxu0 %v7929_v43  ;;  %4545 = vmatprep.subr.bf16.mxu1 %v6283_v9 }
 0x3eb   :  { %2122 = vmatpush1.bf16.msra.mxu0 %v7930_v49  ;;  %4546 = vmatpush3.bf16.msra.mxu1 %v7931_v23 }
 0x3ec   :  { %2123 = vmatprep.subr.bf16.mxu0 %v7932_v45  ;;  %4547 = vmatprep.subr.bf16.mxu1 %v6283_v9 }
 0x3ef   :  { %2124 = vmatpush1.bf16.msra.mxu0 %v7933_v44  ;;  %4548 = vmatpush3.bf16.msra.mxu1 %v7934_v51  ;;  %v7947_v51 = vld [vmem:[#allocation85_spill] sm:$0xff] }
 0x3f0   :  { %2125 = vmatprep.subr.bf16.mxu0 %v7935_v22  ;;  %4549 = vmatprep.subr.bf16.mxu1 %v6283_v9 }
 0x3f3   :  { %2126 = vmatpush1.bf16.msra.mxu0 %v7936_v42  ;;  %4550 = vmatpush3.bf16.msra.mxu1 %v7937_v35 }
 0x3f4   :  { %2127 = vmatprep.subr.bf16.mxu0 %v7938_v28  ;;  %4551 = vmatprep.subr.bf16.mxu1 %v6283_v9 }
 0x3f7   :  { %2128 = vmatpush1.bf16.msra.mxu0 %v7939_v5  ;;  %4552 = vmatpush3.bf16.msra.mxu1 %v7940_v1  ;;  %v7948_v1 = vld [vmem:[#allocation61_spill] sm:$0xff] }
 0x3f8   :  { %2129 = vmatprep.subr.bf16.mxu0 %v7941_v55  ;;  %4553 = vmatprep.subr.bf16.mxu1 %v6283_v9  ;;  %v7949_v55 = vld [vmem:[#allocation72_spill] sm:$0xff] }
 0x3fb   :  { %2130 = vmatpush1.bf16.msra.mxu0 %v7942_v37  ;;  %4554 = vmatpush3.bf16.msra.mxu1 %v7943_v27  ;;  %v2008_v37 = vadd.f32 %v7949_v55, %v7948_v1  ;;  %v7951_v1 = vld [vmem:[#allocation73_spill] sm:$0xff] }
 0x3fc   :  { %2197 = vmatprep.subr.bf16.mxu0 %v7944_v25  ;;  %4559 = vmatprep.subr.bf16.mxu1 %v6283_v9 }
 0x471   :  { %v1894_v59 = vpop.f32.mrb[36].mxu1 }
 0x472   :  { %v4497_v62 = vpop.f32.mrb[37].mxu1  ;;  %v1895_v35 = vadd.f32 %v1894_v59, %v6443_v47 }
 0x473   :  { %v1897_v6 = vpop.f32.mrb[38].mxu1  ;;  %v7950_v62 = vld [vmem:[#allocation62_spill] sm:$0xff] }
 0x474   :  { %v4498_v8 = vpop.f32.mrb[39].mxu1  ;;  %v2009_v6 = vadd.f32 %v6250_v61, %v7950_v62 }
 0x491   :  { %v1935_v11 = vpop.f32.mrb[28].mxu0  ;;  %v1976_v13 = vpop.f32.mrb[40].mxu1 }
 0x492   :  { %v4907_v15 = vadd.f32 %v1935_v11, %v7945_v14  ;;  %v1937_v17 = vpop.f32.mrb[29].mxu0  ;;  %v4517_v20 = vpop.f32.mrb[41].mxu1  ;;  %v1996_v22 = vadd.f32 %v7947_v51, %v1976_v13 }
 0x493   :  { %v1939_v26 = vpop.f32.mrb[30].mxu0  ;;  %v1979_v30 = vpop.f32.mrb[42].mxu1  ;;  %v4908_v46 = vadd.f32 %v1937_v17, %v7946_v36 }
 0x494   :  { %v4072_v32 = vmul.f32 -1.442695, %v4907_v15  ;;  %v1940_v33 = vpop.f32.mrb[31].mxu0  ;;  %v4518_v34 = vpop.f32.mrb[43].mxu1 }
 0x495   :  { %v4073_v43 = vmul.f32 -1.442695, %v4908_v46 }
 0x496   :  { %5174 = vpow2.f32 %v4072_v32 }
 0x497   :  { %5176 = vpow2.f32 %v4073_v43 }
 0x4a0   :  { %v5175_v49 = vpop.eup %5174 }
 0x4a1   :  { %v1986_v23 = vadd.f32 1.0, %v5175_v49  ;;  %v5177_v45 = vpop.eup %5176 }
 0x4a2   :  { %v1993_v44 = vadd.f32 1.0, %v5177_v45 }
 0x4a3   :  { %5178 = vrcp.f32 %v1986_v23 }
 0x4a4   :  { %5180 = vrcp.f32 %v1993_v44 }
 0x4ad   :  { %v5179_v42 = vpop.eup %5178 }
 0x4ae   :  { %v1997_v28 = vmul.f32 %v5179_v42, %v1996_v22  ;;  %v5181_v32 = vpop.eup %5180 }
 0x4af   :  { %v2000_v34 = vsub.f32 1.0, %v5181_v32  ;;  %v2002_v49 = vmul.f32 %v5181_v32, %v6452_v58  ;;  %v6748_v32 = vld [vmem:[#allocation15 + $0x38] ss:$12 sps:$4 sm:$0xff]  }
 0x4b0   :  { %v1998_v5 = vadd.f32 %v1997_v28, %v1895_v35  ;;  %7964 = vst [vmem:[#allocation30_spill] sm:$0xff] %v6748_v32 }
 0x4b1   :  { %v2045_v27 = vpop.f32.mrb[32].mxu0  ;;  %v2086_v25 = vpop.f32.mrb[44].mxu1 }
 0x4b2   :  { %5182 = vtanh.f32 %v1998_v5  ;;  %v2092_v8 = vadd.f32 %v2045_v27, %v2008_v37  ;;  %v2047_v11 = vpop.f32.mrb[33].mxu0  ;;  %v4537_v15 = vpop.f32.mrb[45].mxu1  ;;  %v2106_v35 = vadd.f32 %v6258_v52, %v2086_v25  ;;  %v6722_v25 = vld [vmem:[#allocation15] ss:$12 sps:$4 sm:$0xff]  }
 0x4b3   :  { %v2099_v17 = vadd.f32 %v2047_v11, %v2009_v6  ;;  %v2049_v13 = vpop.f32.mrb[34].mxu0  ;;  %v2089_v20 = vpop.f32.mrb[46].mxu1  ;;  %7957 = vst [vmem:[#allocation82_spill] sm:$0xff] %v6722_v25 }
 0x4b4   :  { %v4074_v26 = vmul.f32 -1.442695, %v2092_v8  ;;  %v2050_v59 = vpop.f32.mrb[35].mxu0  ;;  %v4538_v30 = vpop.f32.mrb[47].mxu1  ;;  %v6728_v13 = vld [vmem:[#allocation15 + $0x1c] ss:$12 sps:$4 sm:$0xff]  }
 0x4b5   :  { %v4075_v33 = vmul.f32 -1.442695, %v2099_v17  ;;  %v6725_v17 = vld [vmem:[#allocation15 + $0x8] ss:$12 sps:$4 sm:$0xff]   ;;  %7959 = vst [vmem:[#allocation31_spill] sm:$0xff] %v6728_v13 }
 0x4b6   :  { %5184 = vpow2.f32 %v4074_v26  ;;  %7958 = vst [vmem:[#allocation26_spill] sm:$0xff] %v6725_v17  ;;  %v6735_v20 = vld [vmem:[#allocation15 + $0x18] ss:$12 sps:$4 sm:$0xff]   ;;  %v6738_v26 = vld [vmem:[#allocation15 + $0x20] ss:$12 sps:$4 sm:$0xff]  }
 0x4b7   :  { %5186 = vpow2.f32 %v4075_v33  ;;  %7960 = vst [vmem:[#allocation27_spill] sm:$0xff] %v6735_v20  ;;  %7961 = vst [vmem:[#allocation28_spill] sm:$0xff] %v6738_v26  ;;  %v6741_v59 = vld [vmem:[#allocation15 + $0x34] ss:$12 sps:$4 sm:$0xff]   ;;  %v6745_v30 = vld [vmem:[#allocation15 + $0x30] ss:$12 sps:$4 sm:$0xff]  }
 0x4b8   :  { %7962 = vst [vmem:[#allocation32_spill] sm:$0xff] %v6741_v59  ;;  %7963 = vst [vmem:[#allocation29_spill] sm:$0xff] %v6745_v30  ;;  %v6751_v33 = vld [vmem:[#allocation15 + $0x4c] ss:$12 sps:$4 sm:$0xff]  }
 0x4b9   :  { %7965 = vst [vmem:[#allocation33_spill] sm:$0xff] %v6751_v33 }
 0x4bc   :  { %v5183_v46 = vpop.eup %5182 }
 0x4bd   :  { %v2001_v43 = vmul.f32 %v5183_v46, %v2000_v34  ;;  %v6755_v34 = vld [vmem:[#allocation15 + $0x48] ss:$12 sps:$4 sm:$0xff]   ;;  %v6758_v46 = vld [vmem:[#allocation15 + $0x50] ss:$12 sps:$4 sm:$0xff]  }
 0x4be   :  { %7966 = vst [vmem:[#allocation34_spill] sm:$0xff] %v6755_v34  ;;  %7967 = vst [vmem:[#allocation35_spill] sm:$0xff] %v6758_v46 }
 0x4bf   :  { %v6586_v23 = vadd.f32 %v2002_v49, %v2001_v43  ;;  %v6761_v43 = vld [vmem:[#allocation15 + $0x64] ss:$12 sps:$4 sm:$0xff]   ;;  %v6765_v49 = vld [vmem:[#allocation15 + $0x60] ss:$12 sps:$4 sm:$0xff]  }
 0x4c0   :  { %v5185_v45 = vpop.eup %5184  ;;  %7968 = vst [vmem:[#allocation36_spill] sm:$0xff] %v6761_v43  ;;  %7969 = vst [vmem:[#allocation37_spill] sm:$0xff] %v6765_v49 }
 0x4c1   :  { %v2096_v44 = vadd.f32 1.0, %v5185_v45  ;;  %2004 = vst [vmem:[#allocation3 + $0x2] sm:$0x3] %v6586_v23  ;;  %v5187_v22 = vpop.eup %5186  ;;  %v2196_v52 = vpack.c.bf16 %v6586_v23, %v6586_v23  ;;  %v6768_v45 = vld [vmem:[#allocation15 + $0x68] ss:$12 sps:$4 sm:$0xff]  }
 0x4c2   :  { %v2103_v42 = vadd.f32 1.0, %v5187_v22  ;;  %7970 = vst [vmem:[#allocation38_spill] sm:$0xff] %v6768_v45  ;;  %v6775_v22 = vld [vmem:[#allocation15 + $0x78] ss:$12 sps:$4 sm:$0xff]  }
 0x4c3   :  { %5188 = vrcp.f32 %v2096_v44  ;;  %v6771_v44 = vld [vmem:[#allocation15 + $0x7c] ss:$12 sps:$4 sm:$0xff]   ;;  %7972 = vst [vmem:[#allocation40_spill] sm:$0xff] %v6775_v22 }
 0x4c4   :  { %5190 = vrcp.f32 %v2103_v42  ;;  %7971 = vst [vmem:[#allocation39_spill] sm:$0xff] %v6771_v44  ;;  %v6778_v42 = vld [vmem:[#allocation15 + $0x80] ss:$12 sps:$4 sm:$0xff]  }
 0x4c5   :  { %7973 = vst [vmem:[#allocation41_spill] sm:$0xff] %v6778_v42 }
 0x4cd   :  { %v5189_v28 = vpop.eup %5188 }
 0x4ce   :  { %v2107_v5 = vmul.f32 %v5189_v28, %v2106_v35  ;;  %v5191_v27 = vpop.eup %5190  ;;  %v6781_v35 = vld [vmem:[#allocation15 + $0x94] ss:$12 sps:$4 sm:$0xff]   ;;  %v6785_v28 = vld [vmem:[#allocation15 + $0x90] ss:$12 sps:$4 sm:$0xff]  }
 0x4cf   :  { %v2110_v62 = vsub.f32 1.0, %v5191_v27  ;;  %v2112_v8 = vmul.f32 %v5191_v27, %v6458_v19  ;;  %v6706_v19 = vld [vmem:[#allocation13 + $0xac] ss:$12 sps:$4 sm:$0xff]   ;;  %7974 = vst [vmem:[#allocation42_spill] sm:$0xff] %v6781_v35  ;;  %7975 = vst [vmem:[#allocation43_spill] sm:$0xff] %v6785_v28 }
 0x4d0   :  { %v2108_v37 = vadd.f32 %v2107_v5, %v7951_v1  ;;  %7953 = vst [vmem:[#allocation59_spill] sm:$0xff] %v6706_v19  ;;  %v6788_v5 = vld [vmem:[#allocation15 + $0x98] ss:$12 sps:$4 sm:$0xff]   ;;  %v6798_v27 = vld [vmem:[#allocation15 + $0xb0] ss:$12 sps:$4 sm:$0xff]  }
 0x4d1   :  { %7976 = vst [vmem:[#allocation44_spill] sm:$0xff] %v6788_v5  ;;  %v6791_v1 = vld [vmem:[#allocation15 + $0xac] ss:$12 sps:$4 sm:$0xff]   ;;  %7979 = vst [vmem:[#allocation47_spill] sm:$0xff] %v6798_v27 }
 0x4d2   :  { %5192 = vtanh.f32 %v2108_v37  ;;  %7977 = vst [vmem:[#allocation45_spill] sm:$0xff] %v6791_v1  ;;  %v6795_v37 = vld [vmem:[#allocation15 + $0xa8] ss:$12 sps:$4 sm:$0xff]  }
 0x4d3   :  { %7978 = vst [vmem:[#allocation46_spill] sm:$0xff] %v6795_v37 }
 0x4dc   :  { %v5193_v58 = vpop.eup %5192 }
 0x4dd   :  { %v2111_v6 = vmul.f32 %v5193_v58, %v2110_v62  ;;  %v6801_v62 = vld [vmem:[#allocation16 + $0x4] ss:$12 sps:$4 sm:$0xff]  }
 0x4de   :  { %7980 = vst [vmem:[#allocation48_spill] sm:$0xff] %v6801_v62 }
 0x4df   :  { %v6592_v11 = vadd.f32 %v2112_v8, %v2111_v6 }
 0x4e1   :  { %v6596_v15 = vpack.c.bf16 %v6592_v11, %v6592_v11 }
 0x4e3   :  { %2148 = vmatmul.mubr.bf16.vlgmr.msra.gmra.mrb[36].mxu0 %v6596_v15  ;;  %4556 = vmatmul.mubr.bf16.vlgmr.msra.gmra.mrb[48].mxu1 %v6596_v15 }
 0x4e4   :  { %2198 = vmatpush1.bf16.msra.mxu0 %v6264_v0  ;;  %4560 = vmatpush3.bf16.msra.mxu1 %v6266_v57  ;;  %v6656_v0 = vld [vmem:[#allocation13 + $0x34] ss:$12 sps:$4 sm:$0xff]   ;;  %v6660_v57 = vld [vmem:[#allocation13 + $0x30] ss:$12 sps:$4 sm:$0xff]  }
 0x4e5   :  { %2199 = vmatprep.subr.bf16.mxu0 %v6272_v41  ;;  %4561 = vmatprep.subr.bf16.mxu1 %v6283_v9  ;;  %v6663_v41 = vld [vmem:[#allocation13 + $0x38] ss:$12 sps:$4 sm:$0xff]  }
 0x4e6   :  { %2229 = vmatprep.mubr.bf16.mxu0 %v7882_v2  ;;  %4575 = vmatprep.mubr.msk.bf16.mxu1 %vm5701_vm0, %v6283_v9 }
 0x4e8   :  { %2200 = vmatpush1.bf16.msra.mxu0 %v6278_v29  ;;  %4562 = vmatpush3.bf16.msra.mxu1 %v6280_v54  ;;  %v6666_v29 = vld [vmem:[#allocation13 + $0x4c] ss:$12 sps:$4 sm:$0xff]   ;;  %v6670_v54 = vld [vmem:[#allocation13 + $0x48] ss:$12 sps:$4 sm:$0xff]  }
 0x4e9   :  { %2201 = vmatprep.subr.bf16.mxu0 %v6286_v10  ;;  %4563 = vmatprep.subr.bf16.mxu1 %v6283_v9  ;;  %v6673_v10 = vld [vmem:[#allocation13 + $0x50] ss:$12 sps:$4 sm:$0xff]  }
 0x4ec   :  { %2202 = vmatpush1.bf16.msra.mxu0 %v6293_v63  ;;  %4564 = vmatpush3.bf16.msra.mxu1 %v6295_v60  ;;  %v6676_v63 = vld [vmem:[#allocation13 + $0x64] ss:$12 sps:$4 sm:$0xff]   ;;  %v6680_v60 = vld [vmem:[#allocation13 + $0x60] ss:$12 sps:$4 sm:$0xff]  }
 0x4ed   :  { %2203 = vmatprep.subr.bf16.mxu0 %v6299_v21  ;;  %4565 = vmatprep.subr.bf16.mxu1 %v6283_v9  ;;  %v6683_v21 = vld [vmem:[#allocation13 + $0x68] ss:$12 sps:$4 sm:$0xff]  }
 0x4f0   :  { %2204 = vmatpush1.bf16.msra.mxu0 %v6303_v24  ;;  %4566 = vmatpush3.bf16.msra.mxu1 %v6305_v39  ;;  %v6686_v24 = vld [vmem:[#allocation13 + $0x7c] ss:$12 sps:$4 sm:$0xff]   ;;  %v6690_v39 = vld [vmem:[#allocation13 + $0x78] ss:$12 sps:$4 sm:$0xff]  }
 0x4f1   :  { %2205 = vmatprep.subr.bf16.mxu0 %v6309_v18  ;;  %4567 = vmatprep.subr.bf16.mxu1 %v6283_v9  ;;  %v6693_v18 = vld [vmem:[#allocation13 + $0x80] ss:$12 sps:$4 sm:$0xff]  }
 0x4f4   :  { %2206 = vmatpush1.bf16.msra.mxu0 %v6313_v40  ;;  %4568 = vmatpush3.bf16.msra.mxu1 %v6315_v31  ;;  %v6696_v40 = vld [vmem:[#allocation13 + $0x94] ss:$12 sps:$4 sm:$0xff]   ;;  %v6700_v31 = vld [vmem:[#allocation13 + $0x90] ss:$12 sps:$4 sm:$0xff]  }
 0x4f5   :  { %2207 = vmatprep.subr.bf16.mxu0 %v7909_v7  ;;  %4569 = vmatprep.subr.bf16.mxu1 %v6283_v9  ;;  %v6710_v7 = vld [vmem:[#allocation13 + $0xa8] ss:$12 sps:$4 sm:$0xff]  }
 0x4f6   :  { %7954 = vst [vmem:[#allocation60_spill] sm:$0xff] %v6710_v7 }
 0x4f8   :  { %2208 = vmatpush1.bf16.msra.mxu0 %v7910_v16  ;;  %4570 = vmatpush3.bf16.msra.mxu1 %v6325_v56  ;;  %v6653_v56 = vld [vmem:[#allocation13 + $0x20] ss:$12 sps:$4 sm:$0xff]   ;;  %v6713_v16 = vld [vmem:[#allocation13 + $0xb0] ss:$12 sps:$4 sm:$0xff]  }
 0x4f9   :  { %2209 = vmatprep.subr.bf16.mxu0 %v7911_v3  ;;  %4571 = vmatprep.subr.bf16.mxu1 %v6283_v9  ;;  %7955 = vst [vmem:[#allocation80_spill] sm:$0xff] %v6713_v16  ;;  %v6716_v3 = vld [vmem:[#allocation15 + $0x4] ss:$12 sps:$4 sm:$0xff]  }
 0x4fa   :  { %7956 = vst [vmem:[#allocation81_spill] sm:$0xff] %v6716_v3 }
 0x4fc   :  { %2210 = vmatpush1.bf16.msra.mxu0 %v6333_v38  ;;  %4572 = vmatpush3.bf16.msra.mxu1 %v6335_v50  ;;  %v6637_v38 = vld [vmem:[#allocation13] ss:$12 sps:$4 sm:$0xff]   ;;  %v6640_v50 = vld [vmem:[#allocation13 + $0x8] ss:$12 sps:$4 sm:$0xff]  }
 0x4fd   :  { %2211 = vmatprep.subr.bf16.mxu0 %v6339_v4  ;;  %4573 = vmatprep.subr.bf16.mxu1 %v6283_v9  ;;  %v6650_v4 = vld [vmem:[#allocation13 + $0x18] ss:$12 sps:$4 sm:$0xff]  }
 0x500   :  { %2212 = vmatpush1.bf16.msra.mxu0 %v6343_v53  ;;  %4574 = vmatpush3.bf16.msra.mxu1 %v6345_v12  ;;  %v6643_v53 = vld [vmem:[#allocation13 + $0x1c] ss:$12 sps:$4 sm:$0xff]   ;;  %v6703_v12 = vld [vmem:[#allocation13 + $0x98] ss:$12 sps:$4 sm:$0xff]  }
 0x501   :  { %2307 = vmatprep.subr.bf16.mxu0 %v6501_v48  ;;  %4579 = vmatprep.subr.bf16.mxu1 %v6283_v9  ;;  %7952 = vst [vmem:[#allocation69_spill] sm:$0xff] %v6703_v12 }
 0x503   :  { %2230 = vmatmul.mubr.bf16.vlgmr.msra.gmra.mrb[36].mxu0 %v2196_v52  ;;  %4576 = vmatmul.mubr.bf16.vlgmr.msra.gmra.mrb[52].mxu1 %v2196_v52 }
 0x504   :  { %2308 = vmatpush1.bf16.msra.mxu0 %v6637_v38  ;;  %4580 = vmatpush3.bf16.msra.mxu1 %v6640_v50 }
 0x505   :  { %2309 = vmatprep.subr.bf16.mxu0 %v6643_v53  ;;  %4581 = vmatprep.subr.bf16.mxu1 %v6283_v9 }
 0x506   :  { %2339 = vmatprep.mubr.bf16.mxu0 %v7882_v2  ;;  %4595 = vmatprep.mubr.msk.bf16.mxu1 %vm5701_vm0, %v6283_v9 }
 0x508   :  { %2310 = vmatpush1.bf16.msra.mxu0 %v6650_v4  ;;  %4582 = vmatpush3.bf16.msra.mxu1 %v6653_v56 }
 0x509   :  { %2311 = vmatprep.subr.bf16.mxu0 %v6656_v0  ;;  %4583 = vmatprep.subr.bf16.mxu1 %v6283_v9 }
 0x50c   :  { %2312 = vmatpush1.bf16.msra.mxu0 %v6660_v57  ;;  %4584 = vmatpush3.bf16.msra.mxu1 %v6663_v41 }
 0x50d   :  { %2313 = vmatprep.subr.bf16.mxu0 %v6666_v29  ;;  %4585 = vmatprep.subr.bf16.mxu1 %v6283_v9 }
 0x510   :  { %2314 = vmatpush1.bf16.msra.mxu0 %v6670_v54  ;;  %4586 = vmatpush3.bf16.msra.mxu1 %v6673_v10 }
 0x511   :  { %2315 = vmatprep.subr.bf16.mxu0 %v6676_v63  ;;  %4587 = vmatprep.subr.bf16.mxu1 %v6283_v9 }
 0x514   :  { %2316 = vmatpush1.bf16.msra.mxu0 %v6680_v60  ;;  %4588 = vmatpush3.bf16.msra.mxu1 %v6683_v21 }
 0x515   :  { %2317 = vmatprep.subr.bf16.mxu0 %v6686_v24  ;;  %4589 = vmatprep.subr.bf16.mxu1 %v6283_v9 }
 0x518   :  { %2318 = vmatpush1.bf16.msra.mxu0 %v6690_v39  ;;  %4590 = vmatpush3.bf16.msra.mxu1 %v6693_v18 }
 0x519   :  { %2319 = vmatprep.subr.bf16.mxu0 %v6696_v40  ;;  %4591 = vmatprep.subr.bf16.mxu1 %v6283_v9 }
 0x51c   :  { %2320 = vmatpush1.bf16.msra.mxu0 %v6700_v31  ;;  %4592 = vmatpush3.bf16.msra.mxu1 %v6703_v12 }
 0x51d   :  { %2321 = vmatprep.subr.bf16.mxu0 %v6706_v19  ;;  %4593 = vmatprep.subr.bf16.mxu1 %v6283_v9 }
 0x520   :  { %2322 = vmatpush1.bf16.msra.mxu0 %v6710_v7  ;;  %4594 = vmatpush3.bf16.msra.mxu1 %v6713_v16 }
 0x521   :  { %2411 = vmatprep.subr.bf16.mxu0 %v6716_v3  ;;  %4599 = vmatprep.subr.bf16.mxu1 %v6283_v9 }
 0x523   :  { %2340 = vmatmul.mubr.bf16.vlgmr.msra.gmra.mrb[40].mxu0 %v6596_v15  ;;  %4596 = vmatmul.mubr.bf16.vlgmr.msra.gmra.mrb[56].mxu1 %v6596_v15 }
 0x524   :  { %2412 = vmatpush1.bf16.msra.mxu0 %v6722_v25  ;;  %4600 = vmatpush3.bf16.msra.mxu1 %v6725_v17 }
 0x525   :  { %2413 = vmatprep.subr.bf16.mxu0 %v6728_v13  ;;  %4601 = vmatprep.subr.bf16.mxu1 %v6283_v9 }
 0x526   :  { %2443 = vmatprep.mubr.bf16.mxu0 %v7882_v2  ;;  %4615 = vmatprep.mubr.msk.bf16.mxu1 %vm5701_vm0, %v6283_v9 }
 0x528   :  { %2414 = vmatpush1.bf16.msra.mxu0 %v6735_v20  ;;  %4602 = vmatpush3.bf16.msra.mxu1 %v6738_v26 }
 0x529   :  { %2415 = vmatprep.subr.bf16.mxu0 %v6741_v59  ;;  %4603 = vmatprep.subr.bf16.mxu1 %v6283_v9 }
 0x52c   :  { %2416 = vmatpush1.bf16.msra.mxu0 %v6745_v30  ;;  %4604 = vmatpush3.bf16.msra.mxu1 %v6748_v32 }
 0x52d   :  { %2417 = vmatprep.subr.bf16.mxu0 %v6751_v33  ;;  %4605 = vmatprep.subr.bf16.mxu1 %v6283_v9 }
 0x530   :  { %2418 = vmatpush1.bf16.msra.mxu0 %v6755_v34  ;;  %4606 = vmatpush3.bf16.msra.mxu1 %v6758_v46 }
 0x531   :  { %2419 = vmatprep.subr.bf16.mxu0 %v6761_v43  ;;  %4607 = vmatprep.subr.bf16.mxu1 %v6283_v9 }
 0x534   :  { %2420 = vmatpush1.bf16.msra.mxu0 %v6765_v49  ;;  %4608 = vmatpush3.bf16.msra.mxu1 %v6768_v45 }
 0x535   :  { %2421 = vmatprep.subr.bf16.mxu0 %v6771_v44  ;;  %4609 = vmatprep.subr.bf16.mxu1 %v6283_v9 }
 0x538   :  { %2422 = vmatpush1.bf16.msra.mxu0 %v6775_v22  ;;  %4610 = vmatpush3.bf16.msra.mxu1 %v6778_v42 }
 0x539   :  { %2423 = vmatprep.subr.bf16.mxu0 %v6781_v35  ;;  %4611 = vmatprep.subr.bf16.mxu1 %v6283_v9 }
 0x53c   :  { %2424 = vmatpush1.bf16.msra.mxu0 %v6785_v28  ;;  %4612 = vmatpush3.bf16.msra.mxu1 %v6788_v5 }
 0x53d   :  { %2425 = vmatprep.subr.bf16.mxu0 %v6791_v1  ;;  %4613 = vmatprep.subr.bf16.mxu1 %v6283_v9 }
 0x540   :  { %2426 = vmatpush1.bf16.msra.mxu0 %v6795_v37  ;;  %4614 = vmatpush3.bf16.msra.mxu1 %v6798_v27 }
 0x541   :  { %2493 = vmatprep.subr.bf16.mxu0 %v6801_v62  ;;  %4619 = vmatprep.subr.bf16.mxu1 %v6283_v9 }
 0x5b6   :  { %v2190_v58 = vpop.f32.mrb[48].mxu1 }
 0x5b7   :  { %v4557_v6 = vpop.f32.mrb[49].mxu1 }
 0x5b8   :  { %v2193_v8 = vpop.f32.mrb[50].mxu1 }
 0x5b9   :  { %v4558_v15 = vpop.f32.mrb[51].mxu1 }
 0x5d6   :  { %v2231_v52 = vpop.f32.mrb[36].mxu0  ;;  %v2272_v1 = vpop.f32.mrb[52].mxu1 }
 0x5d7   :  { %v4909_v5 = vadd.f32 %v2231_v52, %v7945_v14  ;;  %v2233_v28 = vpop.f32.mrb[37].mxu0  ;;  %v4577_v37 = vpop.f32.mrb[53].mxu1  ;;  %v2292_v49 = vadd.f32 %v7947_v51, %v2272_v1 }
 0x5d8   :  { %v2235_v35 = vpop.f32.mrb[38].mxu0  ;;  %v2275_v42 = vpop.f32.mrb[54].mxu1  ;;  %v4910_v45 = vadd.f32 %v2233_v28, %v7946_v36  ;;  %v2191_v37 = vadd.f32 %v2190_v58, %v6443_v47 }
 0x5d9   :  { %v4076_v22 = vmul.f32 -1.442695, %v4909_v5  ;;  %v2236_v27 = vpop.f32.mrb[39].mxu0  ;;  %v4578_v44 = vpop.f32.mrb[55].mxu1  ;;  %v7981_v5 = vld [vmem:[#allocation63_spill] sm:$0xff] }
 0x5da   :  { %v4077_v62 = vmul.f32 -1.442695, %v4910_v45  ;;  %v2304_v44 = vadd.f32 %v7949_v55, %v7981_v5  ;;  %v7982_v45 = vld [vmem:[#allocation64_spill] sm:$0xff] }
 0x5db   :  { %5194 = vpow2.f32 %v4076_v22  ;;  %v2305_v27 = vadd.f32 %v6250_v61, %v7982_v45 }
 0x5dc   :  { %5196 = vpow2.f32 %v4077_v62 }
 0x5e5   :  { %v5195_v9 = vpop.eup %5194 }
 0x5e6   :  { %v2282_v6 = vadd.f32 1.0, %v5195_v9  ;;  %v5197_v8 = vpop.eup %5196 }
 0x5e7   :  { %v2289_v15 = vadd.f32 1.0, %v5197_v8 }
 0x5e8   :  { %5198 = vrcp.f32 %v2282_v6 }
 0x5e9   :  { %5200 = vrcp.f32 %v2289_v15 }
 0x5f2   :  { %v5199_v52 = vpop.eup %5198 }
 0x5f3   :  { %v2293_v35 = vmul.f32 %v5199_v52, %v2292_v49  ;;  %v5201_v15 = vpop.eup %5200 }
 0x5f4   :  { %v2298_v55 = vmul.f32 %v5201_v15, %v6586_v23  ;;  %v7983_v23 = vld [vmem:[#allocation74_spill] sm:$0xff] }
 0x5f5   :  { %v2294_v42 = vadd.f32 %v2293_v35, %v2191_v37  ;;  %v2296_v37 = vsub.f32 1.0, %v5201_v15 }
 0x5f6   :  { %v2341_v28 = vpop.f32.mrb[40].mxu0  ;;  %v2382_v22 = vpop.f32.mrb[56].mxu1 }
 0x5f7   :  { %5202 = vtanh.f32 %v2294_v42  ;;  %v2388_v62 = vadd.f32 %v2341_v28, %v2304_v44  ;;  %v2343_v9 = vpop.f32.mrb[41].mxu0  ;;  %v4597_v6 = vpop.f32.mrb[57].mxu1 }
 0x5f8   :  { %v2395_v8 = vadd.f32 %v2343_v9, %v2305_v27  ;;  %v2345_v51 = vpop.f32.mrb[42].mxu0  ;;  %v2385_v1 = vpop.f32.mrb[58].mxu1 }
 0x5f9   :  { %v4078_v36 = vmul.f32 -1.442695, %v2388_v62  ;;  %v2346_v58 = vpop.f32.mrb[43].mxu0  ;;  %v4598_v49 = vpop.f32.mrb[59].mxu1 }
 0x5fa   :  { %v4079_v52 = vmul.f32 -1.442695, %v2395_v8 }
 0x5fb   :  { %5204 = vpow2.f32 %v4078_v36  ;;  %v6820_v36 = vld [vmem:[%s7659_s9] ss:$0 sm:$0xff] }
 0x5fc   :  { %5206 = vpow2.f32 %v4079_v52  ;;  %v2402_v62 = vadd.f32 %v6820_v36, %v2382_v22  ;;  %v6833_v22 = vld [vmem:[#allocation16] ss:$12 sps:$4 sm:$0xff]  }
 0x601   :  { %v5203_v35 = vpop.eup %5202 }
 0x602   :  { %v2297_v5 = vmul.f32 %v5203_v35, %v2296_v37  ;;  %v6836_v37 = vld [vmem:[#allocation16 + $0x8] ss:$12 sps:$4 sm:$0xff]  }
 0x603   :  { %v6839_v35 = vld [vmem:[#allocation16 + $0x1c] ss:$12 sps:$4 sm:$0xff]  }
 0x604   :  { %v6814_v45 = vadd.f32 %v2298_v55, %v2297_v5  ;;  %v6848_v5 = vld [vmem:[#allocation16 + $0x18] ss:$12 sps:$4 sm:$0xff]  }
 0x605   :  { %v5205_v42 = vpop.eup %5204 }
 0x606   :  { %v2392_v44 = vadd.f32 1.0, %v5205_v42  ;;  %2300 = vst [vmem:[#allocation3 + $0x4] sm:$0x3] %v6814_v45  ;;  %v5207_v28 = vpop.eup %5206  ;;  %v6851_v42 = vld [vmem:[#allocation16 + $0x20] ss:$12 sps:$4 sm:$0xff]  }
 0x607   :  { %v2399_v27 = vadd.f32 1.0, %v5207_v28  ;;  %v6858_v28 = vld [vmem:[#allocation16 + $0x30] ss:$12 sps:$4 sm:$0xff]  }
 0x608   :  { %5208 = vrcp.f32 %v2392_v44  ;;  %v6854_v44 = vld [vmem:[#allocation16 + $0x34] ss:$12 sps:$4 sm:$0xff]  }
 0x609   :  { %5210 = vrcp.f32 %v2399_v27  ;;  %v6861_v27 = vld [vmem:[#allocation16 + $0x38] ss:$12 sps:$4 sm:$0xff]  }
 0x612   :  { %v5209_v9 = vpop.eup %5208 }
 0x613   :  { %v2403_v6 = vmul.f32 %v5209_v9, %v2402_v62  ;;  %v5211_v8 = vpop.eup %5210  ;;  %v6864_v62 = vld [vmem:[#allocation16 + $0x4c] ss:$12 sps:$4 sm:$0xff]   ;;  %v6868_v9 = vld [vmem:[#allocation16 + $0x48] ss:$12 sps:$4 sm:$0xff]  }
 0x614   :  { %v2406_v51 = vsub.f32 1.0, %v5211_v8  ;;  %v2408_v49 = vmul.f32 %v5211_v8, %v6592_v11  ;;  %v6842_v11 = vld [vmem:[#allocation3 + $0x8] sm:$0xff] }
 0x615   :  { %v2404_v55 = vadd.f32 %v2403_v6, %v7983_v23  ;;  %v6871_v6 = vld [vmem:[#allocation16 + $0x50] ss:$12 sps:$4 sm:$0xff]   ;;  %v6881_v8 = vld [vmem:[#allocation16 + $0x68] ss:$12 sps:$4 sm:$0xff]  }
 0x616   :  { %v6874_v23 = vld [vmem:[#allocation16 + $0x64] ss:$12 sps:$4 sm:$0xff]   ;;  %7985 = vst [vmem:[#allocation50_spill] sm:$0xff] %v6881_v8 }
 0x617   :  { %5212 = vtanh.f32 %v2404_v55  ;;  %v6878_v55 = vld [vmem:[#allocation16 + $0x60] ss:$12 sps:$4 sm:$0xff]  }
 0x618   :  { %7984 = vst [vmem:[#allocation49_spill] sm:$0xff] %v6878_v55 }
 0x621   :  { %v5213_v1 = vpop.eup %5212 }
 0x622   :  { %v2407_v58 = vmul.f32 %v5213_v1, %v2406_v51  ;;  %v6884_v51 = vld [vmem:[#allocation16 + $0x7c] ss:$12 sps:$4 sm:$0xff]   ;;  %v6888_v1 = vld [vmem:[#allocation16 + $0x78] ss:$12 sps:$4 sm:$0xff]  }
 0x623   :  { %7986 = vst [vmem:[#allocation51_spill] sm:$0xff] %v6884_v51 }
 0x624   :  { %v6825_v15 = vadd.f32 %v2408_v49, %v2407_v58  ;;  %v6891_v58 = vld [vmem:[#allocation16 + $0x80] ss:$12 sps:$4 sm:$0xff]  }
 0x625   :  { %7987 = vst [vmem:[#allocation52_spill] sm:$0xff] %v6891_v58  ;;  %v6894_v49 = vld [vmem:[#allocation16 + $0x94] ss:$12 sps:$4 sm:$0xff]  }
 0x626   :  { %v6829_v52 = vpack.c.bf16 %v6825_v15, %v6825_v15  ;;  %7988 = vst [vmem:[#allocation53_spill] sm:$0xff] %v6894_v49 }
 0x628   :  { %2444 = vmatmul.mubr.bf16.vlgmr.msra.gmra.mrb[44].mxu0 %v6829_v52  ;;  %4616 = vmatmul.mubr.bf16.vlgmr.msra.gmra.mrb[60].mxu1 %v6829_v52 }
 0x629   :  { %2494 = vmatpush1.bf16.msra.mxu0 %v6833_v22  ;;  %4620 = vmatpush3.bf16.msra.mxu1 %v6836_v37 }
 0x62a   :  { %2495 = vmatprep.subr.bf16.mxu0 %v6839_v35  ;;  %4621 = vmatprep.subr.bf16.mxu1 %v6842_v11 }
 0x62b   :  { %2525 = vmatprep.mubr.bf16.mxu0 %v7882_v2  ;;  %4635 = vmatprep.mubr.msk.bf16.mxu1 %vm5701_vm0, %v6842_v11 }
 0x62d   :  { %2496 = vmatpush1.bf16.msra.mxu0 %v6848_v5  ;;  %4622 = vmatpush3.bf16.msra.mxu1 %v6851_v42 }
 0x62e   :  { %2497 = vmatprep.subr.bf16.mxu0 %v6854_v44  ;;  %4623 = vmatprep.subr.bf16.mxu1 %v6842_v11 }
 0x631   :  { %2498 = vmatpush1.bf16.msra.mxu0 %v6858_v28  ;;  %4624 = vmatpush3.bf16.msra.mxu1 %v6861_v27 }
 0x632   :  { %2499 = vmatprep.subr.bf16.mxu0 %v6864_v62  ;;  %4625 = vmatprep.subr.bf16.mxu1 %v6842_v11 }
 0x635   :  { %2500 = vmatpush1.bf16.msra.mxu0 %v6868_v9  ;;  %4626 = vmatpush3.bf16.msra.mxu1 %v6871_v6 }
 0x636   :  { %2501 = vmatprep.subr.bf16.mxu0 %v6874_v23  ;;  %4627 = vmatprep.subr.bf16.mxu1 %v6842_v11 }
 0x639   :  { %2502 = vmatpush1.bf16.msra.mxu0 %v6878_v55  ;;  %4628 = vmatpush3.bf16.msra.mxu1 %v6881_v8  ;;  %v6898_v8 = vld [vmem:[#allocation16 + $0x90] ss:$12 sps:$4 sm:$0xff]   ;;  %v6904_v55 = vld [vmem:[#allocation16 + $0xac] ss:$12 sps:$4 sm:$0xff]  }
 0x63a   :  { %2503 = vmatprep.subr.bf16.mxu0 %v6884_v51  ;;  %4629 = vmatprep.subr.bf16.mxu1 %v6842_v11  ;;  %7989 = vst [vmem:[#allocation54_spill] sm:$0xff] %v6898_v8  ;;  %v6901_v51 = vld [vmem:[#allocation16 + $0x98] ss:$12 sps:$4 sm:$0xff]  }
 0x63d   :  { %2504 = vmatpush1.bf16.msra.mxu0 %v6888_v1  ;;  %4630 = vmatpush3.bf16.msra.mxu1 %v6891_v58  ;;  %v6908_v58 = vld [vmem:[#allocation16 + $0xa8] ss:$12 sps:$4 sm:$0xff]  }
 0x63e   :  { %2505 = vmatprep.subr.bf16.mxu0 %v6894_v49  ;;  %4631 = vmatprep.subr.bf16.mxu1 %v6842_v11  ;;  %v6911_v49 = vld [vmem:[#allocation16 + $0xb0] ss:$12 sps:$4 sm:$0xff]  }
 0x641   :  { %2506 = vmatpush1.bf16.msra.mxu0 %v6898_v8  ;;  %4632 = vmatpush3.bf16.msra.mxu1 %v6901_v51  ;;  %v2492_v8 = vpack.c.bf16 %v6814_v45, %v6814_v45 }
 0x642   :  { %2507 = vmatprep.subr.bf16.mxu0 %v6904_v55  ;;  %4633 = vmatprep.subr.bf16.mxu1 %v6842_v11 }
 0x645   :  { %2508 = vmatpush1.bf16.msra.mxu0 %v6908_v58  ;;  %4634 = vmatpush3.bf16.msra.mxu1 %v6911_v49 }
 0x646   :  { %2603 = vmatprep.subr.bf16.mxu0 %v6501_v48  ;;  %4639 = vmatprep.subr.bf16.mxu1 %v6842_v11  ;;  %v7990_v48 = vld [vmem:[#allocation37_spill] sm:$0xff] }
 0x648   :  { %2526 = vmatmul.mubr.bf16.vlgmr.msra.gmra.mrb[44].mxu0 %v2492_v8  ;;  %4636 = vmatmul.mubr.bf16.vlgmr.msra.gmra.mrb[64].mxu1 %v2492_v8  ;;  %v7992_v8 = vld [vmem:[#allocation39_spill] sm:$0xff] }
 0x649   :  { %2604 = vmatpush1.bf16.msra.mxu0 %v6637_v38  ;;  %4640 = vmatpush3.bf16.msra.mxu1 %v6640_v50 }
 0x64a   :  { %2605 = vmatprep.subr.bf16.mxu0 %v6643_v53  ;;  %4641 = vmatprep.subr.bf16.mxu1 %v6842_v11 }
 0x64b   :  { %2635 = vmatprep.mubr.bf16.mxu0 %v7882_v2  ;;  %4655 = vmatprep.mubr.msk.bf16.mxu1 %vm5701_vm0, %v6842_v11 }
 0x64d   :  { %2606 = vmatpush1.bf16.msra.mxu0 %v6650_v4  ;;  %4642 = vmatpush3.bf16.msra.mxu1 %v6653_v56 }
 0x64e   :  { %2607 = vmatprep.subr.bf16.mxu0 %v6656_v0  ;;  %4643 = vmatprep.subr.bf16.mxu1 %v6842_v11 }
 0x651   :  { %2608 = vmatpush1.bf16.msra.mxu0 %v6660_v57  ;;  %4644 = vmatpush3.bf16.msra.mxu1 %v6663_v41 }
 0x652   :  { %2609 = vmatprep.subr.bf16.mxu0 %v6666_v29  ;;  %4645 = vmatprep.subr.bf16.mxu1 %v6842_v11 }
 0x655   :  { %2610 = vmatpush1.bf16.msra.mxu0 %v6670_v54  ;;  %4646 = vmatpush3.bf16.msra.mxu1 %v6673_v10 }
 0x656   :  { %2611 = vmatprep.subr.bf16.mxu0 %v6676_v63  ;;  %4647 = vmatprep.subr.bf16.mxu1 %v6842_v11 }
 0x659   :  { %2612 = vmatpush1.bf16.msra.mxu0 %v6680_v60  ;;  %4648 = vmatpush3.bf16.msra.mxu1 %v6683_v21 }
 0x65a   :  { %2613 = vmatprep.subr.bf16.mxu0 %v6686_v24  ;;  %4649 = vmatprep.subr.bf16.mxu1 %v6842_v11 }
 0x65d   :  { %2614 = vmatpush1.bf16.msra.mxu0 %v6690_v39  ;;  %4650 = vmatpush3.bf16.msra.mxu1 %v6693_v18 }
 0x65e   :  { %2615 = vmatprep.subr.bf16.mxu0 %v6696_v40  ;;  %4651 = vmatprep.subr.bf16.mxu1 %v6842_v11 }
 0x661   :  { %2616 = vmatpush1.bf16.msra.mxu0 %v6700_v31  ;;  %4652 = vmatpush3.bf16.msra.mxu1 %v6703_v12 }
 0x662   :  { %2617 = vmatprep.subr.bf16.mxu0 %v6706_v19  ;;  %4653 = vmatprep.subr.bf16.mxu1 %v6842_v11 }
 0x665   :  { %2618 = vmatpush1.bf16.msra.mxu0 %v6710_v7  ;;  %4654 = vmatpush3.bf16.msra.mxu1 %v6713_v16 }
 0x666   :  { %2707 = vmatprep.subr.bf16.mxu0 %v6716_v3  ;;  %4659 = vmatprep.subr.bf16.mxu1 %v6842_v11 }
 0x668   :  { %2636 = vmatmul.mubr.bf16.vlgmr.msra.gmra.mrb[48].mxu0 %v6829_v52  ;;  %4656 = vmatmul.mubr.bf16.vlgmr.msra.gmra.mrb[68].mxu1 %v6829_v52  ;;  %v7991_v52 = vld [vmem:[#allocation38_spill] sm:$0xff] }
 0x669   :  { %2708 = vmatpush1.bf16.msra.mxu0 %v6722_v25  ;;  %4660 = vmatpush3.bf16.msra.mxu1 %v6725_v17 }
 0x66a   :  { %2709 = vmatprep.subr.bf16.mxu0 %v6728_v13  ;;  %4661 = vmatprep.subr.bf16.mxu1 %v6842_v11 }
 0x66b   :  { %2739 = vmatprep.mubr.bf16.mxu0 %v7882_v2  ;;  %4675 = vmatprep.mubr.msk.bf16.mxu1 %vm5701_vm0, %v6842_v11 }
 0x66d   :  { %2710 = vmatpush1.bf16.msra.mxu0 %v6735_v20  ;;  %4662 = vmatpush3.bf16.msra.mxu1 %v6738_v26 }
 0x66e   :  { %2711 = vmatprep.subr.bf16.mxu0 %v6741_v59  ;;  %4663 = vmatprep.subr.bf16.mxu1 %v6842_v11 }
 0x671   :  { %2712 = vmatpush1.bf16.msra.mxu0 %v6745_v30  ;;  %4664 = vmatpush3.bf16.msra.mxu1 %v6748_v32  ;;  %v7993_v32 = vld [vmem:[#allocation40_spill] sm:$0xff]  ;;  %v7995_v30 = vld [vmem:[#allocation42_spill] sm:$0xff] }
 0x672   :  { %2713 = vmatprep.subr.bf16.mxu0 %v6751_v33  ;;  %4665 = vmatprep.subr.bf16.mxu1 %v6842_v11  ;;  %v7994_v33 = vld [vmem:[#allocation41_spill] sm:$0xff] }
 0x675   :  { %2714 = vmatpush1.bf16.msra.mxu0 %v6755_v34  ;;  %4666 = vmatpush3.bf16.msra.mxu1 %v6758_v46  ;;  %v7996_v46 = vld [vmem:[#allocation43_spill] sm:$0xff]  ;;  %v7998_v34 = vld [vmem:[#allocation45_spill] sm:$0xff] }
 0x676   :  { %2715 = vmatprep.subr.bf16.mxu0 %v6761_v43  ;;  %4667 = vmatprep.subr.bf16.mxu1 %v6842_v11  ;;  %v7997_v43 = vld [vmem:[#allocation44_spill] sm:$0xff] }
 0x679   :  { %2716 = vmatpush1.bf16.msra.mxu0 %v7990_v48  ;;  %4668 = vmatpush3.bf16.msra.mxu1 %v7991_v52  ;;  %v7999_v52 = vld [vmem:[#allocation46_spill] sm:$0xff]  ;;  %v8001_v48 = vld [vmem:[#allocation48_spill] sm:$0xff] }
 0x67a   :  { %2717 = vmatprep.subr.bf16.mxu0 %v7992_v8  ;;  %4669 = vmatprep.subr.bf16.mxu1 %v6842_v11  ;;  %v8000_v8 = vld [vmem:[#allocation47_spill] sm:$0xff] }
 0x67d   :  { %2718 = vmatpush1.bf16.msra.mxu0 %v7993_v32  ;;  %4670 = vmatpush3.bf16.msra.mxu1 %v7994_v33 }
 0x67e   :  { %2719 = vmatprep.subr.bf16.mxu0 %v7995_v30  ;;  %4671 = vmatprep.subr.bf16.mxu1 %v6842_v11 }
 0x681   :  { %2720 = vmatpush1.bf16.msra.mxu0 %v7996_v46  ;;  %4672 = vmatpush3.bf16.msra.mxu1 %v7997_v43 }
 0x682   :  { %2721 = vmatprep.subr.bf16.mxu0 %v7998_v34  ;;  %4673 = vmatprep.subr.bf16.mxu1 %v6842_v11 }
 0x685   :  { %2722 = vmatpush1.bf16.msra.mxu0 %v7999_v52  ;;  %4674 = vmatpush3.bf16.msra.mxu1 %v8000_v8  ;;  %v8002_v8 = vld [vmem:[#allocation84_spill] sm:$0xff] }
 0x686   :  { %2789 = vmatprep.subr.bf16.mxu0 %v8001_v48  ;;  %4679 = vmatprep.subr.bf16.mxu1 %v6842_v11 }
 0x6fb   :  { %v2486_v33 = vpop.f32.mrb[60].mxu1 }
 0x6fc   :  { %v4617_v30 = vpop.f32.mrb[61].mxu1 }
 0x6fd   :  { %v2489_v32 = vpop.f32.mrb[62].mxu1 }
 0x6fe   :  { %v4618_v59 = vpop.f32.mrb[63].mxu1 }
 0x71b   :  { %v2527_v26 = vpop.f32.mrb[44].mxu0  ;;  %v2568_v46 = vpop.f32.mrb[64].mxu1 }
 0x71c   :  { %v4911_v43 = vadd.f32 %v2527_v26, %v7945_v14  ;;  %v2529_v20 = vpop.f32.mrb[45].mxu0  ;;  %v4637_v34 = vpop.f32.mrb[65].mxu1  ;;  %v6995_v26 = vld [vmem:[%s7664_s14] ss:$0 sm:$0xff] }
 0x71d   :  { %v2531_v13 = vpop.f32.mrb[46].mxu0  ;;  %v2571_v17 = vpop.f32.mrb[66].mxu1  ;;  %v4912_v16 = vadd.f32 %v2529_v20, %v8002_v8  ;;  %8003 = vst [vmem:[#allocation55_spill] sm:$0xff] %v6995_v26  ;;  %v8005_v20 = vld [vmem:[#allocation72_spill] sm:$0xff] }
 0x71e   :  { %v4080_v25 = vmul.f32 -1.442695, %v4911_v43  ;;  %v2532_v52 = vpop.f32.mrb[47].mxu0  ;;  %v4638_v3 = vpop.f32.mrb[67].mxu1  ;;  %v2588_v17 = vadd.f32 %v6995_v26, %v2568_v46 }
 0x71f   :  { %v4081_v48 = vmul.f32 -1.442695, %v4912_v16  ;;  %v2487_v3 = vadd.f32 %v2486_v33, %v6443_v47  ;;  %v8004_v16 = vld [vmem:[#allocation65_spill] sm:$0xff]  ;;  %v8006_v52 = vld [vmem:[#allocation66_spill] sm:$0xff] }
 0x720   :  { %5214 = vpow2.f32 %v4080_v25  ;;  %v2600_v43 = vadd.f32 %v8005_v20, %v8004_v16 }
 0x721   :  { %5216 = vpow2.f32 %v4081_v48 }
 0x72a   :  { %v5215_v7 = vpop.eup %5214 }
 0x72b   :  { %v2578_v30 = vadd.f32 1.0, %v5215_v7  ;;  %v5217_v59 = vpop.eup %5216 }
 0x72c   :  { %v2585_v32 = vadd.f32 1.0, %v5217_v59 }
 0x72d   :  { %5218 = vrcp.f32 %v2578_v30  ;;  %v2601_v30 = vadd.f32 %v6250_v61, %v8006_v52 }
 0x72e   :  { %5220 = vrcp.f32 %v2585_v32 }
 0x737   :  { %v5219_v13 = vpop.eup %5218 }
 0x738   :  { %v2589_v34 = vmul.f32 %v5219_v13, %v2588_v17  ;;  %v5221_v32 = vpop.eup %5220 }
 0x739   :  { %v2594_v20 = vmul.f32 %v5221_v32, %v6814_v45 }
 0x73a   :  { %v2590_v25 = vadd.f32 %v2589_v34, %v2487_v3  ;;  %v2592_v3 = vsub.f32 1.0, %v5221_v32 }
 0x73b   :  { %v2637_v7 = vpop.f32.mrb[48].mxu0  ;;  %v2678_v48 = vpop.f32.mrb[68].mxu1 }
 0x73c   :  { %5222 = vtanh.f32 %v2590_v25  ;;  %v2684_v59 = vadd.f32 %v2637_v7, %v2600_v43  ;;  %v2639_v8 = vpop.f32.mrb[49].mxu0  ;;  %v4657_v14 = vpop.f32.mrb[69].mxu1 }
 0x73d   :  { %v2691_v19 = vadd.f32 %v2639_v8, %v2601_v30  ;;  %v2641_v46 = vpop.f32.mrb[50].mxu0  ;;  %v2681_v26 = vpop.f32.mrb[70].mxu1 }
 0x73e   :  { %v4082_v12 = vmul.f32 -1.442695, %v2684_v59  ;;  %v2642_v33 = vpop.f32.mrb[51].mxu0  ;;  %v4658_v17 = vpop.f32.mrb[71].mxu1  ;;  %v2698_v26 = vadd.f32 %v6820_v36, %v2678_v48  ;;  %v8009_v48 = vld [vmem:[#allocation50_spill] sm:$0xff] }
 0x73f   :  { %v4083_v13 = vmul.f32 -1.442695, %v2691_v19  ;;  %v8007_v19 = vld [vmem:[#allocation75_spill] sm:$0xff] }
 0x740   :  { %5224 = vpow2.f32 %v4082_v12 }
 0x741   :  { %5226 = vpow2.f32 %v4083_v13  ;;  %v8010_v13 = vld [vmem:[#allocation51_spill] sm:$0xff] }
 0x746   :  { %v5223_v34 = vpop.eup %5222 }
 0x747   :  { %v2593_v16 = vmul.f32 %v5223_v34, %v2592_v3  ;;  %v8011_v3 = vld [vmem:[#allocation52_spill] sm:$0xff]  ;;  %v8012_v34 = vld [vmem:[#allocation53_spill] sm:$0xff] }
 0x749   :  { %v7004_v52 = vadd.f32 %v2594_v20, %v2593_v16  ;;  %v8013_v16 = vld [vmem:[#allocation54_spill] sm:$0xff] }
 0x74a   :  { %v5225_v25 = vpop.eup %5224 }
 0x74b   :  { %v2688_v43 = vadd.f32 1.0, %v5225_v25  ;;  %2596 = vst [vmem:[#allocation3 + $0x6] sm:$0x3] %v7004_v52  ;;  %v5227_v14 = vpop.eup %5226  ;;  %v2788_v25 = vpack.c.bf16 %v7004_v52, %v7004_v52 }
 0x74c   :  { %v2695_v8 = vadd.f32 1.0, %v5227_v14  ;;  %v8033_v14 = vld [vmem:[#allocation39_spill] sm:$0xff] }
 0x74d   :  { %5228 = vrcp.f32 %v2688_v43  ;;  %v7053_v43 = vld [vmem:[#allocation13 + $0x4] ss:$12 sps:$4 sm:$0xff]  }
 0x74e   :  { %5230 = vrcp.f32 %v2695_v8  ;;  %v8034_v8 = vld [vmem:[#allocation40_spill] sm:$0xff] }
 0x757   :  { %v5229_v12 = vpop.eup %5228 }
 0x758   :  { %v2699_v7 = vmul.f32 %v5229_v12, %v2698_v26  ;;  %v5231_v59 = vpop.eup %5230  ;;  %v8035_v26 = vld [vmem:[#allocation41_spill] sm:$0xff]  ;;  %v8036_v12 = vld [vmem:[#allocation42_spill] sm:$0xff] }
 0x759   :  { %v2702_v46 = vsub.f32 1.0, %v5231_v59  ;;  %v2704_v33 = vmul.f32 %v5231_v59, %v6825_v15  ;;  %v8008_v15 = vld [vmem:[#allocation49_spill] sm:$0xff]  ;;  %v8040_v59 = vld [vmem:[#allocation46_spill] sm:$0xff] }
 0x75a   :  { %v2700_v30 = vadd.f32 %v2699_v7, %v8007_v19  ;;  %v8037_v7 = vld [vmem:[#allocation43_spill] sm:$0xff]  ;;  %v8038_v19 = vld [vmem:[#allocation44_spill] sm:$0xff] }
 0x75c   :  { %5232 = vtanh.f32 %v2700_v30  ;;  %v8039_v30 = vld [vmem:[#allocation45_spill] sm:$0xff] }
 0x766   :  { %v5233_v45 = vpop.eup %5232 }
 0x767   :  { %v2703_v20 = vmul.f32 %v5233_v45, %v2702_v46  ;;  %v8041_v46 = vld [vmem:[#allocation47_spill] sm:$0xff]  ;;  %v8042_v45 = vld [vmem:[#allocation48_spill] sm:$0xff] }
 0x769   :  { %v7010_v17 = vadd.f32 %v2704_v33, %v2703_v20 }
 0x76b   :  { %v7014_v32 = vpack.c.bf16 %v7010_v17, %v7010_v17 }
 0x76d   :  { %2740 = vmatmul.mubr.bf16.vlgmr.msra.gmra.mrb[52].mxu0 %v7014_v32  ;;  %4676 = vmatmul.mubr.bf16.vlgmr.msra.gmra.mrb[72].mxu1 %v7014_v32 }
 0x76e   :  { %2790 = vmatpush1.bf16.msra.mxu0 %v6833_v22  ;;  %4680 = vmatpush3.bf16.msra.mxu1 %v6836_v37 }
 0x76f   :  { %2791 = vmatprep.subr.bf16.mxu0 %v6839_v35  ;;  %4681 = vmatprep.subr.bf16.mxu1 %v6842_v11 }
 0x770   :  { %2821 = vmatprep.mubr.bf16.mxu0 %v7882_v2  ;;  %4695 = vmatprep.mubr.msk.bf16.mxu1 %vm5701_vm0, %v6842_v11 }
 0x772   :  { %2792 = vmatpush1.bf16.msra.mxu0 %v6848_v5  ;;  %4682 = vmatpush3.bf16.msra.mxu1 %v6851_v42 }
 0x773   :  { %2793 = vmatprep.subr.bf16.mxu0 %v6854_v44  ;;  %4683 = vmatprep.subr.bf16.mxu1 %v6842_v11 }
 0x776   :  { %2794 = vmatpush1.bf16.msra.mxu0 %v6858_v28  ;;  %4684 = vmatpush3.bf16.msra.mxu1 %v6861_v27 }
 0x777   :  { %2795 = vmatprep.subr.bf16.mxu0 %v6864_v62  ;;  %4685 = vmatprep.subr.bf16.mxu1 %v6842_v11 }
 0x77a   :  { %2796 = vmatpush1.bf16.msra.mxu0 %v6868_v9  ;;  %4686 = vmatpush3.bf16.msra.mxu1 %v6871_v6 }
 0x77b   :  { %2797 = vmatprep.subr.bf16.mxu0 %v6874_v23  ;;  %4687 = vmatprep.subr.bf16.mxu1 %v6842_v11 }
 0x77e   :  { %2798 = vmatpush1.bf16.msra.mxu0 %v8008_v15  ;;  %4688 = vmatpush3.bf16.msra.mxu1 %v8009_v48 }
 0x77f   :  { %2799 = vmatprep.subr.bf16.mxu0 %v8010_v13  ;;  %4689 = vmatprep.subr.bf16.mxu1 %v6842_v11 }
 0x782   :  { %2800 = vmatpush1.bf16.msra.mxu0 %v6888_v1  ;;  %4690 = vmatpush3.bf16.msra.mxu1 %v8011_v3 }
 0x783   :  { %2801 = vmatprep.subr.bf16.mxu0 %v8012_v34  ;;  %4691 = vmatprep.subr.bf16.mxu1 %v6842_v11 }
 0x786   :  { %2802 = vmatpush1.bf16.msra.mxu0 %v8013_v16  ;;  %4692 = vmatpush3.bf16.msra.mxu1 %v6901_v51 }
 0x787   :  { %2803 = vmatprep.subr.bf16.mxu0 %v6904_v55  ;;  %4693 = vmatprep.subr.bf16.mxu1 %v6842_v11 }
 0x78a   :  { %2804 = vmatpush1.bf16.msra.mxu0 %v6908_v58  ;;  %4694 = vmatpush3.bf16.msra.mxu1 %v6911_v49 }
 0x78b   :  { %2899 = vmatprep.subr.bf16.mxu0 %v7053_v43  ;;  %4699 = vmatprep.subr.bf16.mxu1 %v6842_v11 }
 0x78d   :  { %2822 = vmatmul.mubr.bf16.vlgmr.msra.gmra.mrb[52].mxu0 %v2788_v25  ;;  %4696 = vmatmul.mubr.bf16.vlgmr.msra.gmra.mrb[76].mxu1 %v2788_v25 }
 0x78e   :  { %2900 = vmatpush1.bf16.msra.mxu0 %v6637_v38  ;;  %4700 = vmatpush3.bf16.msra.mxu1 %v6640_v50  ;;  %v8014_v38 = vld [vmem:[#allocation69_spill] sm:$0xff]  ;;  %v8015_v50 = vld [vmem:[#allocation59_spill] sm:$0xff] }
 0x78f   :  { %2901 = vmatprep.subr.bf16.mxu0 %v6643_v53  ;;  %4701 = vmatprep.subr.bf16.mxu1 %v6842_v11  ;;  %v8016_v53 = vld [vmem:[#allocation60_spill] sm:$0xff] }
 0x790   :  { %2931 = vmatprep.mubr.bf16.mxu0 %v7882_v2  ;;  %4715 = vmatprep.mubr.msk.bf16.mxu1 %vm5701_vm0, %v6842_v11 }
 0x792   :  { %2902 = vmatpush1.bf16.msra.mxu0 %v6650_v4  ;;  %4702 = vmatpush3.bf16.msra.mxu1 %v6653_v56  ;;  %v8017_v4 = vld [vmem:[#allocation80_spill] sm:$0xff]  ;;  %v8018_v56 = vld [vmem:[#allocation81_spill] sm:$0xff] }
 0x793   :  { %2903 = vmatprep.subr.bf16.mxu0 %v6656_v0  ;;  %4703 = vmatprep.subr.bf16.mxu1 %v6842_v11  ;;  %v8019_v0 = vld [vmem:[#allocation82_spill] sm:$0xff] }
 0x796   :  { %2904 = vmatpush1.bf16.msra.mxu0 %v6660_v57  ;;  %4704 = vmatpush3.bf16.msra.mxu1 %v6663_v41  ;;  %v8020_v57 = vld [vmem:[#allocation26_spill] sm:$0xff]  ;;  %v8021_v41 = vld [vmem:[#allocation31_spill] sm:$0xff] }
 0x797   :  { %2905 = vmatprep.subr.bf16.mxu0 %v6666_v29  ;;  %4705 = vmatprep.subr.bf16.mxu1 %v6842_v11  ;;  %v8022_v29 = vld [vmem:[#allocation27_spill] sm:$0xff] }
 0x79a   :  { %2906 = vmatpush1.bf16.msra.mxu0 %v6670_v54  ;;  %4706 = vmatpush3.bf16.msra.mxu1 %v6673_v10  ;;  %v8023_v54 = vld [vmem:[#allocation28_spill] sm:$0xff] }
 0x79b   :  { %2907 = vmatprep.subr.bf16.mxu0 %v6676_v63  ;;  %4707 = vmatprep.subr.bf16.mxu1 %v6842_v11  ;;  %v8024_v10 = vld [vmem:[#allocation32_spill] sm:$0xff]  ;;  %v8025_v63 = vld [vmem:[#allocation29_spill] sm:$0xff] }
 0x79e   :  { %2908 = vmatpush1.bf16.msra.mxu0 %v6680_v60  ;;  %4708 = vmatpush3.bf16.msra.mxu1 %v6683_v21  ;;  %v8026_v60 = vld [vmem:[#allocation30_spill] sm:$0xff]  ;;  %v8027_v21 = vld [vmem:[#allocation33_spill] sm:$0xff] }
 0x79f   :  { %2909 = vmatprep.subr.bf16.mxu0 %v6686_v24  ;;  %4709 = vmatprep.subr.bf16.mxu1 %v6842_v11  ;;  %v8028_v24 = vld [vmem:[#allocation34_spill] sm:$0xff] }
 0x7a2   :  { %2910 = vmatpush1.bf16.msra.mxu0 %v6690_v39  ;;  %4710 = vmatpush3.bf16.msra.mxu1 %v6693_v18  ;;  %v8029_v39 = vld [vmem:[#allocation35_spill] sm:$0xff]  ;;  %v8030_v18 = vld [vmem:[#allocation36_spill] sm:$0xff] }
 0x7a3   :  { %2911 = vmatprep.subr.bf16.mxu0 %v6696_v40  ;;  %4711 = vmatprep.subr.bf16.mxu1 %v6842_v11  ;;  %v8031_v40 = vld [vmem:[#allocation37_spill] sm:$0xff] }
 0x7a6   :  { %2912 = vmatpush1.bf16.msra.mxu0 %v6700_v31  ;;  %4712 = vmatpush3.bf16.msra.mxu1 %v8014_v38  ;;  %v8032_v31 = vld [vmem:[#allocation38_spill] sm:$0xff] }
 0x7a7   :  { %2913 = vmatprep.subr.bf16.mxu0 %v8015_v50  ;;  %4713 = vmatprep.subr.bf16.mxu1 %v6842_v11 }
 0x7aa   :  { %2914 = vmatpush1.bf16.msra.mxu0 %v8016_v53  ;;  %4714 = vmatpush3.bf16.msra.mxu1 %v8017_v4  ;;  %v8043_v53 = vld [vmem:[#allocation83_spill] sm:$0xff] }
 0x7ab   :  { %3003 = vmatprep.subr.bf16.mxu0 %v8018_v56  ;;  %4719 = vmatprep.subr.bf16.mxu1 %v6842_v11 }
 0x7ad   :  { %2932 = vmatmul.mubr.bf16.vlgmr.msra.gmra.mrb[56].mxu0 %v7014_v32  ;;  %4716 = vmatmul.mubr.bf16.vlgmr.msra.gmra.mrb[80].mxu1 %v7014_v32 }
 0x7ae   :  { %3004 = vmatpush1.bf16.msra.mxu0 %v8019_v0  ;;  %4720 = vmatpush3.bf16.msra.mxu1 %v8020_v57 }
 0x7af   :  { %3005 = vmatprep.subr.bf16.mxu0 %v8021_v41  ;;  %4721 = vmatprep.subr.bf16.mxu1 %v6842_v11 }
 0x7b0   :  { %3035 = vmatprep.mubr.bf16.mxu0 %v7882_v2  ;;  %4735 = vmatprep.mubr.msk.bf16.mxu1 %vm5701_vm0, %v6842_v11 }
 0x7b2   :  { %3006 = vmatpush1.bf16.msra.mxu0 %v8022_v29  ;;  %4722 = vmatpush3.bf16.msra.mxu1 %v8023_v54 }
 0x7b3   :  { %3007 = vmatprep.subr.bf16.mxu0 %v8024_v10  ;;  %4723 = vmatprep.subr.bf16.mxu1 %v6842_v11 }
 0x7b6   :  { %3008 = vmatpush1.bf16.msra.mxu0 %v8025_v63  ;;  %4724 = vmatpush3.bf16.msra.mxu1 %v8026_v60  ;;  %v8044_v63 = vld [vmem:[#allocation84_spill] sm:$0xff] }
 0x7b7   :  { %3009 = vmatprep.subr.bf16.mxu0 %v8027_v21  ;;  %4725 = vmatprep.subr.bf16.mxu1 %v6842_v11 }
 0x7ba   :  { %3010 = vmatpush1.bf16.msra.mxu0 %v8028_v24  ;;  %4726 = vmatpush3.bf16.msra.mxu1 %v8029_v39 }
 0x7bb   :  { %3011 = vmatprep.subr.bf16.mxu0 %v8030_v18  ;;  %4727 = vmatprep.subr.bf16.mxu1 %v6842_v11 }
 0x7be   :  { %3012 = vmatpush1.bf16.msra.mxu0 %v8031_v40  ;;  %4728 = vmatpush3.bf16.msra.mxu1 %v8032_v31  ;;  %v8045_v31 = vld [vmem:[#allocation55_spill] sm:$0xff] }
 0x7bf   :  { %3013 = vmatprep.subr.bf16.mxu0 %v8033_v14  ;;  %4729 = vmatprep.subr.bf16.mxu1 %v6842_v11 }
 0x7c2   :  { %3014 = vmatpush1.bf16.msra.mxu0 %v8034_v8  ;;  %4730 = vmatpush3.bf16.msra.mxu1 %v8035_v26 }
 0x7c3   :  { %3015 = vmatprep.subr.bf16.mxu0 %v8036_v12  ;;  %4731 = vmatprep.subr.bf16.mxu1 %v6842_v11 }
 0x7c6   :  { %3016 = vmatpush1.bf16.msra.mxu0 %v8037_v7  ;;  %4732 = vmatpush3.bf16.msra.mxu1 %v8038_v19  ;;  %v8046_v19 = vld [vmem:[#allocation67_spill] sm:$0xff] }
 0x7c7   :  { %3017 = vmatprep.subr.bf16.mxu0 %v8039_v30  ;;  %4733 = vmatprep.subr.bf16.mxu1 %v6842_v11  ;;  %v8047_v30 = vld [vmem:[#allocation72_spill] sm:$0xff] }
 0x7ca   :  { %3018 = vmatpush1.bf16.msra.mxu0 %v8040_v59  ;;  %4734 = vmatpush3.bf16.msra.mxu1 %v8041_v46  ;;  %v2896_v59 = vadd.f32 %v8047_v30, %v8046_v19  ;;  %v8049_v19 = vld [vmem:[#allocation76_spill] sm:$0xff] }
 0x7cb   :  { %3085 = vmatprep.subr.bf16.mxu0 %v8042_v45  ;;  %4739 = vmatprep.subr.bf16.mxu1 %v6842_v11 }
 0x840   :  { %v2782_v20 = vpop.f32.mrb[72].mxu1 }
 0x841   :  { %v4677_v33 = vpop.f32.mrb[73].mxu1  ;;  %v2783_v26 = vadd.f32 %v2782_v20, %v6443_v47 }
 0x842   :  { %v2785_v32 = vpop.f32.mrb[74].mxu1  ;;  %v8048_v33 = vld [vmem:[#allocation68_spill] sm:$0xff] }
 0x843   :  { %v4678_v25 = vpop.f32.mrb[75].mxu1  ;;  %v2897_v32 = vadd.f32 %v6250_v61, %v8048_v33 }
 0x860   :  { %v2823_v38 = vpop.f32.mrb[52].mxu0  ;;  %v2864_v50 = vpop.f32.mrb[76].mxu1 }
 0x861   :  { %v4913_v4 = vadd.f32 %v2823_v38, %v8043_v53  ;;  %v2825_v56 = vpop.f32.mrb[53].mxu0  ;;  %v4697_v0 = vpop.f32.mrb[77].mxu1  ;;  %v2884_v14 = vadd.f32 %v8045_v31, %v2864_v50 }
 0x862   :  { %v2827_v57 = vpop.f32.mrb[54].mxu0  ;;  %v2867_v41 = vpop.f32.mrb[78].mxu1  ;;  %v4914_v60 = vadd.f32 %v2825_v56, %v8044_v63 }
 0x863   :  { %v4084_v29 = vmul.f32 -1.442695, %v4913_v4  ;;  %v2828_v54 = vpop.f32.mrb[55].mxu0  ;;  %v4698_v10 = vpop.f32.mrb[79].mxu1 }
 0x864   :  { %v4085_v21 = vmul.f32 -1.442695, %v4914_v60 }
 0x865   :  { %5234 = vpow2.f32 %v4084_v29 }
 0x866   :  { %5236 = vpow2.f32 %v4085_v21 }
 0x86f   :  { %v5235_v24 = vpop.eup %5234 }
 0x870   :  { %v2874_v39 = vadd.f32 1.0, %v5235_v24  ;;  %v5237_v18 = vpop.eup %5236 }
 0x871   :  { %v2881_v40 = vadd.f32 1.0, %v5237_v18 }
 0x872   :  { %5238 = vrcp.f32 %v2874_v39 }
 0x873   :  { %5240 = vrcp.f32 %v2881_v40 }
 0x87c   :  { %v5239_v8 = vpop.eup %5238 }
 0x87d   :  { %v2885_v12 = vmul.f32 %v5239_v8, %v2884_v14  ;;  %v5241_v29 = vpop.eup %5240 }
 0x87e   :  { %v2888_v10 = vsub.f32 1.0, %v5241_v29  ;;  %v2890_v24 = vmul.f32 %v5241_v29, %v7004_v52  ;;  %v7300_v29 = vld [vmem:[#allocation15 + $0x38] ss:$12 sps:$4 sm:$0xff]  }
 0x87f   :  { %v2886_v7 = vadd.f32 %v2885_v12, %v2783_v26 }
 0x880   :  { %v2933_v46 = vpop.f32.mrb[56].mxu0  ;;  %v2974_v45 = vpop.f32.mrb[80].mxu1 }
 0x881   :  { %5242 = vtanh.f32 %v2886_v7  ;;  %v2980_v25 = vadd.f32 %v2933_v46, %v2896_v59  ;;  %v2935_v38 = vpop.f32.mrb[57].mxu0  ;;  %v4717_v4 = vpop.f32.mrb[81].mxu1  ;;  %v2994_v26 = vadd.f32 %v6820_v36, %v2974_v45  ;;  %v7274_v45 = vld [vmem:[#allocation15] ss:$12 sps:$4 sm:$0xff]  }
 0x882   :  { %v2987_v56 = vadd.f32 %v2935_v38, %v2897_v32  ;;  %v2937_v50 = vpop.f32.mrb[58].mxu0  ;;  %v2977_v0 = vpop.f32.mrb[82].mxu1 }
 0x883   :  { %v4086_v57 = vmul.f32 -1.442695, %v2980_v25  ;;  %v2938_v20 = vpop.f32.mrb[59].mxu0  ;;  %v4718_v41 = vpop.f32.mrb[83].mxu1  ;;  %v7280_v50 = vld [vmem:[#allocation15 + $0x1c] ss:$12 sps:$4 sm:$0xff]  }
 0x884   :  { %v4087_v54 = vmul.f32 -1.442695, %v2987_v56  ;;  %v7277_v56 = vld [vmem:[#allocation15 + $0x8] ss:$12 sps:$4 sm:$0xff]   ;;  %v7287_v0 = vld [vmem:[#allocation15 + $0x18] ss:$12 sps:$4 sm:$0xff]  }
 0x885   :  { %5244 = vpow2.f32 %v4086_v57  ;;  %v7290_v57 = vld [vmem:[#allocation15 + $0x20] ss:$12 sps:$4 sm:$0xff]   ;;  %v7297_v41 = vld [vmem:[#allocation15 + $0x30] ss:$12 sps:$4 sm:$0xff]  }
 0x886   :  { %5246 = vpow2.f32 %v4087_v54  ;;  %v7293_v20 = vld [vmem:[#allocation15 + $0x34] ss:$12 sps:$4 sm:$0xff]   ;;  %v7303_v54 = vld [vmem:[#allocation15 + $0x4c] ss:$12 sps:$4 sm:$0xff]  }
 0x88b   :  { %v5243_v60 = vpop.eup %5242 }
 0x88c   :  { %v2889_v21 = vmul.f32 %v5243_v60, %v2888_v10  ;;  %v7307_v10 = vld [vmem:[#allocation15 + $0x48] ss:$12 sps:$4 sm:$0xff]   ;;  %v7310_v60 = vld [vmem:[#allocation15 + $0x50] ss:$12 sps:$4 sm:$0xff]  }
 0x88e   :  { %v7138_v39 = vadd.f32 %v2890_v24, %v2889_v21  ;;  %v7313_v21 = vld [vmem:[#allocation15 + $0x64] ss:$12 sps:$4 sm:$0xff]   ;;  %v7317_v24 = vld [vmem:[#allocation15 + $0x60] ss:$12 sps:$4 sm:$0xff]  }
 0x88f   :  { %v5245_v18 = vpop.eup %5244  ;;  %8050 = vst [vmem:[#allocation56_spill] sm:$0xff] %v7313_v21  ;;  %8051 = vst [vmem:[#allocation57_spill] sm:$0xff] %v7317_v24 }
 0x890   :  { %v2984_v40 = vadd.f32 1.0, %v5245_v18  ;;  %2892 = vst [vmem:[#allocation3 + $0x8] sm:$0x3] %v7138_v39  ;;  %v5247_v14 = vpop.eup %5246  ;;  %v3084_v36 = vpack.c.bf16 %v7138_v39, %v7138_v39  ;;  %v7320_v18 = vld [vmem:[#allocation15 + $0x68] ss:$12 sps:$4 sm:$0xff]  }
 0x891   :  { %v2991_v8 = vadd.f32 1.0, %v5247_v14  ;;  %8052 = vst [vmem:[#allocation58_spill] sm:$0xff] %v7320_v18  ;;  %v7327_v14 = vld [vmem:[#allocation15 + $0x78] ss:$12 sps:$4 sm:$0xff]  }
 0x892   :  { %5248 = vrcp.f32 %v2984_v40  ;;  %v7323_v40 = vld [vmem:[#allocation15 + $0x7c] ss:$12 sps:$4 sm:$0xff]   ;;  %8054 = vst [vmem:[#allocation61_spill] sm:$0xff] %v7327_v14 }
 0x893   :  { %5250 = vrcp.f32 %v2991_v8  ;;  %8053 = vst [vmem:[#allocation85_spill] sm:$0xff] %v7323_v40  ;;  %v7330_v8 = vld [vmem:[#allocation15 + $0x80] ss:$12 sps:$4 sm:$0xff]  }
 0x894   :  { %8055 = vst [vmem:[#allocation62_spill] sm:$0xff] %v7330_v8 }
 0x89c   :  { %v5249_v12 = vpop.eup %5248 }
 0x89d   :  { %v2995_v7 = vmul.f32 %v5249_v12, %v2994_v26  ;;  %v5251_v46 = vpop.eup %5250  ;;  %v7333_v26 = vld [vmem:[#allocation15 + $0x94] ss:$12 sps:$4 sm:$0xff]   ;;  %v7337_v12 = vld [vmem:[#allocation15 + $0x90] ss:$12 sps:$4 sm:$0xff]  }
 0x89e   :  { %v2998_v33 = vsub.f32 1.0, %v5251_v46  ;;  %v3000_v25 = vmul.f32 %v5251_v46, %v7010_v17  ;;  %v7248_v17 = vld [vmem:[#allocation13 + $0x94] ss:$12 sps:$4 sm:$0xff]   ;;  %8056 = vst [vmem:[#allocation73_spill] sm:$0xff] %v7333_v26  ;;  %8057 = vst [vmem:[#allocation63_spill] sm:$0xff] %v7337_v12 }
 0x89f   :  { %v2996_v59 = vadd.f32 %v2995_v7, %v8049_v19  ;;  %v7340_v7 = vld [vmem:[#allocation15 + $0x98] ss:$12 sps:$4 sm:$0xff]   ;;  %v7350_v46 = vld [vmem:[#allocation15 + $0xb0] ss:$12 sps:$4 sm:$0xff]  }
 0x8a0   :  { %8058 = vst [vmem:[#allocation64_spill] sm:$0xff] %v7340_v7  ;;  %v7343_v19 = vld [vmem:[#allocation15 + $0xac] ss:$12 sps:$4 sm:$0xff]   ;;  %8061 = vst [vmem:[#allocation66_spill] sm:$0xff] %v7350_v46 }
 0x8a1   :  { %5252 = vtanh.f32 %v2996_v59  ;;  %8059 = vst [vmem:[#allocation74_spill] sm:$0xff] %v7343_v19  ;;  %v7347_v59 = vld [vmem:[#allocation15 + $0xa8] ss:$12 sps:$4 sm:$0xff]  }
 0x8a2   :  { %8060 = vst [vmem:[#allocation65_spill] sm:$0xff] %v7347_v59 }
 0x8ab   :  { %v5253_v52 = vpop.eup %5252 }
 0x8ac   :  { %v2999_v32 = vmul.f32 %v5253_v52, %v2998_v33  ;;  %v7353_v33 = vld [vmem:[#allocation16 + $0x4] ss:$12 sps:$4 sm:$0xff]  }
 0x8ad   :  { %8062 = vst [vmem:[#allocation75_spill] sm:$0xff] %v7353_v33 }
 0x8ae   :  { %v7144_v38 = vadd.f32 %v3000_v25, %v2999_v32 }
 0x8b0   :  { %v7148_v4 = vpack.c.bf16 %v7144_v38, %v7144_v38 }
 0x8b2   :  { %3036 = vmatmul.mubr.bf16.vlgmr.msra.gmra.mrb[60].mxu0 %v7148_v4  ;;  %4736 = vmatmul.mubr.bf16.vlgmr.msra.gmra.mrb[84].mxu1 %v7148_v4 }
 0x8b3   :  { %3086 = vmatpush1.bf16.msra.mxu0 %v6833_v22  ;;  %4740 = vmatpush3.bf16.msra.mxu1 %v6836_v37  ;;  %v7189_v22 = vld [vmem:[#allocation13] ss:$12 sps:$4 sm:$0xff]   ;;  %v7192_v37 = vld [vmem:[#allocation13 + $0x8] ss:$12 sps:$4 sm:$0xff]  }
 0x8b4   :  { %3087 = vmatprep.subr.bf16.mxu0 %v6839_v35  ;;  %4741 = vmatprep.subr.bf16.mxu1 %v6842_v11  ;;  %v7195_v35 = vld [vmem:[#allocation13 + $0x1c] ss:$12 sps:$4 sm:$0xff]  }
 0x8b5   :  { %3117 = vmatprep.mubr.bf16.mxu0 %v7882_v2  ;;  %4755 = vmatprep.mubr.msk.bf16.mxu1 %vm5701_vm0, %v6842_v11 }
 0x8b7   :  { %3088 = vmatpush1.bf16.msra.mxu0 %v6848_v5  ;;  %4742 = vmatpush3.bf16.msra.mxu1 %v6851_v42  ;;  %v7202_v5 = vld [vmem:[#allocation13 + $0x18] ss:$12 sps:$4 sm:$0xff]   ;;  %v7205_v42 = vld [vmem:[#allocation13 + $0x20] ss:$12 sps:$4 sm:$0xff]  }
 0x8b8   :  { %3089 = vmatprep.subr.bf16.mxu0 %v6854_v44  ;;  %4743 = vmatprep.subr.bf16.mxu1 %v6842_v11  ;;  %v7208_v44 = vld [vmem:[#allocation13 + $0x34] ss:$12 sps:$4 sm:$0xff]  }
 0x8bb   :  { %3090 = vmatpush1.bf16.msra.mxu0 %v6858_v28  ;;  %4744 = vmatpush3.bf16.msra.mxu1 %v6861_v27  ;;  %v7212_v28 = vld [vmem:[#allocation13 + $0x30] ss:$12 sps:$4 sm:$0xff]   ;;  %v7215_v27 = vld [vmem:[#allocation13 + $0x38] ss:$12 sps:$4 sm:$0xff]  }
 0x8bc   :  { %3091 = vmatprep.subr.bf16.mxu0 %v6864_v62  ;;  %4745 = vmatprep.subr.bf16.mxu1 %v6842_v11  ;;  %v7218_v62 = vld [vmem:[#allocation13 + $0x4c] ss:$12 sps:$4 sm:$0xff]  }
 0x8bf   :  { %3092 = vmatpush1.bf16.msra.mxu0 %v6868_v9  ;;  %4746 = vmatpush3.bf16.msra.mxu1 %v6871_v6  ;;  %v7222_v9 = vld [vmem:[#allocation13 + $0x48] ss:$12 sps:$4 sm:$0xff]   ;;  %v7225_v6 = vld [vmem:[#allocation13 + $0x50] ss:$12 sps:$4 sm:$0xff]  }
 0x8c0   :  { %3093 = vmatprep.subr.bf16.mxu0 %v6874_v23  ;;  %4747 = vmatprep.subr.bf16.mxu1 %v6842_v11  ;;  %v7228_v23 = vld [vmem:[#allocation13 + $0x64] ss:$12 sps:$4 sm:$0xff]  }
 0x8c3   :  { %3094 = vmatpush1.bf16.msra.mxu0 %v8008_v15  ;;  %4748 = vmatpush3.bf16.msra.mxu1 %v8009_v48  ;;  %v7252_v15 = vld [vmem:[#allocation13 + $0x90] ss:$12 sps:$4 sm:$0xff]   ;;  %v7255_v48 = vld [vmem:[#allocation13 + $0x98] ss:$12 sps:$4 sm:$0xff]  }
 0x8c4   :  { %3095 = vmatprep.subr.bf16.mxu0 %v8010_v13  ;;  %4749 = vmatprep.subr.bf16.mxu1 %v6842_v11  ;;  %v7258_v13 = vld [vmem:[#allocation13 + $0xac] ss:$12 sps:$4 sm:$0xff]  }
 0x8c7   :  { %3096 = vmatpush1.bf16.msra.mxu0 %v6888_v1  ;;  %4750 = vmatpush3.bf16.msra.mxu1 %v8011_v3  ;;  %v7238_v1 = vld [vmem:[#allocation13 + $0x7c] ss:$12 sps:$4 sm:$0xff]  }
 0x8c8   :  { %3097 = vmatprep.subr.bf16.mxu0 %v8012_v34  ;;  %4751 = vmatprep.subr.bf16.mxu1 %v6842_v11  ;;  %v7262_v3 = vld [vmem:[#allocation13 + $0xa8] ss:$12 sps:$4 sm:$0xff]   ;;  %v7265_v34 = vld [vmem:[#allocation13 + $0xb0] ss:$12 sps:$4 sm:$0xff]  }
 0x8cb   :  { %3098 = vmatpush1.bf16.msra.mxu0 %v8013_v16  ;;  %4752 = vmatpush3.bf16.msra.mxu1 %v6901_v51  ;;  %v7235_v51 = vld [vmem:[#allocation13 + $0x68] ss:$12 sps:$4 sm:$0xff]   ;;  %v7268_v16 = vld [vmem:[#allocation15 + $0x4] ss:$12 sps:$4 sm:$0xff]  }
 0x8cc   :  { %3099 = vmatprep.subr.bf16.mxu0 %v6904_v55  ;;  %4753 = vmatprep.subr.bf16.mxu1 %v6842_v11  ;;  %v7232_v55 = vld [vmem:[#allocation13 + $0x60] ss:$12 sps:$4 sm:$0xff]  }
 0x8cf   :  { %3100 = vmatpush1.bf16.msra.mxu0 %v6908_v58  ;;  %4754 = vmatpush3.bf16.msra.mxu1 %v6911_v49  ;;  %v7242_v58 = vld [vmem:[#allocation13 + $0x78] ss:$12 sps:$4 sm:$0xff]   ;;  %v7245_v49 = vld [vmem:[#allocation13 + $0x80] ss:$12 sps:$4 sm:$0xff]  }
 0x8d0   :  { %3195 = vmatprep.subr.bf16.mxu0 %v7053_v43  ;;  %4759 = vmatprep.subr.bf16.mxu1 %v6842_v11 }
 0x8d2   :  { %3118 = vmatmul.mubr.bf16.vlgmr.msra.gmra.mrb[60].mxu0 %v3084_v36  ;;  %4756 = vmatmul.mubr.bf16.vlgmr.msra.gmra.mrb[88].mxu1 %v3084_v36 }
 0x8d3   :  { %3196 = vmatpush1.bf16.msra.mxu0 %v7189_v22  ;;  %4760 = vmatpush3.bf16.msra.mxu1 %v7192_v37 }
 0x8d4   :  { %3197 = vmatprep.subr.bf16.mxu0 %v7195_v35  ;;  %4761 = vmatprep.subr.bf16.mxu1 %v6842_v11 }
 0x8d5   :  { %3227 = vmatprep.mubr.bf16.mxu0 %v7882_v2  ;;  %4775 = vmatprep.mubr.msk.bf16.mxu1 %vm5701_vm0, %v6842_v11 }
 0x8d7   :  { %3198 = vmatpush1.bf16.msra.mxu0 %v7202_v5  ;;  %4762 = vmatpush3.bf16.msra.mxu1 %v7205_v42 }
 0x8d8   :  { %3199 = vmatprep.subr.bf16.mxu0 %v7208_v44  ;;  %4763 = vmatprep.subr.bf16.mxu1 %v6842_v11 }
 0x8db   :  { %3200 = vmatpush1.bf16.msra.mxu0 %v7212_v28  ;;  %4764 = vmatpush3.bf16.msra.mxu1 %v7215_v27 }
 0x8dc   :  { %3201 = vmatprep.subr.bf16.mxu0 %v7218_v62  ;;  %4765 = vmatprep.subr.bf16.mxu1 %v6842_v11 }
 0x8df   :  { %3202 = vmatpush1.bf16.msra.mxu0 %v7222_v9  ;;  %4766 = vmatpush3.bf16.msra.mxu1 %v7225_v6 }
 0x8e0   :  { %3203 = vmatprep.subr.bf16.mxu0 %v7228_v23  ;;  %4767 = vmatprep.subr.bf16.mxu1 %v6842_v11 }
 0x8e3   :  { %3204 = vmatpush1.bf16.msra.mxu0 %v7232_v55  ;;  %4768 = vmatpush3.bf16.msra.mxu1 %v7235_v51 }
 0x8e4   :  { %3205 = vmatprep.subr.bf16.mxu0 %v7238_v1  ;;  %4769 = vmatprep.subr.bf16.mxu1 %v6842_v11 }
 0x8e7   :  { %3206 = vmatpush1.bf16.msra.mxu0 %v7242_v58  ;;  %4770 = vmatpush3.bf16.msra.mxu1 %v7245_v49 }
 0x8e8   :  { %3207 = vmatprep.subr.bf16.mxu0 %v7248_v17  ;;  %4771 = vmatprep.subr.bf16.mxu1 %v6842_v11 }
 0x8eb   :  { %3208 = vmatpush1.bf16.msra.mxu0 %v7252_v15  ;;  %4772 = vmatpush3.bf16.msra.mxu1 %v7255_v48 }
 0x8ec   :  { %3209 = vmatprep.subr.bf16.mxu0 %v7258_v13  ;;  %4773 = vmatprep.subr.bf16.mxu1 %v6842_v11 }
 0x8ef   :  { %3210 = vmatpush1.bf16.msra.mxu0 %v7262_v3  ;;  %4774 = vmatpush3.bf16.msra.mxu1 %v7265_v34 }
 0x8f0   :  { %3299 = vmatprep.subr.bf16.mxu0 %v7268_v16  ;;  %4779 = vmatprep.subr.bf16.mxu1 %v6842_v11 }
 0x8f2   :  { %3228 = vmatmul.mubr.bf16.vlgmr.msra.gmra.mrb[64].mxu0 %v7148_v4  ;;  %4776 = vmatmul.mubr.bf16.vlgmr.msra.gmra.mrb[92].mxu1 %v7148_v4 }
 0x8f3   :  { %3300 = vmatpush1.bf16.msra.mxu0 %v7274_v45  ;;  %4780 = vmatpush3.bf16.msra.mxu1 %v7277_v56 }
 0x8f4   :  { %3301 = vmatprep.subr.bf16.mxu0 %v7280_v50  ;;  %4781 = vmatprep.subr.bf16.mxu1 %v6842_v11 }
 0x8f5   :  { %3331 = vmatprep.mubr.bf16.mxu0 %v7882_v2  ;;  %4795 = vmatprep.mubr.msk.bf16.mxu1 %vm5701_vm0, %v6842_v11 }
 0x8f7   :  { %3302 = vmatpush1.bf16.msra.mxu0 %v7287_v0  ;;  %4782 = vmatpush3.bf16.msra.mxu1 %v7290_v57 }
 0x8f8   :  { %3303 = vmatprep.subr.bf16.mxu0 %v7293_v20  ;;  %4783 = vmatprep.subr.bf16.mxu1 %v6842_v11 }
 0x8fb   :  { %3304 = vmatpush1.bf16.msra.mxu0 %v7297_v41  ;;  %4784 = vmatpush3.bf16.msra.mxu1 %v7300_v29 }
 0x8fc   :  { %3305 = vmatprep.subr.bf16.mxu0 %v7303_v54  ;;  %4785 = vmatprep.subr.bf16.mxu1 %v6842_v11 }
 0x8ff   :  { %3306 = vmatpush1.bf16.msra.mxu0 %v7307_v10  ;;  %4786 = vmatpush3.bf16.msra.mxu1 %v7310_v60 }
 0x900   :  { %3307 = vmatprep.subr.bf16.mxu0 %v7313_v21  ;;  %4787 = vmatprep.subr.bf16.mxu1 %v6842_v11 }
 0x903   :  { %3308 = vmatpush1.bf16.msra.mxu0 %v7317_v24  ;;  %4788 = vmatpush3.bf16.msra.mxu1 %v7320_v18 }
 0x904   :  { %3309 = vmatprep.subr.bf16.mxu0 %v7323_v40  ;;  %4789 = vmatprep.subr.bf16.mxu1 %v6842_v11 }
 0x907   :  { %3310 = vmatpush1.bf16.msra.mxu0 %v7327_v14  ;;  %4790 = vmatpush3.bf16.msra.mxu1 %v7330_v8 }
 0x908   :  { %3311 = vmatprep.subr.bf16.mxu0 %v7333_v26  ;;  %4791 = vmatprep.subr.bf16.mxu1 %v6842_v11 }
 0x90b   :  { %3312 = vmatpush1.bf16.msra.mxu0 %v7337_v12  ;;  %4792 = vmatpush3.bf16.msra.mxu1 %v7340_v7 }
 0x90c   :  { %3313 = vmatprep.subr.bf16.mxu0 %v7343_v19  ;;  %4793 = vmatprep.subr.bf16.mxu1 %v6842_v11 }
 0x90f   :  { %3314 = vmatpush1.bf16.msra.mxu0 %v7347_v59  ;;  %4794 = vmatpush3.bf16.msra.mxu1 %v7350_v46 }
 0x910   :  { %3381 = vmatprep.subr.bf16.mxu0 %v7353_v33  ;;  %4799 = vmatprep.subr.bf16.mxu1 %v6842_v11 }
 0x985   :  { %v3078_v52 = vpop.f32.mrb[84].mxu1 }
 0x986   :  { %v4737_v32 = vpop.f32.mrb[85].mxu1 }
 0x987   :  { %v3081_v25 = vpop.f32.mrb[86].mxu1 }
 0x988   :  { %v4738_v4 = vpop.f32.mrb[87].mxu1 }
 0x9a5   :  { %v3119_v36 = vpop.f32.mrb[60].mxu0  ;;  %v3160_v19 = vpop.f32.mrb[88].mxu1 }
 0x9a6   :  { %v4915_v7 = vadd.f32 %v3119_v36, %v8043_v53  ;;  %v3121_v12 = vpop.f32.mrb[61].mxu0  ;;  %v4757_v59 = vpop.f32.mrb[89].mxu1  ;;  %v3180_v21 = vadd.f32 %v8045_v31, %v3160_v19 }
 0x9a7   :  { %v3123_v26 = vpop.f32.mrb[62].mxu0  ;;  %v3163_v8 = vpop.f32.mrb[90].mxu1  ;;  %v4916_v18 = vadd.f32 %v3121_v12, %v8044_v63  ;;  %v3079_v59 = vadd.f32 %v3078_v52, %v6443_v47  ;;  %v8064_v12 = vld [vmem:[#allocation71_spill] sm:$0xff] }
 0x9a8   :  { %v4088_v14 = vmul.f32 -1.442695, %v4915_v7  ;;  %v3124_v46 = vpop.f32.mrb[63].mxu0  ;;  %v4758_v40 = vpop.f32.mrb[91].mxu1  ;;  %v8063_v8 = vld [vmem:[#allocation70_spill] sm:$0xff] }
 0x9a9   :  { %v4089_v33 = vmul.f32 -1.442695, %v4916_v18  ;;  %v3192_v40 = vadd.f32 %v8047_v30, %v8063_v8  ;;  %v3193_v18 = vadd.f32 %v6250_v61, %v8064_v12 }
 0x9aa   :  { %5254 = vpow2.f32 %v4088_v14 }
 0x9ab   :  { %5256 = vpow2.f32 %v4089_v33 }
 0x9b4   :  { %v5255_v24 = vpop.eup %5254 }
 0x9b5   :  { %v3170_v32 = vadd.f32 1.0, %v5255_v24  ;;  %v5257_v25 = vpop.eup %5256 }
 0x9b6   :  { %v3177_v4 = vadd.f32 1.0, %v5257_v25 }
 0x9b7   :  { %5258 = vrcp.f32 %v3170_v32 }
 0x9b8   :  { %5260 = vrcp.f32 %v3177_v4 }
 0x9c1   :  { %v5259_v36 = vpop.eup %5258 }
 0x9c2   :  { %v3181_v26 = vmul.f32 %v5259_v36, %v3180_v21  ;;  %v5261_v4 = vpop.eup %5260 }
 0x9c3   :  { %v3184_v8 = vsub.f32 1.0, %v5261_v4  ;;  %v3186_v12 = vmul.f32 %v5261_v4, %v7138_v39  ;;  %v8065_v39 = vld [vmem:[#allocation77_spill] sm:$0xff] }
 0x9c4   :  { %v3182_v7 = vadd.f32 %v3181_v26, %v3079_v59 }
 0x9c5   :  { %v3229_v14 = vpop.f32.mrb[64].mxu0  ;;  %v3270_v46 = vpop.f32.mrb[92].mxu1 }
 0x9c6   :  { %5262 = vtanh.f32 %v3182_v7  ;;  %v3276_v24 = vadd.f32 %v3229_v14, %v3192_v40  ;;  %v3231_v33 = vpop.f32.mrb[65].mxu0  ;;  %v4777_v32 = vpop.f32.mrb[93].mxu1 }
 0x9c7   :  { %v3283_v25 = vadd.f32 %v3231_v33, %v3193_v18  ;;  %v3233_v31 = vpop.f32.mrb[66].mxu0  ;;  %v3273_v19 = vpop.f32.mrb[94].mxu1 }
 0x9c8   :  { %v4090_v63 = vmul.f32 -1.442695, %v3276_v24  ;;  %v3234_v52 = vpop.f32.mrb[67].mxu0  ;;  %v4778_v21 = vpop.f32.mrb[95].mxu1 }
 0x9c9   :  { %v4091_v36 = vmul.f32 -1.442695, %v3283_v25 }
 0x9ca   :  { %5264 = vpow2.f32 %v4090_v63  ;;  %v7372_v63 = vld [vmem:[%s7659_s9] ss:$0 sm:$0xff] }
 0x9cb   :  { %5266 = vpow2.f32 %v4091_v36  ;;  %v3290_v24 = vadd.f32 %v7372_v63, %v3270_v46  ;;  %v7385_v46 = vld [vmem:[#allocation16] ss:$12 sps:$4 sm:$0xff]  }
 0x9d0   :  { %v5263_v59 = vpop.eup %5262 }
 0x9d1   :  { %v3185_v26 = vmul.f32 %v5263_v59, %v3184_v8  ;;  %v7388_v59 = vld [vmem:[#allocation16 + $0x8] ss:$12 sps:$4 sm:$0xff]  }
 0x9d3   :  { %v7366_v61 = vadd.f32 %v3186_v12, %v3185_v26  ;;  %v7391_v26 = vld [vmem:[#allocation16 + $0x1c] ss:$12 sps:$4 sm:$0xff]   ;;  %v7401_v12 = vld [vmem:[#allocation16 + $0x20] ss:$12 sps:$4 sm:$0xff]  }
 0x9d4   :  { %v5265_v40 = vpop.eup %5264 }
 0x9d5   :  { %v3280_v7 = vadd.f32 1.0, %v5265_v40  ;;  %3188 = vst [vmem:[#allocation3 + $0xa] sm:$0x3] %v7366_v61  ;;  %v5267_v18 = vpop.eup %5266  ;;  %v7404_v40 = vld [vmem:[#allocation16 + $0x34] ss:$12 sps:$4 sm:$0xff]  }
 0x9d6   :  { %v3287_v14 = vadd.f32 1.0, %v5267_v18  ;;  %v7411_v18 = vld [vmem:[#allocation16 + $0x38] ss:$12 sps:$4 sm:$0xff]  }
 0x9d7   :  { %5268 = vrcp.f32 %v3280_v7  ;;  %v7408_v7 = vld [vmem:[#allocation16 + $0x30] ss:$12 sps:$4 sm:$0xff]  }
 0x9d8   :  { %5270 = vrcp.f32 %v3287_v14  ;;  %v7414_v14 = vld [vmem:[#allocation16 + $0x4c] ss:$12 sps:$4 sm:$0xff]  }
 0x9e1   :  { %v5269_v33 = vpop.eup %5268 }
 0x9e2   :  { %v3291_v32 = vmul.f32 %v5269_v33, %v3290_v24  ;;  %v5271_v31 = vpop.eup %5270  ;;  %v7418_v24 = vld [vmem:[#allocation16 + $0x48] ss:$12 sps:$4 sm:$0xff]   ;;  %v7421_v33 = vld [vmem:[#allocation16 + $0x50] ss:$12 sps:$4 sm:$0xff]  }
 0x9e3   :  { %v3294_v19 = vsub.f32 1.0, %v5271_v31  ;;  %v3296_v4 = vmul.f32 %v5271_v31, %v7144_v38  ;;  %v7398_v38 = vld [vmem:[#allocation16 + $0x18] ss:$12 sps:$4 sm:$0xff]   ;;  %v7434_v31 = vld [vmem:[#allocation16 + $0x7c] ss:$12 sps:$4 sm:$0xff]  }
 0x9e4   :  { %v3292_v25 = vadd.f32 %v3291_v32, %v8065_v39  ;;  %v7424_v32 = vld [vmem:[#allocation16 + $0x64] ss:$12 sps:$4 sm:$0xff]   ;;  %v7428_v39 = vld [vmem:[#allocation16 + $0x60] ss:$12 sps:$4 sm:$0xff]   ;;  %8067 = vst [vmem:[#allocation50_spill] sm:$0xff] %v7434_v31 }
 0x9e6   :  { %5272 = vtanh.f32 %v3292_v25  ;;  %v7431_v25 = vld [vmem:[#allocation16 + $0x68] ss:$12 sps:$4 sm:$0xff]  }
 0x9e7   :  { %8066 = vst [vmem:[#allocation49_spill] sm:$0xff] %v7431_v25 }
 0x9f0   :  { %v5273_v52 = vpop.eup %5272 }
 0x9f1   :  { %v3295_v21 = vmul.f32 %v5273_v52, %v3294_v19  ;;  %v7438_v19 = vld [vmem:[#allocation16 + $0x78] ss:$12 sps:$4 sm:$0xff]   ;;  %v7441_v52 = vld [vmem:[#allocation16 + $0x80] ss:$12 sps:$4 sm:$0xff]  }
 0x9f2   :  { %8068 = vst [vmem:[#allocation51_spill] sm:$0xff] %v7441_v52 }
 0x9f3   :  { %v7377_v36 = vadd.f32 %v3296_v4, %v3295_v21  ;;  %v7444_v21 = vld [vmem:[#allocation16 + $0x94] ss:$12 sps:$4 sm:$0xff]   ;;  %v7448_v4 = vld [vmem:[#allocation16 + $0x90] ss:$12 sps:$4 sm:$0xff]  }
 0x9f4   :  { %8069 = vst [vmem:[#allocation52_spill] sm:$0xff] %v7444_v21  ;;  %8070 = vst [vmem:[#allocation53_spill] sm:$0xff] %v7448_v4 }
 0x9f5   :  { %v7381_v8 = vpack.c.bf16 %v7377_v36, %v7377_v36 }
 0x9f7   :  { %3332 = vmatmul.mubr.bf16.vlgmr.msra.gmra.mrb[68].mxu0 %v7381_v8  ;;  %4796 = vmatmul.mubr.bf16.vlgmr.msra.gmra.mrb[96].mxu1 %v7381_v8 }
 0x9f8   :  { %3382 = vmatpush1.bf16.msra.mxu0 %v7385_v46  ;;  %4800 = vmatpush3.bf16.msra.mxu1 %v7388_v59 }
 0x9f9   :  { %3383 = vmatprep.subr.bf16.mxu0 %v7391_v26  ;;  %4801 = vmatprep.subr.bf16.mxu1 %v6842_v11 }
 0x9fa   :  { %3413 = vmatprep.mubr.bf16.mxu0 %v7882_v2  ;;  %4815 = vmatprep.mubr.msk.bf16.mxu1 %vm5701_vm0, %v6842_v11 }
 0x9fc   :  { %3384 = vmatpush1.bf16.msra.mxu0 %v7398_v38  ;;  %4802 = vmatpush3.bf16.msra.mxu1 %v7401_v12 }
 0x9fd   :  { %3385 = vmatprep.subr.bf16.mxu0 %v7404_v40  ;;  %4803 = vmatprep.subr.bf16.mxu1 %v6842_v11 }
 0xa00   :  { %3386 = vmatpush1.bf16.msra.mxu0 %v7408_v7  ;;  %4804 = vmatpush3.bf16.msra.mxu1 %v7411_v18 }
 0xa01   :  { %3387 = vmatprep.subr.bf16.mxu0 %v7414_v14  ;;  %4805 = vmatprep.subr.bf16.mxu1 %v6842_v11 }
 0xa04   :  { %3388 = vmatpush1.bf16.msra.mxu0 %v7418_v24  ;;  %4806 = vmatpush3.bf16.msra.mxu1 %v7421_v33 }
 0xa05   :  { %3389 = vmatprep.subr.bf16.mxu0 %v7424_v32  ;;  %4807 = vmatprep.subr.bf16.mxu1 %v6842_v11 }
 0xa08   :  { %3390 = vmatpush1.bf16.msra.mxu0 %v7428_v39  ;;  %4808 = vmatpush3.bf16.msra.mxu1 %v7431_v25  ;;  %v7454_v25 = vld [vmem:[#allocation16 + $0xac] ss:$12 sps:$4 sm:$0xff]  }
 0xa09   :  { %3391 = vmatprep.subr.bf16.mxu0 %v7434_v31  ;;  %4809 = vmatprep.subr.bf16.mxu1 %v6842_v11  ;;  %v7451_v31 = vld [vmem:[#allocation16 + $0x98] ss:$12 sps:$4 sm:$0xff]  }
 0xa0c   :  { %3392 = vmatpush1.bf16.msra.mxu0 %v7438_v19  ;;  %4810 = vmatpush3.bf16.msra.mxu1 %v7441_v52  ;;  %v7458_v52 = vld [vmem:[#allocation16 + $0xa8] ss:$12 sps:$4 sm:$0xff]  }
 0xa0d   :  { %3393 = vmatprep.subr.bf16.mxu0 %v7444_v21  ;;  %4811 = vmatprep.subr.bf16.mxu1 %v6842_v11  ;;  %v7461_v21 = vld [vmem:[#allocation16 + $0xb0] ss:$12 sps:$4 sm:$0xff]  }
 0xa10   :  { %3394 = vmatpush1.bf16.msra.mxu0 %v7448_v4  ;;  %4812 = vmatpush3.bf16.msra.mxu1 %v7451_v31  ;;  %v3380_v4 = vpack.c.bf16 %v7366_v61, %v7366_v61 }
 0xa11   :  { %3395 = vmatprep.subr.bf16.mxu0 %v7454_v25  ;;  %4813 = vmatprep.subr.bf16.mxu1 %v6842_v11 }
 0xa14   :  { %3396 = vmatpush1.bf16.msra.mxu0 %v7458_v52  ;;  %4814 = vmatpush3.bf16.msra.mxu1 %v7461_v21 }
 0xa15   :  { %3491 = vmatprep.subr.bf16.mxu0 %v7053_v43  ;;  %4819 = vmatprep.subr.bf16.mxu1 %v6842_v11  ;;  %v8071_v43 = vld [vmem:[#allocation56_spill] sm:$0xff] }
 0xa17   :  { %3414 = vmatmul.mubr.bf16.vlgmr.msra.gmra.mrb[68].mxu0 %v3380_v4  ;;  %4816 = vmatmul.mubr.bf16.vlgmr.msra.gmra.mrb[100].mxu1 %v3380_v4 }
 0xa18   :  { %3492 = vmatpush1.bf16.msra.mxu0 %v7189_v22  ;;  %4820 = vmatpush3.bf16.msra.mxu1 %v7192_v37  ;;  %v8072_v22 = vld [vmem:[#allocation57_spill] sm:$0xff]  ;;  %v8073_v37 = vld [vmem:[#allocation58_spill] sm:$0xff] }
 0xa19   :  { %3493 = vmatprep.subr.bf16.mxu0 %v7195_v35  ;;  %4821 = vmatprep.subr.bf16.mxu1 %v6842_v11  ;;  %v8074_v35 = vld [vmem:[#allocation85_spill] sm:$0xff] }
 0xa1a   :  { %3523 = vmatprep.mubr.bf16.mxu0 %v7882_v2  ;;  %4835 = vmatprep.mubr.msk.bf16.mxu1 %vm5701_vm0, %v6842_v11 }
 0xa1c   :  { %3494 = vmatpush1.bf16.msra.mxu0 %v7202_v5  ;;  %4822 = vmatpush3.bf16.msra.mxu1 %v7205_v42  ;;  %v8075_v5 = vld [vmem:[#allocation61_spill] sm:$0xff]  ;;  %v8076_v42 = vld [vmem:[#allocation62_spill] sm:$0xff] }
 0xa1d   :  { %3495 = vmatprep.subr.bf16.mxu0 %v7208_v44  ;;  %4823 = vmatprep.subr.bf16.mxu1 %v6842_v11  ;;  %v8077_v44 = vld [vmem:[#allocation73_spill] sm:$0xff] }
 0xa20   :  { %3496 = vmatpush1.bf16.msra.mxu0 %v7212_v28  ;;  %4824 = vmatpush3.bf16.msra.mxu1 %v7215_v27  ;;  %v8078_v28 = vld [vmem:[#allocation63_spill] sm:$0xff]  ;;  %v8079_v27 = vld [vmem:[#allocation64_spill] sm:$0xff] }
 0xa21   :  { %3497 = vmatprep.subr.bf16.mxu0 %v7218_v62  ;;  %4825 = vmatprep.subr.bf16.mxu1 %v6842_v11  ;;  %v8080_v62 = vld [vmem:[#allocation74_spill] sm:$0xff] }
 0xa24   :  { %3498 = vmatpush1.bf16.msra.mxu0 %v7222_v9  ;;  %4826 = vmatpush3.bf16.msra.mxu1 %v7225_v6  ;;  %v8081_v9 = vld [vmem:[#allocation65_spill] sm:$0xff]  ;;  %v8082_v6 = vld [vmem:[#allocation66_spill] sm:$0xff] }
 0xa25   :  { %3499 = vmatprep.subr.bf16.mxu0 %v7228_v23  ;;  %4827 = vmatprep.subr.bf16.mxu1 %v6842_v11  ;;  %v8083_v23 = vld [vmem:[#allocation75_spill] sm:$0xff] }
 0xa28   :  { %3500 = vmatpush1.bf16.msra.mxu0 %v7232_v55  ;;  %4828 = vmatpush3.bf16.msra.mxu1 %v7235_v51 }
 0xa29   :  { %3501 = vmatprep.subr.bf16.mxu0 %v7238_v1  ;;  %4829 = vmatprep.subr.bf16.mxu1 %v6842_v11 }
 0xa2c   :  { %3502 = vmatpush1.bf16.msra.mxu0 %v7242_v58  ;;  %4830 = vmatpush3.bf16.msra.mxu1 %v7245_v49 }
 0xa2d   :  { %3503 = vmatprep.subr.bf16.mxu0 %v7248_v17  ;;  %4831 = vmatprep.subr.bf16.mxu1 %v6842_v11 }
 0xa30   :  { %3504 = vmatpush1.bf16.msra.mxu0 %v7252_v15  ;;  %4832 = vmatpush3.bf16.msra.mxu1 %v7255_v48 }
 0xa31   :  { %3505 = vmatprep.subr.bf16.mxu0 %v7258_v13  ;;  %4833 = vmatprep.subr.bf16.mxu1 %v6842_v11 }
 0xa34   :  { %3506 = vmatpush1.bf16.msra.mxu0 %v7262_v3  ;;  %4834 = vmatpush3.bf16.msra.mxu1 %v7265_v34 }
 0xa35   :  { %3595 = vmatprep.subr.bf16.mxu0 %v7268_v16  ;;  %4839 = vmatprep.subr.bf16.mxu1 %v6842_v11 }
 0xa37   :  { %3524 = vmatmul.mubr.bf16.vlgmr.msra.gmra.mrb[16].mxu0 %v7381_v8  ;;  %4836 = vmatmul.mubr.bf16.vlgmr.msra.gmra.mrb[104].mxu1 %v7381_v8 }
 0xa38   :  { %3596 = vmatpush1.bf16.msra.mxu0 %v7274_v45  ;;  %4840 = vmatpush3.bf16.msra.mxu1 %v7277_v56 }
 0xa39   :  { %3597 = vmatprep.subr.bf16.mxu0 %v7280_v50  ;;  %4841 = vmatprep.subr.bf16.mxu1 %v6842_v11  ;;  %v8084_v50 = vld [vmem:[#allocation84_spill] sm:$0xff] }
 0xa3a   :  { %3627 = vmatprep.mubr.bf16.mxu0 %v7882_v2  ;;  %4855 = vmatprep.mubr.msk.bf16.mxu1 %vm5701_vm0, %v6842_v11 }
 0xa3c   :  { %3598 = vmatpush1.bf16.msra.mxu0 %v7287_v0  ;;  %4842 = vmatpush3.bf16.msra.mxu1 %v7290_v57 }
 0xa3d   :  { %3599 = vmatprep.subr.bf16.mxu0 %v7293_v20  ;;  %4843 = vmatprep.subr.bf16.mxu1 %v6842_v11 }
 0xa40   :  { %3600 = vmatpush1.bf16.msra.mxu0 %v7297_v41  ;;  %4844 = vmatpush3.bf16.msra.mxu1 %v7300_v29 }
 0xa41   :  { %3601 = vmatprep.subr.bf16.mxu0 %v7303_v54  ;;  %4845 = vmatprep.subr.bf16.mxu1 %v6842_v11 }
 0xa44   :  { %3602 = vmatpush1.bf16.msra.mxu0 %v7307_v10  ;;  %4846 = vmatpush3.bf16.msra.mxu1 %v7310_v60  ;;  %v7545_v10 = vld [vmem:[%s7664_s14] ss:$0 sm:$0xff] }
 0xa45   :  { %3603 = vmatprep.subr.bf16.mxu0 %v8071_v43  ;;  %4847 = vmatprep.subr.bf16.mxu1 %v6842_v11 }
 0xa48   :  { %3604 = vmatpush1.bf16.msra.mxu0 %v8072_v22  ;;  %4848 = vmatpush3.bf16.msra.mxu1 %v8073_v37 }
 0xa49   :  { %3605 = vmatprep.subr.bf16.mxu0 %v8074_v35  ;;  %4849 = vmatprep.subr.bf16.mxu1 %v6842_v11 }
 0xa4c   :  { %3606 = vmatpush1.bf16.msra.mxu0 %v8075_v5  ;;  %4850 = vmatpush3.bf16.msra.mxu1 %v8076_v42 }
 0xa4d   :  { %3607 = vmatprep.subr.bf16.mxu0 %v8077_v44  ;;  %4851 = vmatprep.subr.bf16.mxu1 %v6842_v11 }
 0xa50   :  { %3608 = vmatpush1.bf16.msra.mxu0 %v8078_v28  ;;  %4852 = vmatpush3.bf16.msra.mxu1 %v8079_v27 }
 0xa51   :  { %3609 = vmatprep.subr.bf16.mxu0 %v8080_v62  ;;  %4853 = vmatprep.subr.bf16.mxu1 %v6842_v11 }
 0xa54   :  { %3610 = vmatpush1.bf16.msra.mxu0 %v8081_v9  ;;  %4854 = vmatpush3.bf16.msra.mxu1 %v8082_v6 }
 0xa55   :  { %3677 = vmatprep.subr.bf16.mxu0 %v8083_v23  ;;  %4859 = vmatprep.subr.bf16.mxu1 %v6842_v11  ;;  %v8085_v23 = vld [vmem:[#allocation79_spill] sm:$0xff] }
 0xaca   :  { %v3374_v55 = vpop.f32.mrb[96].mxu1 }
 0xacb   :  { %v4797_v51 = vpop.f32.mrb[97].mxu1  ;;  %v3375_v4 = vadd.f32 %v3374_v55, %v6443_v47 }
 0xacc   :  { %v3377_v1 = vpop.f32.mrb[98].mxu1 }
 0xacd   :  { %v4798_v58 = vpop.f32.mrb[99].mxu1 }
 0xaea   :  { %v3415_v49 = vpop.f32.mrb[68].mxu0  ;;  %v3456_v17 = vpop.f32.mrb[100].mxu1 }
 0xaeb   :  { %v4917_v15 = vadd.f32 %v3415_v49, %v8043_v53  ;;  %v3417_v48 = vpop.f32.mrb[69].mxu0  ;;  %v4817_v13 = vpop.f32.mrb[101].mxu1  ;;  %v3476_v60 = vadd.f32 %v7545_v10, %v3456_v17 }
 0xaec   :  { %v3419_v3 = vpop.f32.mrb[70].mxu0  ;;  %v3459_v34 = vpop.f32.mrb[102].mxu1  ;;  %v4918_v0 = vadd.f32 %v3417_v48, %v8084_v50 }
 0xaed   :  { %v4092_v16 = vmul.f32 -1.442695, %v4917_v15  ;;  %v3420_v45 = vpop.f32.mrb[71].mxu0  ;;  %v4818_v56 = vpop.f32.mrb[103].mxu1 }
 0xaee   :  { %v4093_v57 = vmul.f32 -1.442695, %v4918_v0  ;;  %v8086_v0 = vld [vmem:[#allocation78_spill] sm:$0xff] }
 0xaef   :  { %5274 = vpow2.f32 %v4092_v16 }
 0xaf0   :  { %5276 = vpow2.f32 %v4093_v57 }
 0xaf9   :  { %v5275_v20 = vpop.eup %5274 }
 0xafa   :  { %v3466_v41 = vadd.f32 1.0, %v5275_v20  ;;  %v5277_v29 = vpop.eup %5276 }
 0xafb   :  { %v3473_v54 = vadd.f32 1.0, %v5277_v29 }
 0xafc   :  { %5278 = vrcp.f32 %v3466_v41 }
 0xafd   :  { %5280 = vrcp.f32 %v3473_v54 }
 0xb06   :  { %v5279_v8 = vpop.eup %5278 }
 0xb07   :  { %v3477_v43 = vmul.f32 %v5279_v8, %v3476_v60  ;;  %v5281_v1 = vpop.eup %5280 }
 0xb08   :  { %v3480_v58 = vsub.f32 1.0, %v5281_v1  ;;  %v3482_v15 = vmul.f32 %v5281_v1, %v7366_v61 }
 0xb09   :  { %v3478_v22 = vadd.f32 %v3477_v43, %v3375_v4 }
 0xb0a   :  { %v3525_v37 = vpop.f32.mrb[16].mxu0  ;;  %v3566_v35 = vpop.f32.mrb[104].mxu1 }
 0xb0b   :  { %5282 = vtanh.f32 %v3478_v22  ;;  %v4903_v5 = vadd.f32 %v3525_v37, %v8047_v30  ;;  %v3527_v42 = vpop.f32.mrb[17].mxu0  ;;  %v4837_v44 = vpop.f32.mrb[105].mxu1  ;;  %v3586_v16 = vadd.f32 %v7372_v63, %v3566_v35  ;;  %v8088_v63 = vld [vmem:[#allocation50_spill] sm:$0xff] }
 0xb0c   :  { %v3529_v28 = vpop.f32.mrb[18].mxu0  ;;  %v3569_v27 = vpop.f32.mrb[106].mxu1  ;;  %v4904_v51 = vadd.f32 %v3527_v42, %v8085_v23 }
 0xb0d   :  { %v4094_v62 = vmul.f32 -1.442695, %v4903_v5  ;;  %v3530_v9 = vpop.f32.mrb[19].mxu0  ;;  %v4838_v6 = vpop.f32.mrb[107].mxu1 }
 0xb0e   :  { %v4095_v55 = vmul.f32 -1.442695, %v4904_v51 }
 0xb0f   :  { %5284 = vpow2.f32 %v4094_v62 }
 0xb10   :  { %5286 = vpow2.f32 %v4095_v55 }
 0xb15   :  { %v5283_v49 = vpop.eup %5282 }
 0xb16   :  { %v3481_v17 = vmul.f32 %v5283_v49, %v3480_v58 }
 0xb18   :  { %v7552_v48 = vadd.f32 %v3482_v15, %v3481_v17 }
 0xb19   :  { %v5285_v30 = vpop.eup %5284 }
 0xb1a   :  { %v3576_v13 = vadd.f32 1.0, %v5285_v30  ;;  %3484 = vst [vmem:[#allocation3 + $0xc] sm:$0x1] %v7552_v48  ;;  %v5287_v3 = vpop.eup %5286  ;;  %v3781_v30 = vld [vmem:[#allocation3] sm:$0xff] }
 0xb1b   :  { %v3583_v34 = vadd.f32 1.0, %v5287_v3 }
 0xb1c   :  { %5288 = vrcp.f32 %v3576_v13 }
 0xb1d   :  { %5290 = vrcp.f32 %v3583_v34 }
 0xb26   :  { %v5289_v45 = vpop.eup %5288 }
 0xb27   :  { %v3587_v56 = vmul.f32 %v5289_v45, %v3586_v16  ;;  %v5291_v20 = vpop.eup %5290 }
 0xb28   :  { %v3590_v41 = vsub.f32 1.0, %v5291_v20  ;;  %v3592_v54 = vmul.f32 %v5291_v20, %v7377_v36  ;;  %v8089_v36 = vld [vmem:[#allocation51_spill] sm:$0xff] }
 0xb29   :  { %v3588_v57 = vadd.f32 %v3587_v56, %v8086_v0 }
 0xb2b   :  { %5292 = vtanh.f32 %v3588_v57 }
 0xb35   :  { %v5293_v61 = vpop.eup %5292 }
 0xb36   :  { %v3591_v29 = vmul.f32 %v5293_v61, %v3590_v41 }
 0xb38   :  { %v3593_v60 = vadd.f32 %v3592_v54, %v3591_v29 }
 0xb3a   :  { %v3594_v8 = vpack.c.bf16 %v3593_v60, %v3593_v60 }
 0xb3c   :  { %3628 = vmatmul.mubr.bf16.vlgmr.msra.gmra.mrb[72].mxu0 %v3594_v8  ;;  %4856 = vmatmul.mubr.bf16.vlgmr.msra.gmra.mrb[108].mxu1 %v3594_v8 }
 0xb3d   :  { %3678 = vmatpush1.bf16.msra.mxu0 %v7385_v46  ;;  %4860 = vmatpush3.bf16.msra.mxu1 %v7388_v59  ;;  %v8090_v46 = vld [vmem:[#allocation52_spill] sm:$0xff]  ;;  %v8091_v59 = vld [vmem:[#allocation53_spill] sm:$0xff] }
 0xb3e   :  { %3679 = vmatprep.subr.bf16.mxu0 %v7391_v26  ;;  %4861 = vmatprep.subr.bf16.mxu1 %v6842_v11  ;;  %v3676_v26 = vpack.c.bf16 %v7552_v48, %v7552_v48 }
 0xb3f   :  { %3709 = vmatprep.mubr.bf16.mxu0 %v7882_v2  ;;  %4875 = vmatprep.mubr.msk.bf16.mxu1 %vm5701_vm0, %v6842_v11  ;;  %v8087_v2 = vld [vmem:[#allocation49_spill] sm:$0xff] }
 0xb41   :  { %3680 = vmatpush1.bf16.msra.mxu0 %v7398_v38  ;;  %4862 = vmatpush3.bf16.msra.mxu1 %v7401_v12  ;;  %v5136_v38 = vld [vmem:[%s7665_s15] sm:$0xff]   ;;  %v5137_v12 = vld [vmem:[%s7665_s15 + $0x8] sm:$0xff]  }
 0xb42   :  { %3681 = vmatprep.subr.bf16.mxu0 %v7404_v40  ;;  %4863 = vmatprep.subr.bf16.mxu1 %v6842_v11  ;;  %v5138_v40 = vld [vmem:[%s7665_s15 + $0x10] sm:$0xff]  }
 0xb45   :  { %3682 = vmatpush1.bf16.msra.mxu0 %v7408_v7  ;;  %4864 = vmatpush3.bf16.msra.mxu1 %v7411_v18  ;;  %v5139_v7 = vld [vmem:[%s7665_s15 + $0x18] sm:$0xff]   ;;  %v5140_v18 = vld [vmem:[%s7665_s15 + $0x20] sm:$0xff]  }
 0xb46   :  { %3683 = vmatprep.subr.bf16.mxu0 %v7414_v14  ;;  %4865 = vmatprep.subr.bf16.mxu1 %v6842_v11  ;;  %v5141_v14 = vld [vmem:[%s7665_s15 + $0x28] sm:$0xff]  }
 0xb49   :  { %3684 = vmatpush1.bf16.msra.mxu0 %v7418_v24  ;;  %4866 = vmatpush3.bf16.msra.mxu1 %v7421_v33  ;;  %v5142_v24 = vld [vmem:[%s7665_s15 + $0x30] sm:$0xff]   ;;  %v5143_v33 = vld [vmem:[%s7665_s15 + $0x38] sm:$0xff]  }
 0xb4a   :  { %3685 = vmatprep.subr.bf16.mxu0 %v7424_v32  ;;  %4867 = vmatprep.subr.bf16.mxu1 %v6842_v11 }
 0xb4d   :  { %3686 = vmatpush1.bf16.msra.mxu0 %v7428_v39  ;;  %4868 = vmatpush3.bf16.msra.mxu1 %v8087_v2 }
 0xb4e   :  { %3687 = vmatprep.subr.bf16.mxu0 %v8088_v63  ;;  %4869 = vmatprep.subr.bf16.mxu1 %v6842_v11 }
 0xb51   :  { %3688 = vmatpush1.bf16.msra.mxu0 %v7438_v19  ;;  %4870 = vmatpush3.bf16.msra.mxu1 %v8089_v36 }
 0xb52   :  { %3689 = vmatprep.subr.bf16.mxu0 %v8090_v46  ;;  %4871 = vmatprep.subr.bf16.mxu1 %v6842_v11 }
 0xb55   :  { %3690 = vmatpush1.bf16.msra.mxu0 %v8091_v59  ;;  %4872 = vmatpush3.bf16.msra.mxu1 %v7451_v31 }
 0xb56   :  { %3691 = vmatprep.subr.bf16.mxu0 %v7454_v25  ;;  %4873 = vmatprep.subr.bf16.mxu1 %v6842_v11 }
 0xb59   :  { %3692 = vmatpush1.bf16.msra.mxu0 %v7458_v52  ;;  %4874 = vmatpush3.bf16.msra.mxu1 %v7461_v21 }
 0xb5a   :  { %4879 = vmatprep.subr.bf16.mxu0 %v6842_v11 }
 0xb5c   :  { %3710 = vmatmul.mubr.bf16.vlgmr.msra.gmra.mrb[72].mxu0 %v3676_v26  ;;  %4876 = vmatmul.mubr.bf16.vlgmr.msra.gmra.mrb[112].mxu1 %v3676_v26 }
 0xb5d   :  { %4895 = vmatprep.mubr.msk.bf16.mxu0 %vm5701_vm0, %v6842_v11  ;;  %4880 = vmatpush3.bf16.msra.mxu0 %v5136_v38 }
 0xb5e   :  { %4881 = vmatprep.subr.bf16.mxu0 %v6842_v11 }
 0xb61   :  { %4882 = vmatpush3.bf16.msra.mxu0 %v5137_v12 }
 0xb62   :  { %4883 = vmatprep.subr.bf16.mxu0 %v6842_v11 }
 0xb65   :  { %4884 = vmatpush3.bf16.msra.mxu0 %v5138_v40 }
 0xb66   :  { %4885 = vmatprep.subr.bf16.mxu0 %v6842_v11 }
 0xb69   :  { %4886 = vmatpush3.bf16.msra.mxu0 %v5139_v7 }
 0xb6a   :  { %4887 = vmatprep.subr.bf16.mxu0 %v6842_v11 }
 0xb6d   :  { %4888 = vmatpush3.bf16.msra.mxu0 %v5140_v18 }
 0xb6e   :  { %4889 = vmatprep.subr.bf16.mxu0 %v6842_v11 }
 0xb71   :  { %4890 = vmatpush3.bf16.msra.mxu0 %v5141_v14 }
 0xb72   :  { %4891 = vmatprep.subr.bf16.mxu0 %v6842_v11 }
 0xb75   :  { %4892 = vmatpush3.bf16.msra.mxu0 %v5142_v24 }
 0xb76   :  { %4893 = vmatprep.subr.bf16.mxu0 %v6842_v11 }
 0xb79   :  { %4894 = vmatpush3.bf16.msra.mxu0 %v5143_v33 }
 0xc0f   :  { %v3670_v32 = vpop.f32.mrb[108].mxu1 }
 0xc10   :  { %v4857_v39 = vpop.f32.mrb[109].mxu1  ;;  %v3671_v23 = vadd.f32 %v3670_v32, %v6443_v47  ;;  %v4098_v47 = vld [vmem:[%s7666_s16] ss:$0 sm:$0xff] }
 0xc11   :  { %v3673_v25 = vpop.f32.mrb[110].mxu1 }
 0xc12   :  { %v4858_v31 = vpop.f32.mrb[111].mxu1 }
 0xc2f   :  { %v3711_v19 = vpop.f32.mrb[72].mxu0  ;;  %v3752_v52 = vpop.f32.mrb[112].mxu1 }
 0xc30   :  { %v4919_v21 = vadd.f32 %v3711_v19, %v8043_v53  ;;  %v3713_v4 = vpop.f32.mrb[73].mxu0  ;;  %v4877_v43 = vpop.f32.mrb[113].mxu1  ;;  %v3772_v6 = vadd.f32 %v7545_v10, %v3752_v52 }
 0xc31   :  { %v3715_v22 = vpop.f32.mrb[74].mxu0  ;;  %v3755_v37 = vpop.f32.mrb[114].mxu1  ;;  %v4920_v44 = vadd.f32 %v3713_v4, %v8084_v50 }
 0xc32   :  { %v4096_v35 = vmul.f32 -1.442695, %v4919_v21  ;;  %v3716_v5 = vpop.f32.mrb[75].mxu0  ;;  %v4878_v42 = vpop.f32.mrb[115].mxu1 }
 0xc33   :  { %v4097_v11 = vmul.f32 -1.442695, %v4920_v44 }
 0xc34   :  { %5294 = vpow2.f32 %v4096_v35 }
 0xc35   :  { %5296 = vpow2.f32 %v4097_v11 }
 0xc3e   :  { %v5295_v28 = vpop.eup %5294 }
 0xc3f   :  { %v3762_v27 = vadd.f32 1.0, %v5295_v28  ;;  %v5297_v62 = vpop.eup %5296 }
 0xc40   :  { %v3769_v9 = vadd.f32 1.0, %v5297_v62 }
 0xc41   :  { %5298 = vrcp.f32 %v3762_v27 }
 0xc42   :  { %5300 = vrcp.f32 %v3769_v9 }
 0xc4b   :  { %v5299_v53 = vpop.eup %5298 }
 0xc4c   :  { %v3773_v51 = vmul.f32 %v5299_v53, %v3772_v6  ;;  %v5301_v55 = vpop.eup %5300 }
 0xc4d   :  { %v3776_v58 = vsub.f32 1.0, %v5301_v55  ;;  %v3778_v17 = vmul.f32 %v5301_v55, %v7552_v48 }
 0xc4e   :  { %v3774_v1 = vadd.f32 %v3773_v51, %v3671_v23 }
 0xc50   :  { %5302 = vtanh.f32 %v3774_v1 }
 0xc5a   :  { %v5303_v50 = vpop.eup %5302 }
 0xc5b   :  { %v3777_v49 = vmul.f32 %v5303_v50, %v3776_v58 }
 0xc5d   :  { %v3779_v15 = vadd.f32 %v3778_v17, %v3777_v49 }
 0xc5f   :  { %3780 = vst [vmem:[#allocation3 + $0xd] sm:$0x1] %v3779_v15 }
 0xc66   :  { %v3782_v13 = vld [vmem:[#allocation3 + $0x8] sm:$0xff] }
 0xc67   :  { %v3783_v3 = vpack.c.bf16 %v3782_v13, %v3781_v30 }
 0xc69   :  { %4896 = vmatmul.mubr.bf16.vlgmr.msra.gmra.mrb[76].mxu0 %v3783_v3 }
 0xd3c   :  { %v3889_v10 = vpop.f32.mrb[76].mxu0 }
 0xd3d   :  { %v3890_v34 = vadd.f32 %v4098_v47, %v3889_v10  ;;  %v4897_v16 = vpop.f32.mrb[77].mxu0 }
 0xd3e   :  { %v3892_v45 = vpop.f32.mrb[78].mxu0 }
 0xd3f   :  { %3896 = vst [vmem:[#allocation19] sm:$0xff] %v3890_v34  ;;  %v3893_v56 = vadd.f32 %v4098_v47, %v3892_v45  ;;  %v4898_v0 = vpop.f32.mrb[79].mxu0 }
 0xd41   :  { %3897 = vst [vmem:[#allocation19 + $0x8] sm:$0xff] %v3893_v56 }
 0xd42   :  { %5663 = shalt.err (!%p5660_p6)
}
 0xd43   :  { %s8092_s5 = sld [smem:[#allocation88_spill]] }
 0xd49   :  { %s5664_s24 = scalar_lea.hbm %s8092_s5, 256 }
 0xd4a   :  { %p5665_p7 = scmp.ne.s32.totalorder %s8092_s5, %s5664_s24  ;;  %p5668_p8 = scmp.lt.u32.totalorder %s5664_s24, %s8092_s5 }
 0xd4c   :  { %p5670_p9 = pnand %p5668_p8, %p5665_p7 }
 0xd4e   :  { %5673 = shalt.err (!%p5670_p9)
}
 0xd4f   :  { %3909 = dma.vmem_to_hbm [thread:$0]  %s3904_s10, 256, %s8092_s5, [#allocation6], %s5687_s1, %s5687_s1, %s5688_s20  }
 0xd50   :  { %5684 = dma.done.wait [#allocation6], 256  }
 0xd51   :  { %5685 = vsyncadd [#allocation6], 4294967040 }
 0xd52   :  { %3913 = vsyncpa [#allocation5], 1 }
 0xd53   :  { %3914 = vsyncpa [#allocation8], 1 }
 0xd54   :  { %3915 = vsyncpa [#allocation11], 1 }
 0xd55   :  { %3916 = vsyncpa [#allocation14], 1 }
 0xd56   :  { %3917 = vsyncpa [#allocation17], 1 }
 0xd57   :  { %3918 = vsyncpa [#allocation6], 1 }

</bundles_post_ra>
